<compile_context>
chip_gen: v7x
topology: tpu7x:2x2x1
jax: 0.10.0
libtpu: 0.0.40
codegen_flags: <defaults>
</compile_context>

<pallas_src>
import jax
import jax.numpy as jnp
from jax import lax
from jax.experimental import pallas as pl
from jax.experimental.pallas import tpu as pltpu

HIDDEN = 16          # hidden_size from the reference script
OUTPUT_SIZE = 64     # small synthetic vocabulary (reference uses 1000)
MAX_LENGTH = 10
SOS_TOKEN = 0


def attn_decoder_kernel(enc_out_ref, enc_h_ref, emb_ref,
                        w_h_t_ref, b_h_ref,          # fused [Wa ; W_hh] (pre-transposed) + bias
                        ua_w_t_ref, ua_b_ref,
                        va_w_ref, va_b_ref,
                        w_ih_e_t_ref, w_ih_c_t_ref, b_ih_ref,
                        wout_t_ref, bout_ref,
                        dec_out_ref, attn_ref, hid_out_ref):
    keys = enc_out_ref[...]                          # (B, S, H)
    B, S, H = keys.shape
    V = emb_ref.shape[0]
    T = dec_out_ref.shape[0]

    # ---- loop-invariant key projection, computed ONCE per call (hoisted) ----
    uk = (jnp.dot(keys.reshape(B * S, H), ua_w_t_ref[...],
                  preferred_element_type=jnp.float32)
          + ua_b_ref[...]).reshape(B, S, H)          # (B, S, H)

    # hoist all loop-invariant loads out of the decode loop
    emb = emb_ref[...]            # (V, H)
    w_h_t = w_h_t_ref[...]        # (H, 4H)  columns [0:H)=Wa^T, [H:4H)=W_hh^T
    b_h = b_h_ref[...]            # (1, 4H)
    va = va_w_ref[...]            # (1, H)
    va_b = va_b_ref[...]          # (1, 1)
    w_ih_e_t = w_ih_e_t_ref[...]  # (H, 3H)
    w_ih_c_t = w_ih_c_t_ref[...]  # (H, 3H)
    b_ih = b_ih_ref[...]          # (1, 3H)
    wout_t = wout_t_ref[...]      # (H, V)
    bout = bout_ref[...]          # (1, V)

    col = lax.broadcasted_iota(jnp.int32, (B, V), 1)
    h0 = enc_h_ref[...]                              # (B, H)
    onehot0 = (col == SOS_TOKEN).astype(jnp.float32) # (B, V)  SOS token as one-hot

    def step(t, carry):
        h, onehot = carry                            # (B,H), (B,V)

        # embedding lookup (V is small -> one-hot matmul)
        # TODO(synk): nn.Dropout(p=0.1) on the embedding is treated as identity (eval mode).
        embedded = jnp.dot(onehot, emb, preferred_element_type=jnp.float32)     # (B, H)

        # fused h-path matmul: [Wa(h) | W_hh(h)] in one MXU pass
        hproj = jnp.dot(h, w_h_t, preferred_element_type=jnp.float32) + b_h     # (B, 4H)
        wq = hproj[:, :H]                                                       # (B, H)
        gh = hproj[:, H:]                                                       # (B, 3H)

        # ---- Bahdanau attention ----
        tt = jnp.tanh(wq[:, None, :] + uk)                                      # (B, S, H)
        # Va projection as VPU multiply + last-axis reduce (no width-1 MXU pass)
        scores = jnp.sum(tt * va, axis=-1) + va_b                               # (B, S)
        mx = jnp.max(scores, axis=-1, keepdims=True)
        e = jnp.exp(scores - mx)
        weights = e / jnp.sum(e, axis=-1, keepdims=True)                        # (B, S)
        context = jnp.sum(weights[:, :, None] * keys, axis=1)                   # (B, H)

        # ---- single GRU step (concat-free: W_ih split into embedded/context halves) ----
        gi = (jnp.dot(embedded, w_ih_e_t, preferred_element_type=jnp.float32)
              + jnp.dot(context, w_ih_c_t, preferred_element_type=jnp.float32)
              + b_ih)                                                           # (B, 3H)
        r = jax.nn.sigmoid(gi[:, :H] + gh[:, :H])
        z = jax.nn.sigmoid(gi[:, H:2 * H] + gh[:, H:2 * H])
        n = jnp.tanh(gi[:, 2 * H:] + r * gh[:, 2 * H:])
        h_new = (1.0 - z) * n + z * h                                           # (B, H)

        # ---- output projection + log_softmax (torch applies it at the end; same values) ----
        logits = jnp.dot(h_new, wout_t, preferred_element_type=jnp.float32) + bout  # (B, V)
        lmx = jnp.max(logits, axis=-1, keepdims=True)
        lse = lmx + jnp.log(jnp.sum(jnp.exp(logits - lmx), axis=-1, keepdims=True))
        dec_out_ref[t] = logits - lse
        attn_ref[t] = weights

        # ---- greedy feedback: first argmax index (matches torch.topk(1)) ----
        is_max = logits == lmx
        idx = jnp.min(jnp.where(is_max, col, V), axis=-1, keepdims=True)        # (B, 1)
        onehot_new = (col == idx).astype(jnp.float32)
        return h_new, onehot_new

    h_final, _ = lax.fori_loop(0, T, step, (h0, onehot0), unroll=True)
    hid_out_ref[...] = h_final                       # final hidden written once


def attn_decoder_forward(encoder_outputs, encoder_hidden, params):
    """encoder_outputs: (B,S,H) f32; encoder_hidden: (1,B,H) f32 (PyTorch GRU layout)."""
    B, S, H = encoder_outputs.shape
    V = params["emb"].shape[0]
    T = MAX_LENGTH

    # Weight fusion / pre-transposition (layout-only, done once in the wrapper).
    w_h_t = jnp.concatenate([params["wa_w"], params["w_hh"]], axis=0).T  # (H, 4H)
    b_h = jnp.concatenate([params["wa_b"], params["b_hh"]], axis=1)      # (1, 4H)
    ua_w_t = params["ua_w"].T                                            # (H, H)
    w_ih_e_t = params["w_ih"][:, :H].T                                   # (H, 3H)
    w_ih_c_t = params["w_ih"][:, H:].T                                   # (H, 3H)
    wout_t = params["wout"].T                                            # (H, V)

    vmem = pl.BlockSpec(memory_space=pltpu.MemorySpace.VMEM)

    dec_tbv, attn_tbs, hid = pl.pallas_call(
        attn_decoder_kernel,
        out_shape=[
            jax.ShapeDtypeStruct((T, B, V), jnp.float32),
            jax.ShapeDtypeStruct((T, B, S), jnp.float32),
            jax.ShapeDtypeStruct((B, H), jnp.float32),
        ],
        in_specs=[vmem] * 14,
        out_specs=[vmem, vmem, vmem],
    )(encoder_outputs, encoder_hidden[0],
      params["emb"],
      w_h_t, b_h,
      ua_w_t, params["ua_b"],
      params["va_w"], params["va_b"],
      w_ih_e_t, w_ih_c_t, params["b_ih"],
      wout_t, params["bout"])

    decoder_outputs = jnp.transpose(dec_tbv, (1, 0, 2))   # (B, T, V)  log-softmaxed
    attentions = jnp.transpose(attn_tbs, (1, 0, 2))       # (B, T, S)
    decoder_hidden = hid[None]                            # (1, B, H)
    return decoder_outputs, decoder_hidden, attentions


def init_params(key, hidden_size, output_size):
    H, V = hidden_size, output_size
    ks = jax.random.split(key, 16)
    s = 0.1
    p = {
        "emb":  jax.random.normal(ks[0], (V, H), jnp.float32) * s,
        "wa_w": jax.random.normal(ks[1], (H, H), jnp.float32) * s,
        "wa_b": jax.random.normal(ks[2], (1, H), jnp.float32) * s,
        "ua_w": jax.random.normal(ks[3], (H, H), jnp.float32) * s,
        "ua_b": jax.random.normal(ks[4], (1, H), jnp.float32) * s,
        "va_w": jax.random.normal(ks[5], (1, H), jnp.float32) * s,
        "va_b": jax.random.normal(ks[6], (1, 1), jnp.float32) * s,
        "w_ih": jax.random.normal(ks[7], (3 * H, 2 * H), jnp.float32) * s,
        "w_hh": jax.random.normal(ks[8], (3 * H, H), jnp.float32) * s,
        "b_ih": jax.random.normal(ks[9], (1, 3 * H), jnp.float32) * s,
        "b_hh": jax.random.normal(ks[10], (1, 3 * H), jnp.float32) * s,
        "wout": jax.random.normal(ks[11], (V, H), jnp.float32) * s,
        "bout": jax.random.normal(ks[12], (1, V), jnp.float32) * s,
    }
    return p


if __name__ == "__main__":
    B, S, H, V = 4, 8, HIDDEN, OUTPUT_SIZE
    key = jax.random.PRNGKey(0)
    k_params, k_enc, k_hid = jax.random.split(key, 3)

    params = init_params(k_params, H, V)
    encoder_outputs = jax.random.normal(k_enc, (B, S, H), jnp.float32)
    encoder_hidden = jax.random.normal(k_hid, (1, B, H), jnp.float32)

    dec_out, dec_hid, attn = attn_decoder_forward(encoder_outputs, encoder_hidden, params)
    jax.block_until_ready((dec_out, dec_hid, attn))

    assert dec_out.shape == (B, MAX_LENGTH, V)
    assert dec_hid.shape == (1, B, H)
    assert attn.shape == (B, MAX_LENGTH, S)
    assert bool(jnp.all(jnp.isfinite(dec_out)))
    assert bool(jnp.all(jnp.isfinite(attn)))
    print("KERNEL_OK")
</pallas_src>

<mosaic_0001>
module attributes {stable_mosaic.version = 11 : i64} {
  func.func @attn_decoder_kernel(%arg0: memref<4x8x16xf32, #tpu.memory_space<vmem>>, %arg1: memref<4x16xf32, #tpu.memory_space<vmem>>, %arg2: memref<64x16xf32, #tpu.memory_space<vmem>>, %arg3: memref<16x64xf32, #tpu.memory_space<vmem>>, %arg4: memref<1x64xf32, #tpu.memory_space<vmem>>, %arg5: memref<16x16xf32, #tpu.memory_space<vmem>>, %arg6: memref<1x16xf32, #tpu.memory_space<vmem>>, %arg7: memref<1x16xf32, #tpu.memory_space<vmem>>, %arg8: memref<1x1xf32, #tpu.memory_space<vmem>>, %arg9: memref<16x48xf32, #tpu.memory_space<vmem>>, %arg10: memref<16x48xf32, #tpu.memory_space<vmem>>, %arg11: memref<1x48xf32, #tpu.memory_space<vmem>>, %arg12: memref<16x64xf32, #tpu.memory_space<vmem>>, %arg13: memref<1x64xf32, #tpu.memory_space<vmem>>, %arg14: memref<10x4x64xf32, #tpu.memory_space<vmem>>, %arg15: memref<10x4x8xf32, #tpu.memory_space<vmem>>, %arg16: memref<4x16xf32, #tpu.memory_space<vmem>>) attributes {dimension_semantics = [], scalar_prefetch = 0 : i64, scratch_operands = 0 : i64, tpu.core_type = #tpu.core_type<tc>} {
    %c0 = arith.constant 0 : index
    %c0_0 = arith.constant 0 : index
    %c0_1 = arith.constant 0 : index
    %0 = vector.load %arg0[%c0, %c0_0, %c0_1] : memref<4x8x16xf32, #tpu.memory_space<vmem>>, vector<4x8x16xf32>
    %1 = vector.shape_cast %0 : vector<4x8x16xf32> to vector<32x16xf32>
    %c0_2 = arith.constant 0 : index
    %c0_3 = arith.constant 0 : index
    %2 = vector.load %arg5[%c0_2, %c0_3] : memref<16x16xf32, #tpu.memory_space<vmem>>, vector<16x16xf32>
    %cst = arith.constant dense<0.000000e+00> : vector<32x16xf32>
    %3 = tpu.matmul %1, %2, %cst {dimension_numbers = #tpu.dot_dimension_numbers<[1], [0], [0], [1], [0, 0, 1, 1], [], []>} : vector<32x16xf32>, vector<16x16xf32>, vector<32x16xf32> -> vector<32x16xf32>
    %c0_4 = arith.constant 0 : index
    %c0_5 = arith.constant 0 : index
    %4 = vector.load %arg6[%c0_4, %c0_5] : memref<1x16xf32, #tpu.memory_space<vmem>>, vector<1x16xf32>
    %5 = vector.broadcast %4 : vector<1x16xf32> to vector<32x16xf32>
    %6 = arith.addf %3, %5 : vector<32x16xf32>
    %7 = vector.shape_cast %6 : vector<32x16xf32> to vector<4x8x16xf32>
    %c0_6 = arith.constant 0 : index
    %c0_7 = arith.constant 0 : index
    %8 = vector.load %arg2[%c0_6, %c0_7] : memref<64x16xf32, #tpu.memory_space<vmem>>, vector<64x16xf32>
    %c0_8 = arith.constant 0 : index
    %c0_9 = arith.constant 0 : index
    %9 = vector.load %arg3[%c0_8, %c0_9] : memref<16x64xf32, #tpu.memory_space<vmem>>, vector<16x64xf32>
    %c0_10 = arith.constant 0 : index
    %c0_11 = arith.constant 0 : index
    %10 = vector.load %arg4[%c0_10, %c0_11] : memref<1x64xf32, #tpu.memory_space<vmem>>, vector<1x64xf32>
    %c0_12 = arith.constant 0 : index
    %c0_13 = arith.constant 0 : index
    %11 = vector.load %arg7[%c0_12, %c0_13] : memref<1x16xf32, #tpu.memory_space<vmem>>, vector<1x16xf32>
    %c0_14 = arith.constant 0 : index
    %c0_15 = arith.constant 0 : index
    %12 = vector.load %arg8[%c0_14, %c0_15] : memref<1x1xf32, #tpu.memory_space<vmem>>, vector<1x1xf32>
    %c0_16 = arith.constant 0 : index
    %c0_17 = arith.constant 0 : index
    %13 = vector.load %arg9[%c0_16, %c0_17] : memref<16x48xf32, #tpu.memory_space<vmem>>, vector<16x48xf32>
    %c0_18 = arith.constant 0 : index
    %c0_19 = arith.constant 0 : index
    %14 = vector.load %arg10[%c0_18, %c0_19] : memref<16x48xf32, #tpu.memory_space<vmem>>, vector<16x48xf32>
    %c0_20 = arith.constant 0 : index
    %c0_21 = arith.constant 0 : index
    %15 = vector.load %arg11[%c0_20, %c0_21] : memref<1x48xf32, #tpu.memory_space<vmem>>, vector<1x48xf32>
    %c0_22 = arith.constant 0 : index
    %c0_23 = arith.constant 0 : index
    %16 = vector.load %arg12[%c0_22, %c0_23] : memref<16x64xf32, #tpu.memory_space<vmem>>, vector<16x64xf32>
    %c0_24 = arith.constant 0 : index
    %c0_25 = arith.constant 0 : index
    %17 = vector.load %arg13[%c0_24, %c0_25] : memref<1x64xf32, #tpu.memory_space<vmem>>, vector<1x64xf32>
    %18 = tpu.iota {dimensions = array<i32: 1>} : vector<4x64xi32>
    %c0_26 = arith.constant 0 : index
    %c0_27 = arith.constant 0 : index
    %19 = vector.load %arg1[%c0_26, %c0_27] : memref<4x16xf32, #tpu.memory_space<vmem>>, vector<4x16xf32>
    %c0_i32 = arith.constant 0 : i32
    %20 = vector.broadcast %c0_i32 : i32 to vector<4x64xi32>
    %21 = arith.cmpi eq, %18, %20 : vector<4x64xi32>
    %22 = arith.extui %21 : vector<4x64xi1> to vector<4x64xi32>
    %23 = arith.sitofp %22 : vector<4x64xi32> to vector<4x64xf32>
    %c0_i32_28 = arith.constant 0 : i32
    %cst_29 = arith.constant dense<0.000000e+00> : vector<4x16xf32>
    %24 = tpu.matmul %23, %8, %cst_29 {dimension_numbers = #tpu.dot_dimension_numbers<[1], [0], [0], [1], [0, 0, 1, 1], [], []>} : vector<4x64xf32>, vector<64x16xf32>, vector<4x16xf32> -> vector<4x16xf32>
    %cst_30 = arith.constant dense<0.000000e+00> : vector<4x64xf32>
    %25 = tpu.matmul %19, %9, %cst_30 {dimension_numbers = #tpu.dot_dimension_numbers<[1], [0], [0], [1], [0, 0, 1, 1], [], []>} : vector<4x16xf32>, vector<16x64xf32>, vector<4x64xf32> -> vector<4x64xf32>
    %26 = vector.broadcast %10 : vector<1x64xf32> to vector<4x64xf32>
    %27 = arith.addf %25, %26 : vector<4x64xf32>
    %28 = vector.extract_strided_slice %27 {offsets = [0, 0], sizes = [4, 16], strides = [1, 1]} : vector<4x64xf32> to vector<4x16xf32>
    %29 = vector.extract_strided_slice %27 {offsets = [0, 16], sizes = [4, 48], strides = [1, 1]} : vector<4x64xf32> to vector<4x48xf32>
    %30 = vector.shape_cast %28 : vector<4x16xf32> to vector<4x1x16xf32>
    %31 = vector.broadcast %30 : vector<4x1x16xf32> to vector<4x8x16xf32>
    %32 = arith.addf %31, %7 : vector<4x8x16xf32>
    %33 = math.tanh %32 : vector<4x8x16xf32>
    %34 = vector.shape_cast %11 : vector<1x16xf32> to vector<1x1x16xf32>
    %35 = vector.broadcast %34 : vector<1x1x16xf32> to vector<4x8x16xf32>
    %36 = arith.mulf %33, %35 : vector<4x8x16xf32>
    %cst_31 = arith.constant dense<0.000000e+00> : vector<4x8xf32>
    %37 = vector.multi_reduction <add>, %36, %cst_31 [2] : vector<4x8x16xf32> to vector<4x8xf32>
    %38 = vector.broadcast %12 : vector<1x1xf32> to vector<4x8xf32>
    %39 = arith.addf %37, %38 : vector<4x8xf32>
    %cst_32 = arith.constant dense<0xFF800000> : vector<4xf32>
    %40 = vector.multi_reduction <maximumf>, %39, %cst_32 [1] : vector<4x8xf32> to vector<4xf32>
    %41 = vector.shape_cast %40 : vector<4xf32> to vector<4x1xf32>
    %42 = vector.broadcast %41 : vector<4x1xf32> to vector<4x8xf32>
    %43 = arith.subf %39, %42 : vector<4x8xf32>
    %44 = math.exp %43 : vector<4x8xf32>
    %cst_33 = arith.constant dense<0.000000e+00> : vector<4xf32>
    %45 = vector.multi_reduction <add>, %44, %cst_33 [1] : vector<4x8xf32> to vector<4xf32>
    %46 = vector.shape_cast %45 : vector<4xf32> to vector<4x1xf32>
    %47 = vector.broadcast %46 : vector<4x1xf32> to vector<4x8xf32>
    %48 = arith.divf %44, %47 : vector<4x8xf32>
    %49 = vector.shape_cast %48 : vector<4x8xf32> to vector<4x8x1xf32>
    %50 = vector.broadcast %49 : vector<4x8x1xf32> to vector<4x8x16xf32>
    %51 = arith.mulf %50, %0 : vector<4x8x16xf32>
    %cst_34 = arith.constant dense<0.000000e+00> : vector<4x16xf32>
    %52 = vector.multi_reduction <add>, %51, %cst_34 [1] : vector<4x8x16xf32> to vector<4x16xf32>
    %cst_35 = arith.constant dense<0.000000e+00> : vector<4x48xf32>
    %53 = tpu.matmul %24, %13, %cst_35 {dimension_numbers = #tpu.dot_dimension_numbers<[1], [0], [0], [1], [0, 0, 1, 1], [], []>} : vector<4x16xf32>, vector<16x48xf32>, vector<4x48xf32> -> vector<4x48xf32>
    %cst_36 = arith.constant dense<0.000000e+00> : vector<4x48xf32>
    %54 = tpu.matmul %52, %14, %cst_36 {dimension_numbers = #tpu.dot_dimension_numbers<[1], [0], [0], [1], [0, 0, 1, 1], [], []>} : vector<4x16xf32>, vector<16x48xf32>, vector<4x48xf32> -> vector<4x48xf32>
    %55 = arith.addf %53, %54 : vector<4x48xf32>
    %56 = vector.broadcast %15 : vector<1x48xf32> to vector<4x48xf32>
    %57 = arith.addf %55, %56 : vector<4x48xf32>
    %58 = vector.extract_strided_slice %57 {offsets = [0, 0], sizes = [4, 16], strides = [1, 1]} : vector<4x48xf32> to vector<4x16xf32>
    %59 = vector.extract_strided_slice %29 {offsets = [0, 0], sizes = [4, 16], strides = [1, 1]} : vector<4x48xf32> to vector<4x16xf32>
    %60 = arith.addf %58, %59 : vector<4x16xf32>
    %61 = arith.negf %60 : vector<4x16xf32>
    %62 = math.exp %61 : vector<4x16xf32>
    %cst_37 = arith.constant 1.000000e+00 : f32
    %63 = vector.broadcast %cst_37 : f32 to vector<4x16xf32>
    %64 = arith.addf %63, %62 : vector<4x16xf32>
    %65 = arith.divf %63, %64 : vector<4x16xf32>
    %66 = vector.extract_strided_slice %57 {offsets = [0, 16], sizes = [4, 16], strides = [1, 1]} : vector<4x48xf32> to vector<4x16xf32>
    %67 = vector.extract_strided_slice %29 {offsets = [0, 16], sizes = [4, 16], strides = [1, 1]} : vector<4x48xf32> to vector<4x16xf32>
    %68 = arith.addf %66, %67 : vector<4x16xf32>
    %69 = arith.negf %68 : vector<4x16xf32>
    %70 = math.exp %69 : vector<4x16xf32>
    %cst_38 = arith.constant 1.000000e+00 : f32
    %71 = vector.broadcast %cst_38 : f32 to vector<4x16xf32>
    %72 = arith.addf %71, %70 : vector<4x16xf32>
    %73 = arith.divf %71, %72 : vector<4x16xf32>
    %74 = vector.extract_strided_slice %57 {offsets = [0, 32], sizes = [4, 16], strides = [1, 1]} : vector<4x48xf32> to vector<4x16xf32>
    %75 = vector.extract_strided_slice %29 {offsets = [0, 32], sizes = [4, 16], strides = [1, 1]} : vector<4x48xf32> to vector<4x16xf32>
    %76 = arith.mulf %65, %75 : vector<4x16xf32>
    %77 = arith.addf %74, %76 : vector<4x16xf32>
    %78 = math.tanh %77 : vector<4x16xf32>
    %cst_39 = arith.constant 1.000000e+00 : f32
    %79 = vector.broadcast %cst_39 : f32 to vector<4x16xf32>
    %80 = arith.subf %79, %73 : vector<4x16xf32>
    %81 = arith.mulf %80, %78 : vector<4x16xf32>
    %82 = arith.mulf %73, %19 : vector<4x16xf32>
    %83 = arith.addf %81, %82 : vector<4x16xf32>
    %cst_40 = arith.constant dense<0.000000e+00> : vector<4x64xf32>
    %84 = tpu.matmul %83, %16, %cst_40 {dimension_numbers = #tpu.dot_dimension_numbers<[1], [0], [0], [1], [0, 0, 1, 1], [], []>} : vector<4x16xf32>, vector<16x64xf32>, vector<4x64xf32> -> vector<4x64xf32>
    %85 = vector.broadcast %17 : vector<1x64xf32> to vector<4x64xf32>
    %86 = arith.addf %84, %85 : vector<4x64xf32>
    %cst_41 = arith.constant dense<0xFF800000> : vector<4xf32>
    %87 = vector.multi_reduction <maximumf>, %86, %cst_41 [1] : vector<4x64xf32> to vector<4xf32>
    %88 = vector.shape_cast %87 : vector<4xf32> to vector<4x1xf32>
    %89 = vector.broadcast %88 : vector<4x1xf32> to vector<4x64xf32>
    %90 = arith.subf %86, %89 : vector<4x64xf32>
    %91 = math.exp %90 : vector<4x64xf32>
    %cst_42 = arith.constant dense<0.000000e+00> : vector<4xf32>
    %92 = vector.multi_reduction <add>, %91, %cst_42 [1] : vector<4x64xf32> to vector<4xf32>
    %93 = vector.shape_cast %92 : vector<4xf32> to vector<4x1xf32>
    %94 = math.log %93 : vector<4x1xf32>
    %95 = arith.addf %88, %94 : vector<4x1xf32>
    %96 = vector.broadcast %95 : vector<4x1xf32> to vector<4x64xf32>
    %97 = arith.subf %86, %96 : vector<4x64xf32>
    %98 = arith.index_cast %c0_i32_28 : i32 to index
    %c0_43 = arith.constant 0 : index
    %c0_44 = arith.constant 0 : index
    %99 = vector.load %arg14[%98, %c0_43, %c0_44] : memref<10x4x64xf32, #tpu.memory_space<vmem>>, vector<1x4x64xf32>
    %100 = vector.shape_cast %99 : vector<1x4x64xf32> to vector<4x64xf32>
    %101 = vector.shape_cast %97 : vector<4x64xf32> to vector<1x4x64xf32>
    tpu.vector_store %arg14[%98, %c0_43, %c0_44], %101 {strides = array<i32>} : memref<10x4x64xf32, #tpu.memory_space<vmem>>, vector<1x4x64xf32>,
    %102 = arith.index_cast %c0_i32_28 : i32 to index
    %c0_45 = arith.constant 0 : index
    %c0_46 = arith.constant 0 : index
    %103 = vector.load %arg15[%102, %c0_45, %c0_46] : memref<10x4x8xf32, #tpu.memory_space<vmem>>, vector<1x4x8xf32>
    %104 = vector.shape_cast %103 : vector<1x4x8xf32> to vector<4x8xf32>
    %105 = vector.shape_cast %48 : vector<4x8xf32> to vector<1x4x8xf32>
    tpu.vector_store %arg15[%102, %c0_45, %c0_46], %105 {strides = array<i32>} : memref<10x4x8xf32, #tpu.memory_space<vmem>>, vector<1x4x8xf32>,
    %106 = vector.broadcast %88 : vector<4x1xf32> to vector<4x64xf32>
    %107 = arith.cmpf oeq, %86, %106 : vector<4x64xf32>
    %c64_i32 = arith.constant 64 : i32
    %108 = vector.broadcast %c64_i32 : i32 to vector<4x64xi32>
    %109 = arith.select %107, %18, %108 : vector<4x64xi1>, vector<4x64xi32>
    %cst_47 = arith.constant dense<2147483647> : vector<4xi32>
    %110 = vector.multi_reduction <minsi>, %109, %cst_47 [1] : vector<4x64xi32> to vector<4xi32>
    %111 = vector.shape_cast %110 : vector<4xi32> to vector<4x1xi32>
    %112 = vector.broadcast %111 : vector<4x1xi32> to vector<4x64xi32>
    %113 = arith.cmpi eq, %18, %112 : vector<4x64xi32>
    %114 = arith.extui %113 : vector<4x64xi1> to vector<4x64xi32>
    %115 = arith.sitofp %114 : vector<4x64xi32> to vector<4x64xf32>
    %c1_i32 = arith.constant 1 : i32
    %cst_48 = arith.constant dense<0.000000e+00> : vector<4x16xf32>
    %116 = tpu.matmul %115, %8, %cst_48 {dimension_numbers = #tpu.dot_dimension_numbers<[1], [0], [0], [1], [0, 0, 1, 1], [], []>} : vector<4x64xf32>, vector<64x16xf32>, vector<4x16xf32> -> vector<4x16xf32>
    %cst_49 = arith.constant dense<0.000000e+00> : vector<4x64xf32>
    %117 = tpu.matmul %83, %9, %cst_49 {dimension_numbers = #tpu.dot_dimension_numbers<[1], [0], [0], [1], [0, 0, 1, 1], [], []>} : vector<4x16xf32>, vector<16x64xf32>, vector<4x64xf32> -> vector<4x64xf32>
    %118 = vector.broadcast %10 : vector<1x64xf32> to vector<4x64xf32>
    %119 = arith.addf %117, %118 : vector<4x64xf32>
    %120 = vector.extract_strided_slice %119 {offsets = [0, 0], sizes = [4, 16], strides = [1, 1]} : vector<4x64xf32> to vector<4x16xf32>
    %121 = vector.extract_strided_slice %119 {offsets = [0, 16], sizes = [4, 48], strides = [1, 1]} : vector<4x64xf32> to vector<4x48xf32>
    %122 = vector.shape_cast %120 : vector<4x16xf32> to vector<4x1x16xf32>
    %123 = vector.broadcast %122 : vector<4x1x16xf32> to vector<4x8x16xf32>
    %124 = arith.addf %123, %7 : vector<4x8x16xf32>
    %125 = math.tanh %124 : vector<4x8x16xf32>
    %126 = vector.shape_cast %11 : vector<1x16xf32> to vector<1x1x16xf32>
    %127 = vector.broadcast %126 : vector<1x1x16xf32> to vector<4x8x16xf32>
    %128 = arith.mulf %125, %127 : vector<4x8x16xf32>
    %cst_50 = arith.constant dense<0.000000e+00> : vector<4x8xf32>
    %129 = vector.multi_reduction <add>, %128, %cst_50 [2] : vector<4x8x16xf32> to vector<4x8xf32>
    %130 = vector.broadcast %12 : vector<1x1xf32> to vector<4x8xf32>
    %131 = arith.addf %129, %130 : vector<4x8xf32>
    %cst_51 = arith.constant dense<0xFF800000> : vector<4xf32>
    %132 = vector.multi_reduction <maximumf>, %131, %cst_51 [1] : vector<4x8xf32> to vector<4xf32>
    %133 = vector.shape_cast %132 : vector<4xf32> to vector<4x1xf32>
    %134 = vector.broadcast %133 : vector<4x1xf32> to vector<4x8xf32>
    %135 = arith.subf %131, %134 : vector<4x8xf32>
    %136 = math.exp %135 : vector<4x8xf32>
    %cst_52 = arith.constant dense<0.000000e+00> : vector<4xf32>
    %137 = vector.multi_reduction <add>, %136, %cst_52 [1] : vector<4x8xf32> to vector<4xf32>
    %138 = vector.shape_cast %137 : vector<4xf32> to vector<4x1xf32>
    %139 = vector.broadcast %138 : vector<4x1xf32> to vector<4x8xf32>
    %140 = arith.divf %136, %139 : vector<4x8xf32>
    %141 = vector.shape_cast %140 : vector<4x8xf32> to vector<4x8x1xf32>
    %142 = vector.broadcast %141 : vector<4x8x1xf32> to vector<4x8x16xf32>
    %143 = arith.mulf %142, %0 : vector<4x8x16xf32>
    %cst_53 = arith.constant dense<0.000000e+00> : vector<4x16xf32>
    %144 = vector.multi_reduction <add>, %143, %cst_53 [1] : vector<4x8x16xf32> to vector<4x16xf32>
    %cst_54 = arith.constant dense<0.000000e+00> : vector<4x48xf32>
    %145 = tpu.matmul %116, %13, %cst_54 {dimension_numbers = #tpu.dot_dimension_numbers<[1], [0], [0], [1], [0, 0, 1, 1], [], []>} : vector<4x16xf32>, vector<16x48xf32>, vector<4x48xf32> -> vector<4x48xf32>
    %cst_55 = arith.constant dense<0.000000e+00> : vector<4x48xf32>
    %146 = tpu.matmul %144, %14, %cst_55 {dimension_numbers = #tpu.dot_dimension_numbers<[1], [0], [0], [1], [0, 0, 1, 1], [], []>} : vector<4x16xf32>, vector<16x48xf32>, vector<4x48xf32> -> vector<4x48xf32>
    %147 = arith.addf %145, %146 : vector<4x48xf32>
    %148 = vector.broadcast %15 : vector<1x48xf32> to vector<4x48xf32>
    %149 = arith.addf %147, %148 : vector<4x48xf32>
    %150 = vector.extract_strided_slice %149 {offsets = [0, 0], sizes = [4, 16], strides = [1, 1]} : vector<4x48xf32> to vector<4x16xf32>
    %151 = vector.extract_strided_slice %121 {offsets = [0, 0], sizes = [4, 16], strides = [1, 1]} : vector<4x48xf32> to vector<4x16xf32>
    %152 = arith.addf %150, %151 : vector<4x16xf32>
    %153 = arith.negf %152 : vector<4x16xf32>
    %154 = math.exp %153 : vector<4x16xf32>
    %cst_56 = arith.constant 1.000000e+00 : f32
    %155 = vector.broadcast %cst_56 : f32 to vector<4x16xf32>
    %156 = arith.addf %155, %154 : vector<4x16xf32>
    %157 = arith.divf %155, %156 : vector<4x16xf32>
    %158 = vector.extract_strided_slice %149 {offsets = [0, 16], sizes = [4, 16], strides = [1, 1]} : vector<4x48xf32> to vector<4x16xf32>
    %159 = vector.extract_strided_slice %121 {offsets = [0, 16], sizes = [4, 16], strides = [1, 1]} : vector<4x48xf32> to vector<4x16xf32>
    %160 = arith.addf %158, %159 : vector<4x16xf32>
    %161 = arith.negf %160 : vector<4x16xf32>
    %162 = math.exp %161 : vector<4x16xf32>
    %cst_57 = arith.constant 1.000000e+00 : f32
    %163 = vector.broadcast %cst_57 : f32 to vector<4x16xf32>
    %164 = arith.addf %163, %162 : vector<4x16xf32>
    %165 = arith.divf %163, %164 : vector<4x16xf32>
    %166 = vector.extract_strided_slice %149 {offsets = [0, 32], sizes = [4, 16], strides = [1, 1]} : vector<4x48xf32> to vector<4x16xf32>
    %167 = vector.extract_strided_slice %121 {offsets = [0, 32], sizes = [4, 16], strides = [1, 1]} : vector<4x48xf32> to vector<4x16xf32>
    %168 = arith.mulf %157, %167 : vector<4x16xf32>
    %169 = arith.addf %166, %168 : vector<4x16xf32>
    %170 = math.tanh %169 : vector<4x16xf32>
    %cst_58 = arith.constant 1.000000e+00 : f32
    %171 = vector.broadcast %cst_58 : f32 to vector<4x16xf32>
    %172 = arith.subf %171, %165 : vector<4x16xf32>
    %173 = arith.mulf %172, %170 : vector<4x16xf32>
    %174 = arith.mulf %165, %83 : vector<4x16xf32>
    %175 = arith.addf %173, %174 : vector<4x16xf32>
    %cst_59 = arith.constant dense<0.000000e+00> : vector<4x64xf32>
    %176 = tpu.matmul %175, %16, %cst_59 {dimension_numbers = #tpu.dot_dimension_numbers<[1], [0], [0], [1], [0, 0, 1, 1], [], []>} : vector<4x16xf32>, vector<16x64xf32>, vector<4x64xf32> -> vector<4x64xf32>
    %177 = vector.broadcast %17 : vector<1x64xf32> to vector<4x64xf32>
    %178 = arith.addf %176, %177 : vector<4x64xf32>
    %cst_60 = arith.constant dense<0xFF800000> : vector<4xf32>
    %179 = vector.multi_reduction <maximumf>, %178, %cst_60 [1] : vector<4x64xf32> to vector<4xf32>
    %180 = vector.shape_cast %179 : vector<4xf32> to vector<4x1xf32>
    %181 = vector.broadcast %180 : vector<4x1xf32> to vector<4x64xf32>
    %182 = arith.subf %178, %181 : vector<4x64xf32>
    %183 = math.exp %182 : vector<4x64xf32>
    %cst_61 = arith.constant dense<0.000000e+00> : vector<4xf32>
    %184 = vector.multi_reduction <add>, %183, %cst_61 [1] : vector<4x64xf32> to vector<4xf32>
    %185 = vector.shape_cast %184 : vector<4xf32> to vector<4x1xf32>
    %186 = math.log %185 : vector<4x1xf32>
    %187 = arith.addf %180, %186 : vector<4x1xf32>
    %188 = vector.broadcast %187 : vector<4x1xf32> to vector<4x64xf32>
    %189 = arith.subf %178, %188 : vector<4x64xf32>
    %190 = arith.index_cast %c1_i32 : i32 to index
    %c0_62 = arith.constant 0 : index
    %c0_63 = arith.constant 0 : index
    %191 = vector.load %arg14[%190, %c0_62, %c0_63] : memref<10x4x64xf32, #tpu.memory_space<vmem>>, vector<1x4x64xf32>
    %192 = vector.shape_cast %191 : vector<1x4x64xf32> to vector<4x64xf32>
    %193 = vector.shape_cast %189 : vector<4x64xf32> to vector<1x4x64xf32>
    tpu.vector_store %arg14[%190, %c0_62, %c0_63], %193 {strides = array<i32>} : memref<10x4x64xf32, #tpu.memory_space<vmem>>, vector<1x4x64xf32>,
    %194 = arith.index_cast %c1_i32 : i32 to index
    %c0_64 = arith.constant 0 : index
    %c0_65 = arith.constant 0 : index
    %195 = vector.load %arg15[%194, %c0_64, %c0_65] : memref<10x4x8xf32, #tpu.memory_space<vmem>>, vector<1x4x8xf32>
    %196 = vector.shape_cast %195 : vector<1x4x8xf32> to vector<4x8xf32>
    %197 = vector.shape_cast %140 : vector<4x8xf32> to vector<1x4x8xf32>
    tpu.vector_store %arg15[%194, %c0_64, %c0_65], %197 {strides = array<i32>} : memref<10x4x8xf32, #tpu.memory_space<vmem>>, vector<1x4x8xf32>,
    %198 = vector.broadcast %180 : vector<4x1xf32> to vector<4x64xf32>
    %199 = arith.cmpf oeq, %178, %198 : vector<4x64xf32>
    %c64_i32_66 = arith.constant 64 : i32
    %200 = vector.broadcast %c64_i32_66 : i32 to vector<4x64xi32>
    %201 = arith.select %199, %18, %200 : vector<4x64xi1>, vector<4x64xi32>
    %cst_67 = arith.constant dense<2147483647> : vector<4xi32>
    %202 = vector.multi_reduction <minsi>, %201, %cst_67 [1] : vector<4x64xi32> to vector<4xi32>
    %203 = vector.shape_cast %202 : vector<4xi32> to vector<4x1xi32>
    %204 = vector.broadcast %203 : vector<4x1xi32> to vector<4x64xi32>
    %205 = arith.cmpi eq, %18, %204 : vector<4x64xi32>
    %206 = arith.extui %205 : vector<4x64xi1> to vector<4x64xi32>
    %207 = arith.sitofp %206 : vector<4x64xi32> to vector<4x64xf32>
    %c2_i32 = arith.constant 2 : i32
    %cst_68 = arith.constant dense<0.000000e+00> : vector<4x16xf32>
    %208 = tpu.matmul %207, %8, %cst_68 {dimension_numbers = #tpu.dot_dimension_numbers<[1], [0], [0], [1], [0, 0, 1, 1], [], []>} : vector<4x64xf32>, vector<64x16xf32>, vector<4x16xf32> -> vector<4x16xf32>
    %cst_69 = arith.constant dense<0.000000e+00> : vector<4x64xf32>
    %209 = tpu.matmul %175, %9, %cst_69 {dimension_numbers = #tpu.dot_dimension_numbers<[1], [0], [0], [1], [0, 0, 1, 1], [], []>} : vector<4x16xf32>, vector<16x64xf32>, vector<4x64xf32> -> vector<4x64xf32>
    %210 = vector.broadcast %10 : vector<1x64xf32> to vector<4x64xf32>
    %211 = arith.addf %209, %210 : vector<4x64xf32>
    %212 = vector.extract_strided_slice %211 {offsets = [0, 0], sizes = [4, 16], strides = [1, 1]} : vector<4x64xf32> to vector<4x16xf32>
    %213 = vector.extract_strided_slice %211 {offsets = [0, 16], sizes = [4, 48], strides = [1, 1]} : vector<4x64xf32> to vector<4x48xf32>
    %214 = vector.shape_cast %212 : vector<4x16xf32> to vector<4x1x16xf32>
    %215 = vector.broadcast %214 : vector<4x1x16xf32> to vector<4x8x16xf32>
    %216 = arith.addf %215, %7 : vector<4x8x16xf32>
    %217 = math.tanh %216 : vector<4x8x16xf32>
    %218 = vector.shape_cast %11 : vector<1x16xf32> to vector<1x1x16xf32>
    %219 = vector.broadcast %218 : vector<1x1x16xf32> to vector<4x8x16xf32>
    %220 = arith.mulf %217, %219 : vector<4x8x16xf32>
    %cst_70 = arith.constant dense<0.000000e+00> : vector<4x8xf32>
    %221 = vector.multi_reduction <add>, %220, %cst_70 [2] : vector<4x8x16xf32> to vector<4x8xf32>
    %222 = vector.broadcast %12 : vector<1x1xf32> to vector<4x8xf32>
    %223 = arith.addf %221, %222 : vector<4x8xf32>
    %cst_71 = arith.constant dense<0xFF800000> : vector<4xf32>
    %224 = vector.multi_reduction <maximumf>, %223, %cst_71 [1] : vector<4x8xf32> to vector<4xf32>
    %225 = vector.shape_cast %224 : vector<4xf32> to vector<4x1xf32>
    %226 = vector.broadcast %225 : vector<4x1xf32> to vector<4x8xf32>
    %227 = arith.subf %223, %226 : vector<4x8xf32>
    %228 = math.exp %227 : vector<4x8xf32>
    %cst_72 = arith.constant dense<0.000000e+00> : vector<4xf32>
    %229 = vector.multi_reduction <add>, %228, %cst_72 [1] : vector<4x8xf32> to vector<4xf32>
    %230 = vector.shape_cast %229 : vector<4xf32> to vector<4x1xf32>
    %231 = vector.broadcast %230 : vector<4x1xf32> to vector<4x8xf32>
    %232 = arith.divf %228, %231 : vector<4x8xf32>
    %233 = vector.shape_cast %232 : vector<4x8xf32> to vector<4x8x1xf32>
    %234 = vector.broadcast %233 : vector<4x8x1xf32> to vector<4x8x16xf32>
    %235 = arith.mulf %234, %0 : vector<4x8x16xf32>
    %cst_73 = arith.constant dense<0.000000e+00> : vector<4x16xf32>
    %236 = vector.multi_reduction <add>, %235, %cst_73 [1] : vector<4x8x16xf32> to vector<4x16xf32>
    %cst_74 = arith.constant dense<0.000000e+00> : vector<4x48xf32>
    %237 = tpu.matmul %208, %13, %cst_74 {dimension_numbers = #tpu.dot_dimension_numbers<[1], [0], [0], [1], [0, 0, 1, 1], [], []>} : vector<4x16xf32>, vector<16x48xf32>, vector<4x48xf32> -> vector<4x48xf32>
    %cst_75 = arith.constant dense<0.000000e+00> : vector<4x48xf32>
    %238 = tpu.matmul %236, %14, %cst_75 {dimension_numbers = #tpu.dot_dimension_numbers<[1], [0], [0], [1], [0, 0, 1, 1], [], []>} : vector<4x16xf32>, vector<16x48xf32>, vector<4x48xf32> -> vector<4x48xf32>
    %239 = arith.addf %237, %238 : vector<4x48xf32>
    %240 = vector.broadcast %15 : vector<1x48xf32> to vector<4x48xf32>
    %241 = arith.addf %239, %240 : vector<4x48xf32>
    %242 = vector.extract_strided_slice %241 {offsets = [0, 0], sizes = [4, 16], strides = [1, 1]} : vector<4x48xf32> to vector<4x16xf32>
    %243 = vector.extract_strided_slice %213 {offsets = [0, 0], sizes = [4, 16], strides = [1, 1]} : vector<4x48xf32> to vector<4x16xf32>
    %244 = arith.addf %242, %243 : vector<4x16xf32>
    %245 = arith.negf %244 : vector<4x16xf32>
    %246 = math.exp %245 : vector<4x16xf32>
    %cst_76 = arith.constant 1.000000e+00 : f32
    %247 = vector.broadcast %cst_76 : f32 to vector<4x16xf32>
    %248 = arith.addf %247, %246 : vector<4x16xf32>
    %249 = arith.divf %247, %248 : vector<4x16xf32>
    %250 = vector.extract_strided_slice %241 {offsets = [0, 16], sizes = [4, 16], strides = [1, 1]} : vector<4x48xf32> to vector<4x16xf32>
    %251 = vector.extract_strided_slice %213 {offsets = [0, 16], sizes = [4, 16], strides = [1, 1]} : vector<4x48xf32> to vector<4x16xf32>
    %252 = arith.addf %250, %251 : vector<4x16xf32>
    %253 = arith.negf %252 : vector<4x16xf32>
    %254 = math.exp %253 : vector<4x16xf32>
    %cst_77 = arith.constant 1.000000e+00 : f32
    %255 = vector.broadcast %cst_77 : f32 to vector<4x16xf32>
    %256 = arith.addf %255, %254 : vector<4x16xf32>
    %257 = arith.divf %255, %256 : vector<4x16xf32>
    %258 = vector.extract_strided_slice %241 {offsets = [0, 32], sizes = [4, 16], strides = [1, 1]} : vector<4x48xf32> to vector<4x16xf32>
    %259 = vector.extract_strided_slice %213 {offsets = [0, 32], sizes = [4, 16], strides = [1, 1]} : vector<4x48xf32> to vector<4x16xf32>
    %260 = arith.mulf %249, %259 : vector<4x16xf32>
    %261 = arith.addf %258, %260 : vector<4x16xf32>
    %262 = math.tanh %261 : vector<4x16xf32>
    %cst_78 = arith.constant 1.000000e+00 : f32
    %263 = vector.broadcast %cst_78 : f32 to vector<4x16xf32>
    %264 = arith.subf %263, %257 : vector<4x16xf32>
    %265 = arith.mulf %264, %262 : vector<4x16xf32>
    %266 = arith.mulf %257, %175 : vector<4x16xf32>
    %267 = arith.addf %265, %266 : vector<4x16xf32>
    %cst_79 = arith.constant dense<0.000000e+00> : vector<4x64xf32>
    %268 = tpu.matmul %267, %16, %cst_79 {dimension_numbers = #tpu.dot_dimension_numbers<[1], [0], [0], [1], [0, 0, 1, 1], [], []>} : vector<4x16xf32>, vector<16x64xf32>, vector<4x64xf32> -> vector<4x64xf32>
    %269 = vector.broadcast %17 : vector<1x64xf32> to vector<4x64xf32>
    %270 = arith.addf %268, %269 : vector<4x64xf32>
    %cst_80 = arith.constant dense<0xFF800000> : vector<4xf32>
    %271 = vector.multi_reduction <maximumf>, %270, %cst_80 [1] : vector<4x64xf32> to vector<4xf32>
    %272 = vector.shape_cast %271 : vector<4xf32> to vector<4x1xf32>
    %273 = vector.broadcast %272 : vector<4x1xf32> to vector<4x64xf32>
    %274 = arith.subf %270, %273 : vector<4x64xf32>
    %275 = math.exp %274 : vector<4x64xf32>
    %cst_81 = arith.constant dense<0.000000e+00> : vector<4xf32>
    %276 = vector.multi_reduction <add>, %275, %cst_81 [1] : vector<4x64xf32> to vector<4xf32>
    %277 = vector.shape_cast %276 : vector<4xf32> to vector<4x1xf32>
    %278 = math.log %277 : vector<4x1xf32>
    %279 = arith.addf %272, %278 : vector<4x1xf32>
    %280 = vector.broadcast %279 : vector<4x1xf32> to vector<4x64xf32>
    %281 = arith.subf %270, %280 : vector<4x64xf32>
    %282 = arith.index_cast %c2_i32 : i32 to index
    %c0_82 = arith.constant 0 : index
    %c0_83 = arith.constant 0 : index
    %283 = vector.load %arg14[%282, %c0_82, %c0_83] : memref<10x4x64xf32, #tpu.memory_space<vmem>>, vector<1x4x64xf32>
    %284 = vector.shape_cast %283 : vector<1x4x64xf32> to vector<4x64xf32>
    %285 = vector.shape_cast %281 : vector<4x64xf32> to vector<1x4x64xf32>
    tpu.vector_store %arg14[%282, %c0_82, %c0_83], %285 {strides = array<i32>} : memref<10x4x64xf32, #tpu.memory_space<vmem>>, vector<1x4x64xf32>,
    %286 = arith.index_cast %c2_i32 : i32 to index
    %c0_84 = arith.constant 0 : index
    %c0_85 = arith.constant 0 : index
    %287 = vector.load %arg15[%286, %c0_84, %c0_85] : memref<10x4x8xf32, #tpu.memory_space<vmem>>, vector<1x4x8xf32>
    %288 = vector.shape_cast %287 : vector<1x4x8xf32> to vector<4x8xf32>
    %289 = vector.shape_cast %232 : vector<4x8xf32> to vector<1x4x8xf32>
    tpu.vector_store %arg15[%286, %c0_84, %c0_85], %289 {strides = array<i32>} : memref<10x4x8xf32, #tpu.memory_space<vmem>>, vector<1x4x8xf32>,
    %290 = vector.broadcast %272 : vector<4x1xf32> to vector<4x64xf32>
    %291 = arith.cmpf oeq, %270, %290 : vector<4x64xf32>
    %c64_i32_86 = arith.constant 64 : i32
    %292 = vector.broadcast %c64_i32_86 : i32 to vector<4x64xi32>
    %293 = arith.select %291, %18, %292 : vector<4x64xi1>, vector<4x64xi32>
    %cst_87 = arith.constant dense<2147483647> : vector<4xi32>
    %294 = vector.multi_reduction <minsi>, %293, %cst_87 [1] : vector<4x64xi32> to vector<4xi32>
    %295 = vector.shape_cast %294 : vector<4xi32> to vector<4x1xi32>
    %296 = vector.broadcast %295 : vector<4x1xi32> to vector<4x64xi32>
    %297 = arith.cmpi eq, %18, %296 : vector<4x64xi32>
    %298 = arith.extui %297 : vector<4x64xi1> to vector<4x64xi32>
    %299 = arith.sitofp %298 : vector<4x64xi32> to vector<4x64xf32>
    %c3_i32 = arith.constant 3 : i32
    %cst_88 = arith.constant dense<0.000000e+00> : vector<4x16xf32>
    %300 = tpu.matmul %299, %8, %cst_88 {dimension_numbers = #tpu.dot_dimension_numbers<[1], [0], [0], [1], [0, 0, 1, 1], [], []>} : vector<4x64xf32>, vector<64x16xf32>, vector<4x16xf32> -> vector<4x16xf32>
    %cst_89 = arith.constant dense<0.000000e+00> : vector<4x64xf32>
    %301 = tpu.matmul %267, %9, %cst_89 {dimension_numbers = #tpu.dot_dimension_numbers<[1], [0], [0], [1], [0, 0, 1, 1], [], []>} : vector<4x16xf32>, vector<16x64xf32>, vector<4x64xf32> -> vector<4x64xf32>
    %302 = vector.broadcast %10 : vector<1x64xf32> to vector<4x64xf32>
    %303 = arith.addf %301, %302 : vector<4x64xf32>
    %304 = vector.extract_strided_slice %303 {offsets = [0, 0], sizes = [4, 16], strides = [1, 1]} : vector<4x64xf32> to vector<4x16xf32>
    %305 = vector.extract_strided_slice %303 {offsets = [0, 16], sizes = [4, 48], strides = [1, 1]} : vector<4x64xf32> to vector<4x48xf32>
    %306 = vector.shape_cast %304 : vector<4x16xf32> to vector<4x1x16xf32>
    %307 = vector.broadcast %306 : vector<4x1x16xf32> to vector<4x8x16xf32>
    %308 = arith.addf %307, %7 : vector<4x8x16xf32>
    %309 = math.tanh %308 : vector<4x8x16xf32>
    %310 = vector.shape_cast %11 : vector<1x16xf32> to vector<1x1x16xf32>
    %311 = vector.broadcast %310 : vector<1x1x16xf32> to vector<4x8x16xf32>
    %312 = arith.mulf %309, %311 : vector<4x8x16xf32>
    %cst_90 = arith.constant dense<0.000000e+00> : vector<4x8xf32>
    %313 = vector.multi_reduction <add>, %312, %cst_90 [2] : vector<4x8x16xf32> to vector<4x8xf32>
    %314 = vector.broadcast %12 : vector<1x1xf32> to vector<4x8xf32>
    %315 = arith.addf %313, %314 : vector<4x8xf32>
    %cst_91 = arith.constant dense<0xFF800000> : vector<4xf32>
    %316 = vector.multi_reduction <maximumf>, %315, %cst_91 [1] : vector<4x8xf32> to vector<4xf32>
    %317 = vector.shape_cast %316 : vector<4xf32> to vector<4x1xf32>
    %318 = vector.broadcast %317 : vector<4x1xf32> to vector<4x8xf32>
    %319 = arith.subf %315, %318 : vector<4x8xf32>
    %320 = math.exp %319 : vector<4x8xf32>
    %cst_92 = arith.constant dense<0.000000e+00> : vector<4xf32>
    %321 = vector.multi_reduction <add>, %320, %cst_92 [1] : vector<4x8xf32> to vector<4xf32>
    %322 = vector.shape_cast %321 : vector<4xf32> to vector<4x1xf32>
    %323 = vector.broadcast %322 : vector<4x1xf32> to vector<4x8xf32>
    %324 = arith.divf %320, %323 : vector<4x8xf32>
    %325 = vector.shape_cast %324 : vector<4x8xf32> to vector<4x8x1xf32>
    %326 = vector.broadcast %325 : vector<4x8x1xf32> to vector<4x8x16xf32>
    %327 = arith.mulf %326, %0 : vector<4x8x16xf32>
    %cst_93 = arith.constant dense<0.000000e+00> : vector<4x16xf32>
    %328 = vector.multi_reduction <add>, %327, %cst_93 [1] : vector<4x8x16xf32> to vector<4x16xf32>
    %cst_94 = arith.constant dense<0.000000e+00> : vector<4x48xf32>
    %329 = tpu.matmul %300, %13, %cst_94 {dimension_numbers = #tpu.dot_dimension_numbers<[1], [0], [0], [1], [0, 0, 1, 1], [], []>} : vector<4x16xf32>, vector<16x48xf32>, vector<4x48xf32> -> vector<4x48xf32>
    %cst_95 = arith.constant dense<0.000000e+00> : vector<4x48xf32>
    %330 = tpu.matmul %328, %14, %cst_95 {dimension_numbers = #tpu.dot_dimension_numbers<[1], [0], [0], [1], [0, 0, 1, 1], [], []>} : vector<4x16xf32>, vector<16x48xf32>, vector<4x48xf32> -> vector<4x48xf32>
    %331 = arith.addf %329, %330 : vector<4x48xf32>
    %332 = vector.broadcast %15 : vector<1x48xf32> to vector<4x48xf32>
    %333 = arith.addf %331, %332 : vector<4x48xf32>
    %334 = vector.extract_strided_slice %333 {offsets = [0, 0], sizes = [4, 16], strides = [1, 1]} : vector<4x48xf32> to vector<4x16xf32>
    %335 = vector.extract_strided_slice %305 {offsets = [0, 0], sizes = [4, 16], strides = [1, 1]} : vector<4x48xf32> to vector<4x16xf32>
    %336 = arith.addf %334, %335 : vector<4x16xf32>
    %337 = arith.negf %336 : vector<4x16xf32>
    %338 = math.exp %337 : vector<4x16xf32>
    %cst_96 = arith.constant 1.000000e+00 : f32
    %339 = vector.broadcast %cst_96 : f32 to vector<4x16xf32>
    %340 = arith.addf %339, %338 : vector<4x16xf32>
    %341 = arith.divf %339, %340 : vector<4x16xf32>
    %342 = vector.extract_strided_slice %333 {offsets = [0, 16], sizes = [4, 16], strides = [1, 1]} : vector<4x48xf32> to vector<4x16xf32>
    %343 = vector.extract_strided_slice %305 {offsets = [0, 16], sizes = [4, 16], strides = [1, 1]} : vector<4x48xf32> to vector<4x16xf32>
    %344 = arith.addf %342, %343 : vector<4x16xf32>
    %345 = arith.negf %344 : vector<4x16xf32>
    %346 = math.exp %345 : vector<4x16xf32>
    %cst_97 = arith.constant 1.000000e+00 : f32
    %347 = vector.broadcast %cst_97 : f32 to vector<4x16xf32>
    %348 = arith.addf %347, %346 : vector<4x16xf32>
    %349 = arith.divf %347, %348 : vector<4x16xf32>
    %350 = vector.extract_strided_slice %333 {offsets = [0, 32], sizes = [4, 16], strides = [1, 1]} : vector<4x48xf32> to vector<4x16xf32>
    %351 = vector.extract_strided_slice %305 {offsets = [0, 32], sizes = [4, 16], strides = [1, 1]} : vector<4x48xf32> to vector<4x16xf32>
    %352 = arith.mulf %341, %351 : vector<4x16xf32>
    %353 = arith.addf %350, %352 : vector<4x16xf32>
    %354 = math.tanh %353 : vector<4x16xf32>
    %cst_98 = arith.constant 1.000000e+00 : f32
    %355 = vector.broadcast %cst_98 : f32 to vector<4x16xf32>
    %356 = arith.subf %355, %349 : vector<4x16xf32>
    %357 = arith.mulf %356, %354 : vector<4x16xf32>
    %358 = arith.mulf %349, %267 : vector<4x16xf32>
    %359 = arith.addf %357, %358 : vector<4x16xf32>
    %cst_99 = arith.constant dense<0.000000e+00> : vector<4x64xf32>
    %360 = tpu.matmul %359, %16, %cst_99 {dimension_numbers = #tpu.dot_dimension_numbers<[1], [0], [0], [1], [0, 0, 1, 1], [], []>} : vector<4x16xf32>, vector<16x64xf32>, vector<4x64xf32> -> vector<4x64xf32>
    %361 = vector.broadcast %17 : vector<1x64xf32> to vector<4x64xf32>
    %362 = arith.addf %360, %361 : vector<4x64xf32>
    %cst_100 = arith.constant dense<0xFF800000> : vector<4xf32>
    %363 = vector.multi_reduction <maximumf>, %362, %cst_100 [1] : vector<4x64xf32> to vector<4xf32>
    %364 = vector.shape_cast %363 : vector<4xf32> to vector<4x1xf32>
    %365 = vector.broadcast %364 : vector<4x1xf32> to vector<4x64xf32>
    %366 = arith.subf %362, %365 : vector<4x64xf32>
    %367 = math.exp %366 : vector<4x64xf32>
    %cst_101 = arith.constant dense<0.000000e+00> : vector<4xf32>
    %368 = vector.multi_reduction <add>, %367, %cst_101 [1] : vector<4x64xf32> to vector<4xf32>
    %369 = vector.shape_cast %368 : vector<4xf32> to vector<4x1xf32>
    %370 = math.log %369 : vector<4x1xf32>
    %371 = arith.addf %364, %370 : vector<4x1xf32>
    %372 = vector.broadcast %371 : vector<4x1xf32> to vector<4x64xf32>
    %373 = arith.subf %362, %372 : vector<4x64xf32>
    %374 = arith.index_cast %c3_i32 : i32 to index
    %c0_102 = arith.constant 0 : index
    %c0_103 = arith.constant 0 : index
    %375 = vector.load %arg14[%374, %c0_102, %c0_103] : memref<10x4x64xf32, #tpu.memory_space<vmem>>, vector<1x4x64xf32>
    %376 = vector.shape_cast %375 : vector<1x4x64xf32> to vector<4x64xf32>
    %377 = vector.shape_cast %373 : vector<4x64xf32> to vector<1x4x64xf32>
    tpu.vector_store %arg14[%374, %c0_102, %c0_103], %377 {strides = array<i32>} : memref<10x4x64xf32, #tpu.memory_space<vmem>>, vector<1x4x64xf32>,
    %378 = arith.index_cast %c3_i32 : i32 to index
    %c0_104 = arith.constant 0 : index
    %c0_105 = arith.constant 0 : index
    %379 = vector.load %arg15[%378, %c0_104, %c0_105] : memref<10x4x8xf32, #tpu.memory_space<vmem>>, vector<1x4x8xf32>
    %380 = vector.shape_cast %379 : vector<1x4x8xf32> to vector<4x8xf32>
    %381 = vector.shape_cast %324 : vector<4x8xf32> to vector<1x4x8xf32>
    tpu.vector_store %arg15[%378, %c0_104, %c0_105], %381 {strides = array<i32>} : memref<10x4x8xf32, #tpu.memory_space<vmem>>, vector<1x4x8xf32>,
    %382 = vector.broadcast %364 : vector<4x1xf32> to vector<4x64xf32>
    %383 = arith.cmpf oeq, %362, %382 : vector<4x64xf32>
    %c64_i32_106 = arith.constant 64 : i32
    %384 = vector.broadcast %c64_i32_106 : i32 to vector<4x64xi32>
    %385 = arith.select %383, %18, %384 : vector<4x64xi1>, vector<4x64xi32>
    %cst_107 = arith.constant dense<2147483647> : vector<4xi32>
    %386 = vector.multi_reduction <minsi>, %385, %cst_107 [1] : vector<4x64xi32> to vector<4xi32>
    %387 = vector.shape_cast %386 : vector<4xi32> to vector<4x1xi32>
    %388 = vector.broadcast %387 : vector<4x1xi32> to vector<4x64xi32>
    %389 = arith.cmpi eq, %18, %388 : vector<4x64xi32>
    %390 = arith.extui %389 : vector<4x64xi1> to vector<4x64xi32>
    %391 = arith.sitofp %390 : vector<4x64xi32> to vector<4x64xf32>
    %c4_i32 = arith.constant 4 : i32
    %cst_108 = arith.constant dense<0.000000e+00> : vector<4x16xf32>
    %392 = tpu.matmul %391, %8, %cst_108 {dimension_numbers = #tpu.dot_dimension_numbers<[1], [0], [0], [1], [0, 0, 1, 1], [], []>} : vector<4x64xf32>, vector<64x16xf32>, vector<4x16xf32> -> vector<4x16xf32>
    %cst_109 = arith.constant dense<0.000000e+00> : vector<4x64xf32>
    %393 = tpu.matmul %359, %9, %cst_109 {dimension_numbers = #tpu.dot_dimension_numbers<[1], [0], [0], [1], [0, 0, 1, 1], [], []>} : vector<4x16xf32>, vector<16x64xf32>, vector<4x64xf32> -> vector<4x64xf32>
    %394 = vector.broadcast %10 : vector<1x64xf32> to vector<4x64xf32>
    %395 = arith.addf %393, %394 : vector<4x64xf32>
    %396 = vector.extract_strided_slice %395 {offsets = [0, 0], sizes = [4, 16], strides = [1, 1]} : vector<4x64xf32> to vector<4x16xf32>
    %397 = vector.extract_strided_slice %395 {offsets = [0, 16], sizes = [4, 48], strides = [1, 1]} : vector<4x64xf32> to vector<4x48xf32>
    %398 = vector.shape_cast %396 : vector<4x16xf32> to vector<4x1x16xf32>
    %399 = vector.broadcast %398 : vector<4x1x16xf32> to vector<4x8x16xf32>
    %400 = arith.addf %399, %7 : vector<4x8x16xf32>
    %401 = math.tanh %400 : vector<4x8x16xf32>
    %402 = vector.shape_cast %11 : vector<1x16xf32> to vector<1x1x16xf32>
    %403 = vector.broadcast %402 : vector<1x1x16xf32> to vector<4x8x16xf32>
    %404 = arith.mulf %401, %403 : vector<4x8x16xf32>
    %cst_110 = arith.constant dense<0.000000e+00> : vector<4x8xf32>
    %405 = vector.multi_reduction <add>, %404, %cst_110 [2] : vector<4x8x16xf32> to vector<4x8xf32>
    %406 = vector.broadcast %12 : vector<1x1xf32> to vector<4x8xf32>
    %407 = arith.addf %405, %406 : vector<4x8xf32>
    %cst_111 = arith.constant dense<0xFF800000> : vector<4xf32>
    %408 = vector.multi_reduction <maximumf>, %407, %cst_111 [1] : vector<4x8xf32> to vector<4xf32>
    %409 = vector.shape_cast %408 : vector<4xf32> to vector<4x1xf32>
    %410 = vector.broadcast %409 : vector<4x1xf32> to vector<4x8xf32>
    %411 = arith.subf %407, %410 : vector<4x8xf32>
    %412 = math.exp %411 : vector<4x8xf32>
    %cst_112 = arith.constant dense<0.000000e+00> : vector<4xf32>
    %413 = vector.multi_reduction <add>, %412, %cst_112 [1] : vector<4x8xf32> to vector<4xf32>
    %414 = vector.shape_cast %413 : vector<4xf32> to vector<4x1xf32>
    %415 = vector.broadcast %414 : vector<4x1xf32> to vector<4x8xf32>
    %416 = arith.divf %412, %415 : vector<4x8xf32>
    %417 = vector.shape_cast %416 : vector<4x8xf32> to vector<4x8x1xf32>
    %418 = vector.broadcast %417 : vector<4x8x1xf32> to vector<4x8x16xf32>
    %419 = arith.mulf %418, %0 : vector<4x8x16xf32>
    %cst_113 = arith.constant dense<0.000000e+00> : vector<4x16xf32>
    %420 = vector.multi_reduction <add>, %419, %cst_113 [1] : vector<4x8x16xf32> to vector<4x16xf32>
    %cst_114 = arith.constant dense<0.000000e+00> : vector<4x48xf32>
    %421 = tpu.matmul %392, %13, %cst_114 {dimension_numbers = #tpu.dot_dimension_numbers<[1], [0], [0], [1], [0, 0, 1, 1], [], []>} : vector<4x16xf32>, vector<16x48xf32>, vector<4x48xf32> -> vector<4x48xf32>
    %cst_115 = arith.constant dense<0.000000e+00> : vector<4x48xf32>
    %422 = tpu.matmul %420, %14, %cst_115 {dimension_numbers = #tpu.dot_dimension_numbers<[1], [0], [0], [1], [0, 0, 1, 1], [], []>} : vector<4x16xf32>, vector<16x48xf32>, vector<4x48xf32> -> vector<4x48xf32>
    %423 = arith.addf %421, %422 : vector<4x48xf32>
    %424 = vector.broadcast %15 : vector<1x48xf32> to vector<4x48xf32>
    %425 = arith.addf %423, %424 : vector<4x48xf32>
    %426 = vector.extract_strided_slice %425 {offsets = [0, 0], sizes = [4, 16], strides = [1, 1]} : vector<4x48xf32> to vector<4x16xf32>
    %427 = vector.extract_strided_slice %397 {offsets = [0, 0], sizes = [4, 16], strides = [1, 1]} : vector<4x48xf32> to vector<4x16xf32>
    %428 = arith.addf %426, %427 : vector<4x16xf32>
    %429 = arith.negf %428 : vector<4x16xf32>
    %430 = math.exp %429 : vector<4x16xf32>
    %cst_116 = arith.constant 1.000000e+00 : f32
    %431 = vector.broadcast %cst_116 : f32 to vector<4x16xf32>
    %432 = arith.addf %431, %430 : vector<4x16xf32>
    %433 = arith.divf %431, %432 : vector<4x16xf32>
    %434 = vector.extract_strided_slice %425 {offsets = [0, 16], sizes = [4, 16], strides = [1, 1]} : vector<4x48xf32> to vector<4x16xf32>
    %435 = vector.extract_strided_slice %397 {offsets = [0, 16], sizes = [4, 16], strides = [1, 1]} : vector<4x48xf32> to vector<4x16xf32>
    %436 = arith.addf %434, %435 : vector<4x16xf32>
    %437 = arith.negf %436 : vector<4x16xf32>
    %438 = math.exp %437 : vector<4x16xf32>
    %cst_117 = arith.constant 1.000000e+00 : f32
    %439 = vector.broadcast %cst_117 : f32 to vector<4x16xf32>
    %440 = arith.addf %439, %438 : vector<4x16xf32>
    %441 = arith.divf %439, %440 : vector<4x16xf32>
    %442 = vector.extract_strided_slice %425 {offsets = [0, 32], sizes = [4, 16], strides = [1, 1]} : vector<4x48xf32> to vector<4x16xf32>
    %443 = vector.extract_strided_slice %397 {offsets = [0, 32], sizes = [4, 16], strides = [1, 1]} : vector<4x48xf32> to vector<4x16xf32>
    %444 = arith.mulf %433, %443 : vector<4x16xf32>
    %445 = arith.addf %442, %444 : vector<4x16xf32>
    %446 = math.tanh %445 : vector<4x16xf32>
    %cst_118 = arith.constant 1.000000e+00 : f32
    %447 = vector.broadcast %cst_118 : f32 to vector<4x16xf32>
    %448 = arith.subf %447, %441 : vector<4x16xf32>
    %449 = arith.mulf %448, %446 : vector<4x16xf32>
    %450 = arith.mulf %441, %359 : vector<4x16xf32>
    %451 = arith.addf %449, %450 : vector<4x16xf32>
    %cst_119 = arith.constant dense<0.000000e+00> : vector<4x64xf32>
    %452 = tpu.matmul %451, %16, %cst_119 {dimension_numbers = #tpu.dot_dimension_numbers<[1], [0], [0], [1], [0, 0, 1, 1], [], []>} : vector<4x16xf32>, vector<16x64xf32>, vector<4x64xf32> -> vector<4x64xf32>
    %453 = vector.broadcast %17 : vector<1x64xf32> to vector<4x64xf32>
    %454 = arith.addf %452, %453 : vector<4x64xf32>
    %cst_120 = arith.constant dense<0xFF800000> : vector<4xf32>
    %455 = vector.multi_reduction <maximumf>, %454, %cst_120 [1] : vector<4x64xf32> to vector<4xf32>
    %456 = vector.shape_cast %455 : vector<4xf32> to vector<4x1xf32>
    %457 = vector.broadcast %456 : vector<4x1xf32> to vector<4x64xf32>
    %458 = arith.subf %454, %457 : vector<4x64xf32>
    %459 = math.exp %458 : vector<4x64xf32>
    %cst_121 = arith.constant dense<0.000000e+00> : vector<4xf32>
    %460 = vector.multi_reduction <add>, %459, %cst_121 [1] : vector<4x64xf32> to vector<4xf32>
    %461 = vector.shape_cast %460 : vector<4xf32> to vector<4x1xf32>
    %462 = math.log %461 : vector<4x1xf32>
    %463 = arith.addf %456, %462 : vector<4x1xf32>
    %464 = vector.broadcast %463 : vector<4x1xf32> to vector<4x64xf32>
    %465 = arith.subf %454, %464 : vector<4x64xf32>
    %466 = arith.index_cast %c4_i32 : i32 to index
    %c0_122 = arith.constant 0 : index
    %c0_123 = arith.constant 0 : index
    %467 = vector.load %arg14[%466, %c0_122, %c0_123] : memref<10x4x64xf32, #tpu.memory_space<vmem>>, vector<1x4x64xf32>
    %468 = vector.shape_cast %467 : vector<1x4x64xf32> to vector<4x64xf32>
    %469 = vector.shape_cast %465 : vector<4x64xf32> to vector<1x4x64xf32>
    tpu.vector_store %arg14[%466, %c0_122, %c0_123], %469 {strides = array<i32>} : memref<10x4x64xf32, #tpu.memory_space<vmem>>, vector<1x4x64xf32>,
    %470 = arith.index_cast %c4_i32 : i32 to index
    %c0_124 = arith.constant 0 : index
    %c0_125 = arith.constant 0 : index
    %471 = vector.load %arg15[%470, %c0_124, %c0_125] : memref<10x4x8xf32, #tpu.memory_space<vmem>>, vector<1x4x8xf32>
    %472 = vector.shape_cast %471 : vector<1x4x8xf32> to vector<4x8xf32>
    %473 = vector.shape_cast %416 : vector<4x8xf32> to vector<1x4x8xf32>
    tpu.vector_store %arg15[%470, %c0_124, %c0_125], %473 {strides = array<i32>} : memref<10x4x8xf32, #tpu.memory_space<vmem>>, vector<1x4x8xf32>,
    %474 = vector.broadcast %456 : vector<4x1xf32> to vector<4x64xf32>
    %475 = arith.cmpf oeq, %454, %474 : vector<4x64xf32>
    %c64_i32_126 = arith.constant 64 : i32
    %476 = vector.broadcast %c64_i32_126 : i32 to vector<4x64xi32>
    %477 = arith.select %475, %18, %476 : vector<4x64xi1>, vector<4x64xi32>
    %cst_127 = arith.constant dense<2147483647> : vector<4xi32>
    %478 = vector.multi_reduction <minsi>, %477, %cst_127 [1] : vector<4x64xi32> to vector<4xi32>
    %479 = vector.shape_cast %478 : vector<4xi32> to vector<4x1xi32>
    %480 = vector.broadcast %479 : vector<4x1xi32> to vector<4x64xi32>
    %481 = arith.cmpi eq, %18, %480 : vector<4x64xi32>
    %482 = arith.extui %481 : vector<4x64xi1> to vector<4x64xi32>
    %483 = arith.sitofp %482 : vector<4x64xi32> to vector<4x64xf32>
    %c5_i32 = arith.constant 5 : i32
    %cst_128 = arith.constant dense<0.000000e+00> : vector<4x16xf32>
    %484 = tpu.matmul %483, %8, %cst_128 {dimension_numbers = #tpu.dot_dimension_numbers<[1], [0], [0], [1], [0, 0, 1, 1], [], []>} : vector<4x64xf32>, vector<64x16xf32>, vector<4x16xf32> -> vector<4x16xf32>
    %cst_129 = arith.constant dense<0.000000e+00> : vector<4x64xf32>
    %485 = tpu.matmul %451, %9, %cst_129 {dimension_numbers = #tpu.dot_dimension_numbers<[1], [0], [0], [1], [0, 0, 1, 1], [], []>} : vector<4x16xf32>, vector<16x64xf32>, vector<4x64xf32> -> vector<4x64xf32>
    %486 = vector.broadcast %10 : vector<1x64xf32> to vector<4x64xf32>
    %487 = arith.addf %485, %486 : vector<4x64xf32>
    %488 = vector.extract_strided_slice %487 {offsets = [0, 0], sizes = [4, 16], strides = [1, 1]} : vector<4x64xf32> to vector<4x16xf32>
    %489 = vector.extract_strided_slice %487 {offsets = [0, 16], sizes = [4, 48], strides = [1, 1]} : vector<4x64xf32> to vector<4x48xf32>
    %490 = vector.shape_cast %488 : vector<4x16xf32> to vector<4x1x16xf32>
    %491 = vector.broadcast %490 : vector<4x1x16xf32> to vector<4x8x16xf32>
    %492 = arith.addf %491, %7 : vector<4x8x16xf32>
    %493 = math.tanh %492 : vector<4x8x16xf32>
    %494 = vector.shape_cast %11 : vector<1x16xf32> to vector<1x1x16xf32>
    %495 = vector.broadcast %494 : vector<1x1x16xf32> to vector<4x8x16xf32>
    %496 = arith.mulf %493, %495 : vector<4x8x16xf32>
    %cst_130 = arith.constant dense<0.000000e+00> : vector<4x8xf32>
    %497 = vector.multi_reduction <add>, %496, %cst_130 [2] : vector<4x8x16xf32> to vector<4x8xf32>
    %498 = vector.broadcast %12 : vector<1x1xf32> to vector<4x8xf32>
    %499 = arith.addf %497, %498 : vector<4x8xf32>
    %cst_131 = arith.constant dense<0xFF800000> : vector<4xf32>
    %500 = vector.multi_reduction <maximumf>, %499, %cst_131 [1] : vector<4x8xf32> to vector<4xf32>
    %501 = vector.shape_cast %500 : vector<4xf32> to vector<4x1xf32>
    %502 = vector.broadcast %501 : vector<4x1xf32> to vector<4x8xf32>
    %503 = arith.subf %499, %502 : vector<4x8xf32>
    %504 = math.exp %503 : vector<4x8xf32>
    %cst_132 = arith.constant dense<0.000000e+00> : vector<4xf32>
    %505 = vector.multi_reduction <add>, %504, %cst_132 [1] : vector<4x8xf32> to vector<4xf32>
    %506 = vector.shape_cast %505 : vector<4xf32> to vector<4x1xf32>
    %507 = vector.broadcast %506 : vector<4x1xf32> to vector<4x8xf32>
    %508 = arith.divf %504, %507 : vector<4x8xf32>
    %509 = vector.shape_cast %508 : vector<4x8xf32> to vector<4x8x1xf32>
    %510 = vector.broadcast %509 : vector<4x8x1xf32> to vector<4x8x16xf32>
    %511 = arith.mulf %510, %0 : vector<4x8x16xf32>
    %cst_133 = arith.constant dense<0.000000e+00> : vector<4x16xf32>
    %512 = vector.multi_reduction <add>, %511, %cst_133 [1] : vector<4x8x16xf32> to vector<4x16xf32>
    %cst_134 = arith.constant dense<0.000000e+00> : vector<4x48xf32>
    %513 = tpu.matmul %484, %13, %cst_134 {dimension_numbers = #tpu.dot_dimension_numbers<[1], [0], [0], [1], [0, 0, 1, 1], [], []>} : vector<4x16xf32>, vector<16x48xf32>, vector<4x48xf32> -> vector<4x48xf32>
    %cst_135 = arith.constant dense<0.000000e+00> : vector<4x48xf32>
    %514 = tpu.matmul %512, %14, %cst_135 {dimension_numbers = #tpu.dot_dimension_numbers<[1], [0], [0], [1], [0, 0, 1, 1], [], []>} : vector<4x16xf32>, vector<16x48xf32>, vector<4x48xf32> -> vector<4x48xf32>
    %515 = arith.addf %513, %514 : vector<4x48xf32>
    %516 = vector.broadcast %15 : vector<1x48xf32> to vector<4x48xf32>
    %517 = arith.addf %515, %516 : vector<4x48xf32>
    %518 = vector.extract_strided_slice %517 {offsets = [0, 0], sizes = [4, 16], strides = [1, 1]} : vector<4x48xf32> to vector<4x16xf32>
    %519 = vector.extract_strided_slice %489 {offsets = [0, 0], sizes = [4, 16], strides = [1, 1]} : vector<4x48xf32> to vector<4x16xf32>
    %520 = arith.addf %518, %519 : vector<4x16xf32>
    %521 = arith.negf %520 : vector<4x16xf32>
    %522 = math.exp %521 : vector<4x16xf32>
    %cst_136 = arith.constant 1.000000e+00 : f32
    %523 = vector.broadcast %cst_136 : f32 to vector<4x16xf32>
    %524 = arith.addf %523, %522 : vector<4x16xf32>
    %525 = arith.divf %523, %524 : vector<4x16xf32>
    %526 = vector.extract_strided_slice %517 {offsets = [0, 16], sizes = [4, 16], strides = [1, 1]} : vector<4x48xf32> to vector<4x16xf32>
    %527 = vector.extract_strided_slice %489 {offsets = [0, 16], sizes = [4, 16], strides = [1, 1]} : vector<4x48xf32> to vector<4x16xf32>
    %528 = arith.addf %526, %527 : vector<4x16xf32>
    %529 = arith.negf %528 : vector<4x16xf32>
    %530 = math.exp %529 : vector<4x16xf32>
    %cst_137 = arith.constant 1.000000e+00 : f32
    %531 = vector.broadcast %cst_137 : f32 to vector<4x16xf32>
    %532 = arith.addf %531, %530 : vector<4x16xf32>
    %533 = arith.divf %531, %532 : vector<4x16xf32>
    %534 = vector.extract_strided_slice %517 {offsets = [0, 32], sizes = [4, 16], strides = [1, 1]} : vector<4x48xf32> to vector<4x16xf32>
    %535 = vector.extract_strided_slice %489 {offsets = [0, 32], sizes = [4, 16], strides = [1, 1]} : vector<4x48xf32> to vector<4x16xf32>
    %536 = arith.mulf %525, %535 : vector<4x16xf32>
    %537 = arith.addf %534, %536 : vector<4x16xf32>
    %538 = math.tanh %537 : vector<4x16xf32>
    %cst_138 = arith.constant 1.000000e+00 : f32
    %539 = vector.broadcast %cst_138 : f32 to vector<4x16xf32>
    %540 = arith.subf %539, %533 : vector<4x16xf32>
    %541 = arith.mulf %540, %538 : vector<4x16xf32>
    %542 = arith.mulf %533, %451 : vector<4x16xf32>
    %543 = arith.addf %541, %542 : vector<4x16xf32>
    %cst_139 = arith.constant dense<0.000000e+00> : vector<4x64xf32>
    %544 = tpu.matmul %543, %16, %cst_139 {dimension_numbers = #tpu.dot_dimension_numbers<[1], [0], [0], [1], [0, 0, 1, 1], [], []>} : vector<4x16xf32>, vector<16x64xf32>, vector<4x64xf32> -> vector<4x64xf32>
    %545 = vector.broadcast %17 : vector<1x64xf32> to vector<4x64xf32>
    %546 = arith.addf %544, %545 : vector<4x64xf32>
    %cst_140 = arith.constant dense<0xFF800000> : vector<4xf32>
    %547 = vector.multi_reduction <maximumf>, %546, %cst_140 [1] : vector<4x64xf32> to vector<4xf32>
    %548 = vector.shape_cast %547 : vector<4xf32> to vector<4x1xf32>
    %549 = vector.broadcast %548 : vector<4x1xf32> to vector<4x64xf32>
    %550 = arith.subf %546, %549 : vector<4x64xf32>
    %551 = math.exp %550 : vector<4x64xf32>
    %cst_141 = arith.constant dense<0.000000e+00> : vector<4xf32>
    %552 = vector.multi_reduction <add>, %551, %cst_141 [1] : vector<4x64xf32> to vector<4xf32>
    %553 = vector.shape_cast %552 : vector<4xf32> to vector<4x1xf32>
    %554 = math.log %553 : vector<4x1xf32>
    %555 = arith.addf %548, %554 : vector<4x1xf32>
    %556 = vector.broadcast %555 : vector<4x1xf32> to vector<4x64xf32>
    %557 = arith.subf %546, %556 : vector<4x64xf32>
    %558 = arith.index_cast %c5_i32 : i32 to index
    %c0_142 = arith.constant 0 : index
    %c0_143 = arith.constant 0 : index
    %559 = vector.load %arg14[%558, %c0_142, %c0_143] : memref<10x4x64xf32, #tpu.memory_space<vmem>>, vector<1x4x64xf32>
    %560 = vector.shape_cast %559 : vector<1x4x64xf32> to vector<4x64xf32>
    %561 = vector.shape_cast %557 : vector<4x64xf32> to vector<1x4x64xf32>
    tpu.vector_store %arg14[%558, %c0_142, %c0_143], %561 {strides = array<i32>} : memref<10x4x64xf32, #tpu.memory_space<vmem>>, vector<1x4x64xf32>,
    %562 = arith.index_cast %c5_i32 : i32 to index
    %c0_144 = arith.constant 0 : index
    %c0_145 = arith.constant 0 : index
    %563 = vector.load %arg15[%562, %c0_144, %c0_145] : memref<10x4x8xf32, #tpu.memory_space<vmem>>, vector<1x4x8xf32>
    %564 = vector.shape_cast %563 : vector<1x4x8xf32> to vector<4x8xf32>
    %565 = vector.shape_cast %508 : vector<4x8xf32> to vector<1x4x8xf32>
    tpu.vector_store %arg15[%562, %c0_144, %c0_145], %565 {strides = array<i32>} : memref<10x4x8xf32, #tpu.memory_space<vmem>>, vector<1x4x8xf32>,
    %566 = vector.broadcast %548 : vector<4x1xf32> to vector<4x64xf32>
    %567 = arith.cmpf oeq, %546, %566 : vector<4x64xf32>
    %c64_i32_146 = arith.constant 64 : i32
    %568 = vector.broadcast %c64_i32_146 : i32 to vector<4x64xi32>
    %569 = arith.select %567, %18, %568 : vector<4x64xi1>, vector<4x64xi32>
    %cst_147 = arith.constant dense<2147483647> : vector<4xi32>
    %570 = vector.multi_reduction <minsi>, %569, %cst_147 [1] : vector<4x64xi32> to vector<4xi32>
    %571 = vector.shape_cast %570 : vector<4xi32> to vector<4x1xi32>
    %572 = vector.broadcast %571 : vector<4x1xi32> to vector<4x64xi32>
    %573 = arith.cmpi eq, %18, %572 : vector<4x64xi32>
    %574 = arith.extui %573 : vector<4x64xi1> to vector<4x64xi32>
    %575 = arith.sitofp %574 : vector<4x64xi32> to vector<4x64xf32>
    %c6_i32 = arith.constant 6 : i32
    %cst_148 = arith.constant dense<0.000000e+00> : vector<4x16xf32>
    %576 = tpu.matmul %575, %8, %cst_148 {dimension_numbers = #tpu.dot_dimension_numbers<[1], [0], [0], [1], [0, 0, 1, 1], [], []>} : vector<4x64xf32>, vector<64x16xf32>, vector<4x16xf32> -> vector<4x16xf32>
    %cst_149 = arith.constant dense<0.000000e+00> : vector<4x64xf32>
    %577 = tpu.matmul %543, %9, %cst_149 {dimension_numbers = #tpu.dot_dimension_numbers<[1], [0], [0], [1], [0, 0, 1, 1], [], []>} : vector<4x16xf32>, vector<16x64xf32>, vector<4x64xf32> -> vector<4x64xf32>
    %578 = vector.broadcast %10 : vector<1x64xf32> to vector<4x64xf32>
    %579 = arith.addf %577, %578 : vector<4x64xf32>
    %580 = vector.extract_strided_slice %579 {offsets = [0, 0], sizes = [4, 16], strides = [1, 1]} : vector<4x64xf32> to vector<4x16xf32>
    %581 = vector.extract_strided_slice %579 {offsets = [0, 16], sizes = [4, 48], strides = [1, 1]} : vector<4x64xf32> to vector<4x48xf32>
    %582 = vector.shape_cast %580 : vector<4x16xf32> to vector<4x1x16xf32>
    %583 = vector.broadcast %582 : vector<4x1x16xf32> to vector<4x8x16xf32>
    %584 = arith.addf %583, %7 : vector<4x8x16xf32>
    %585 = math.tanh %584 : vector<4x8x16xf32>
    %586 = vector.shape_cast %11 : vector<1x16xf32> to vector<1x1x16xf32>
    %587 = vector.broadcast %586 : vector<1x1x16xf32> to vector<4x8x16xf32>
    %588 = arith.mulf %585, %587 : vector<4x8x16xf32>
    %cst_150 = arith.constant dense<0.000000e+00> : vector<4x8xf32>
    %589 = vector.multi_reduction <add>, %588, %cst_150 [2] : vector<4x8x16xf32> to vector<4x8xf32>
    %590 = vector.broadcast %12 : vector<1x1xf32> to vector<4x8xf32>
    %591 = arith.addf %589, %590 : vector<4x8xf32>
    %cst_151 = arith.constant dense<0xFF800000> : vector<4xf32>
    %592 = vector.multi_reduction <maximumf>, %591, %cst_151 [1] : vector<4x8xf32> to vector<4xf32>
    %593 = vector.shape_cast %592 : vector<4xf32> to vector<4x1xf32>
    %594 = vector.broadcast %593 : vector<4x1xf32> to vector<4x8xf32>
    %595 = arith.subf %591, %594 : vector<4x8xf32>
    %596 = math.exp %595 : vector<4x8xf32>
    %cst_152 = arith.constant dense<0.000000e+00> : vector<4xf32>
    %597 = vector.multi_reduction <add>, %596, %cst_152 [1] : vector<4x8xf32> to vector<4xf32>
    %598 = vector.shape_cast %597 : vector<4xf32> to vector<4x1xf32>
    %599 = vector.broadcast %598 : vector<4x1xf32> to vector<4x8xf32>
    %600 = arith.divf %596, %599 : vector<4x8xf32>
    %601 = vector.shape_cast %600 : vector<4x8xf32> to vector<4x8x1xf32>
    %602 = vector.broadcast %601 : vector<4x8x1xf32> to vector<4x8x16xf32>
    %603 = arith.mulf %602, %0 : vector<4x8x16xf32>
    %cst_153 = arith.constant dense<0.000000e+00> : vector<4x16xf32>
    %604 = vector.multi_reduction <add>, %603, %cst_153 [1] : vector<4x8x16xf32> to vector<4x16xf32>
    %cst_154 = arith.constant dense<0.000000e+00> : vector<4x48xf32>
    %605 = tpu.matmul %576, %13, %cst_154 {dimension_numbers = #tpu.dot_dimension_numbers<[1], [0], [0], [1], [0, 0, 1, 1], [], []>} : vector<4x16xf32>, vector<16x48xf32>, vector<4x48xf32> -> vector<4x48xf32>
    %cst_155 = arith.constant dense<0.000000e+00> : vector<4x48xf32>
    %606 = tpu.matmul %604, %14, %cst_155 {dimension_numbers = #tpu.dot_dimension_numbers<[1], [0], [0], [1], [0, 0, 1, 1], [], []>} : vector<4x16xf32>, vector<16x48xf32>, vector<4x48xf32> -> vector<4x48xf32>
    %607 = arith.addf %605, %606 : vector<4x48xf32>
    %608 = vector.broadcast %15 : vector<1x48xf32> to vector<4x48xf32>
    %609 = arith.addf %607, %608 : vector<4x48xf32>
    %610 = vector.extract_strided_slice %609 {offsets = [0, 0], sizes = [4, 16], strides = [1, 1]} : vector<4x48xf32> to vector<4x16xf32>
    %611 = vector.extract_strided_slice %581 {offsets = [0, 0], sizes = [4, 16], strides = [1, 1]} : vector<4x48xf32> to vector<4x16xf32>
    %612 = arith.addf %610, %611 : vector<4x16xf32>
    %613 = arith.negf %612 : vector<4x16xf32>
    %614 = math.exp %613 : vector<4x16xf32>
    %cst_156 = arith.constant 1.000000e+00 : f32
    %615 = vector.broadcast %cst_156 : f32 to vector<4x16xf32>
    %616 = arith.addf %615, %614 : vector<4x16xf32>
    %617 = arith.divf %615, %616 : vector<4x16xf32>
    %618 = vector.extract_strided_slice %609 {offsets = [0, 16], sizes = [4, 16], strides = [1, 1]} : vector<4x48xf32> to vector<4x16xf32>
    %619 = vector.extract_strided_slice %581 {offsets = [0, 16], sizes = [4, 16], strides = [1, 1]} : vector<4x48xf32> to vector<4x16xf32>
    %620 = arith.addf %618, %619 : vector<4x16xf32>
    %621 = arith.negf %620 : vector<4x16xf32>
    %622 = math.exp %621 : vector<4x16xf32>
    %cst_157 = arith.constant 1.000000e+00 : f32
    %623 = vector.broadcast %cst_157 : f32 to vector<4x16xf32>
    %624 = arith.addf %623, %622 : vector<4x16xf32>
    %625 = arith.divf %623, %624 : vector<4x16xf32>
    %626 = vector.extract_strided_slice %609 {offsets = [0, 32], sizes = [4, 16], strides = [1, 1]} : vector<4x48xf32> to vector<4x16xf32>
    %627 = vector.extract_strided_slice %581 {offsets = [0, 32], sizes = [4, 16], strides = [1, 1]} : vector<4x48xf32> to vector<4x16xf32>
    %628 = arith.mulf %617, %627 : vector<4x16xf32>
    %629 = arith.addf %626, %628 : vector<4x16xf32>
    %630 = math.tanh %629 : vector<4x16xf32>
    %cst_158 = arith.constant 1.000000e+00 : f32
    %631 = vector.broadcast %cst_158 : f32 to vector<4x16xf32>
    %632 = arith.subf %631, %625 : vector<4x16xf32>
    %633 = arith.mulf %632, %630 : vector<4x16xf32>
    %634 = arith.mulf %625, %543 : vector<4x16xf32>
    %635 = arith.addf %633, %634 : vector<4x16xf32>
    %cst_159 = arith.constant dense<0.000000e+00> : vector<4x64xf32>
    %636 = tpu.matmul %635, %16, %cst_159 {dimension_numbers = #tpu.dot_dimension_numbers<[1], [0], [0], [1], [0, 0, 1, 1], [], []>} : vector<4x16xf32>, vector<16x64xf32>, vector<4x64xf32> -> vector<4x64xf32>
    %637 = vector.broadcast %17 : vector<1x64xf32> to vector<4x64xf32>
    %638 = arith.addf %636, %637 : vector<4x64xf32>
    %cst_160 = arith.constant dense<0xFF800000> : vector<4xf32>
    %639 = vector.multi_reduction <maximumf>, %638, %cst_160 [1] : vector<4x64xf32> to vector<4xf32>
    %640 = vector.shape_cast %639 : vector<4xf32> to vector<4x1xf32>
    %641 = vector.broadcast %640 : vector<4x1xf32> to vector<4x64xf32>
    %642 = arith.subf %638, %641 : vector<4x64xf32>
    %643 = math.exp %642 : vector<4x64xf32>
    %cst_161 = arith.constant dense<0.000000e+00> : vector<4xf32>
    %644 = vector.multi_reduction <add>, %643, %cst_161 [1] : vector<4x64xf32> to vector<4xf32>
    %645 = vector.shape_cast %644 : vector<4xf32> to vector<4x1xf32>
    %646 = math.log %645 : vector<4x1xf32>
    %647 = arith.addf %640, %646 : vector<4x1xf32>
    %648 = vector.broadcast %647 : vector<4x1xf32> to vector<4x64xf32>
    %649 = arith.subf %638, %648 : vector<4x64xf32>
    %650 = arith.index_cast %c6_i32 : i32 to index
    %c0_162 = arith.constant 0 : index
    %c0_163 = arith.constant 0 : index
    %651 = vector.load %arg14[%650, %c0_162, %c0_163] : memref<10x4x64xf32, #tpu.memory_space<vmem>>, vector<1x4x64xf32>
    %652 = vector.shape_cast %651 : vector<1x4x64xf32> to vector<4x64xf32>
    %653 = vector.shape_cast %649 : vector<4x64xf32> to vector<1x4x64xf32>
    tpu.vector_store %arg14[%650, %c0_162, %c0_163], %653 {strides = array<i32>} : memref<10x4x64xf32, #tpu.memory_space<vmem>>, vector<1x4x64xf32>,
    %654 = arith.index_cast %c6_i32 : i32 to index
    %c0_164 = arith.constant 0 : index
    %c0_165 = arith.constant 0 : index
    %655 = vector.load %arg15[%654, %c0_164, %c0_165] : memref<10x4x8xf32, #tpu.memory_space<vmem>>, vector<1x4x8xf32>
    %656 = vector.shape_cast %655 : vector<1x4x8xf32> to vector<4x8xf32>
    %657 = vector.shape_cast %600 : vector<4x8xf32> to vector<1x4x8xf32>
    tpu.vector_store %arg15[%654, %c0_164, %c0_165], %657 {strides = array<i32>} : memref<10x4x8xf32, #tpu.memory_space<vmem>>, vector<1x4x8xf32>,
    %658 = vector.broadcast %640 : vector<4x1xf32> to vector<4x64xf32>
    %659 = arith.cmpf oeq, %638, %658 : vector<4x64xf32>
    %c64_i32_166 = arith.constant 64 : i32
    %660 = vector.broadcast %c64_i32_166 : i32 to vector<4x64xi32>
    %661 = arith.select %659, %18, %660 : vector<4x64xi1>, vector<4x64xi32>
    %cst_167 = arith.constant dense<2147483647> : vector<4xi32>
    %662 = vector.multi_reduction <minsi>, %661, %cst_167 [1] : vector<4x64xi32> to vector<4xi32>
    %663 = vector.shape_cast %662 : vector<4xi32> to vector<4x1xi32>
    %664 = vector.broadcast %663 : vector<4x1xi32> to vector<4x64xi32>
    %665 = arith.cmpi eq, %18, %664 : vector<4x64xi32>
    %666 = arith.extui %665 : vector<4x64xi1> to vector<4x64xi32>
    %667 = arith.sitofp %666 : vector<4x64xi32> to vector<4x64xf32>
    %c7_i32 = arith.constant 7 : i32
    %cst_168 = arith.constant dense<0.000000e+00> : vector<4x16xf32>
    %668 = tpu.matmul %667, %8, %cst_168 {dimension_numbers = #tpu.dot_dimension_numbers<[1], [0], [0], [1], [0, 0, 1, 1], [], []>} : vector<4x64xf32>, vector<64x16xf32>, vector<4x16xf32> -> vector<4x16xf32>
    %cst_169 = arith.constant dense<0.000000e+00> : vector<4x64xf32>
    %669 = tpu.matmul %635, %9, %cst_169 {dimension_numbers = #tpu.dot_dimension_numbers<[1], [0], [0], [1], [0, 0, 1, 1], [], []>} : vector<4x16xf32>, vector<16x64xf32>, vector<4x64xf32> -> vector<4x64xf32>
    %670 = vector.broadcast %10 : vector<1x64xf32> to vector<4x64xf32>
    %671 = arith.addf %669, %670 : vector<4x64xf32>
    %672 = vector.extract_strided_slice %671 {offsets = [0, 0], sizes = [4, 16], strides = [1, 1]} : vector<4x64xf32> to vector<4x16xf32>
    %673 = vector.extract_strided_slice %671 {offsets = [0, 16], sizes = [4, 48], strides = [1, 1]} : vector<4x64xf32> to vector<4x48xf32>
    %674 = vector.shape_cast %672 : vector<4x16xf32> to vector<4x1x16xf32>
    %675 = vector.broadcast %674 : vector<4x1x16xf32> to vector<4x8x16xf32>
    %676 = arith.addf %675, %7 : vector<4x8x16xf32>
    %677 = math.tanh %676 : vector<4x8x16xf32>
    %678 = vector.shape_cast %11 : vector<1x16xf32> to vector<1x1x16xf32>
    %679 = vector.broadcast %678 : vector<1x1x16xf32> to vector<4x8x16xf32>
    %680 = arith.mulf %677, %679 : vector<4x8x16xf32>
    %cst_170 = arith.constant dense<0.000000e+00> : vector<4x8xf32>
    %681 = vector.multi_reduction <add>, %680, %cst_170 [2] : vector<4x8x16xf32> to vector<4x8xf32>
    %682 = vector.broadcast %12 : vector<1x1xf32> to vector<4x8xf32>
    %683 = arith.addf %681, %682 : vector<4x8xf32>
    %cst_171 = arith.constant dense<0xFF800000> : vector<4xf32>
    %684 = vector.multi_reduction <maximumf>, %683, %cst_171 [1] : vector<4x8xf32> to vector<4xf32>
    %685 = vector.shape_cast %684 : vector<4xf32> to vector<4x1xf32>
    %686 = vector.broadcast %685 : vector<4x1xf32> to vector<4x8xf32>
    %687 = arith.subf %683, %686 : vector<4x8xf32>
    %688 = math.exp %687 : vector<4x8xf32>
    %cst_172 = arith.constant dense<0.000000e+00> : vector<4xf32>
    %689 = vector.multi_reduction <add>, %688, %cst_172 [1] : vector<4x8xf32> to vector<4xf32>
    %690 = vector.shape_cast %689 : vector<4xf32> to vector<4x1xf32>
    %691 = vector.broadcast %690 : vector<4x1xf32> to vector<4x8xf32>
    %692 = arith.divf %688, %691 : vector<4x8xf32>
    %693 = vector.shape_cast %692 : vector<4x8xf32> to vector<4x8x1xf32>
    %694 = vector.broadcast %693 : vector<4x8x1xf32> to vector<4x8x16xf32>
    %695 = arith.mulf %694, %0 : vector<4x8x16xf32>
    %cst_173 = arith.constant dense<0.000000e+00> : vector<4x16xf32>
    %696 = vector.multi_reduction <add>, %695, %cst_173 [1] : vector<4x8x16xf32> to vector<4x16xf32>
    %cst_174 = arith.constant dense<0.000000e+00> : vector<4x48xf32>
    %697 = tpu.matmul %668, %13, %cst_174 {dimension_numbers = #tpu.dot_dimension_numbers<[1], [0], [0], [1], [0, 0, 1, 1], [], []>} : vector<4x16xf32>, vector<16x48xf32>, vector<4x48xf32> -> vector<4x48xf32>
    %cst_175 = arith.constant dense<0.000000e+00> : vector<4x48xf32>
    %698 = tpu.matmul %696, %14, %cst_175 {dimension_numbers = #tpu.dot_dimension_numbers<[1], [0], [0], [1], [0, 0, 1, 1], [], []>} : vector<4x16xf32>, vector<16x48xf32>, vector<4x48xf32> -> vector<4x48xf32>
    %699 = arith.addf %697, %698 : vector<4x48xf32>
    %700 = vector.broadcast %15 : vector<1x48xf32> to vector<4x48xf32>
    %701 = arith.addf %699, %700 : vector<4x48xf32>
    %702 = vector.extract_strided_slice %701 {offsets = [0, 0], sizes = [4, 16], strides = [1, 1]} : vector<4x48xf32> to vector<4x16xf32>
    %703 = vector.extract_strided_slice %673 {offsets = [0, 0], sizes = [4, 16], strides = [1, 1]} : vector<4x48xf32> to vector<4x16xf32>
    %704 = arith.addf %702, %703 : vector<4x16xf32>
    %705 = arith.negf %704 : vector<4x16xf32>
    %706 = math.exp %705 : vector<4x16xf32>
    %cst_176 = arith.constant 1.000000e+00 : f32
    %707 = vector.broadcast %cst_176 : f32 to vector<4x16xf32>
    %708 = arith.addf %707, %706 : vector<4x16xf32>
    %709 = arith.divf %707, %708 : vector<4x16xf32>
    %710 = vector.extract_strided_slice %701 {offsets = [0, 16], sizes = [4, 16], strides = [1, 1]} : vector<4x48xf32> to vector<4x16xf32>
    %711 = vector.extract_strided_slice %673 {offsets = [0, 16], sizes = [4, 16], strides = [1, 1]} : vector<4x48xf32> to vector<4x16xf32>
    %712 = arith.addf %710, %711 : vector<4x16xf32>
    %713 = arith.negf %712 : vector<4x16xf32>
    %714 = math.exp %713 : vector<4x16xf32>
    %cst_177 = arith.constant 1.000000e+00 : f32
    %715 = vector.broadcast %cst_177 : f32 to vector<4x16xf32>
    %716 = arith.addf %715, %714 : vector<4x16xf32>
    %717 = arith.divf %715, %716 : vector<4x16xf32>
    %718 = vector.extract_strided_slice %701 {offsets = [0, 32], sizes = [4, 16], strides = [1, 1]} : vector<4x48xf32> to vector<4x16xf32>
    %719 = vector.extract_strided_slice %673 {offsets = [0, 32], sizes = [4, 16], strides = [1, 1]} : vector<4x48xf32> to vector<4x16xf32>
    %720 = arith.mulf %709, %719 : vector<4x16xf32>
    %721 = arith.addf %718, %720 : vector<4x16xf32>
    %722 = math.tanh %721 : vector<4x16xf32>
    %cst_178 = arith.constant 1.000000e+00 : f32
    %723 = vector.broadcast %cst_178 : f32 to vector<4x16xf32>
    %724 = arith.subf %723, %717 : vector<4x16xf32>
    %725 = arith.mulf %724, %722 : vector<4x16xf32>
    %726 = arith.mulf %717, %635 : vector<4x16xf32>
    %727 = arith.addf %725, %726 : vector<4x16xf32>
    %cst_179 = arith.constant dense<0.000000e+00> : vector<4x64xf32>
    %728 = tpu.matmul %727, %16, %cst_179 {dimension_numbers = #tpu.dot_dimension_numbers<[1], [0], [0], [1], [0, 0, 1, 1], [], []>} : vector<4x16xf32>, vector<16x64xf32>, vector<4x64xf32> -> vector<4x64xf32>
    %729 = vector.broadcast %17 : vector<1x64xf32> to vector<4x64xf32>
    %730 = arith.addf %728, %729 : vector<4x64xf32>
    %cst_180 = arith.constant dense<0xFF800000> : vector<4xf32>
    %731 = vector.multi_reduction <maximumf>, %730, %cst_180 [1] : vector<4x64xf32> to vector<4xf32>
    %732 = vector.shape_cast %731 : vector<4xf32> to vector<4x1xf32>
    %733 = vector.broadcast %732 : vector<4x1xf32> to vector<4x64xf32>
    %734 = arith.subf %730, %733 : vector<4x64xf32>
    %735 = math.exp %734 : vector<4x64xf32>
    %cst_181 = arith.constant dense<0.000000e+00> : vector<4xf32>
    %736 = vector.multi_reduction <add>, %735, %cst_181 [1] : vector<4x64xf32> to vector<4xf32>
    %737 = vector.shape_cast %736 : vector<4xf32> to vector<4x1xf32>
    %738 = math.log %737 : vector<4x1xf32>
    %739 = arith.addf %732, %738 : vector<4x1xf32>
    %740 = vector.broadcast %739 : vector<4x1xf32> to vector<4x64xf32>
    %741 = arith.subf %730, %740 : vector<4x64xf32>
    %742 = arith.index_cast %c7_i32 : i32 to index
    %c0_182 = arith.constant 0 : index
    %c0_183 = arith.constant 0 : index
    %743 = vector.load %arg14[%742, %c0_182, %c0_183] : memref<10x4x64xf32, #tpu.memory_space<vmem>>, vector<1x4x64xf32>
    %744 = vector.shape_cast %743 : vector<1x4x64xf32> to vector<4x64xf32>
    %745 = vector.shape_cast %741 : vector<4x64xf32> to vector<1x4x64xf32>
    tpu.vector_store %arg14[%742, %c0_182, %c0_183], %745 {strides = array<i32>} : memref<10x4x64xf32, #tpu.memory_space<vmem>>, vector<1x4x64xf32>,
    %746 = arith.index_cast %c7_i32 : i32 to index
    %c0_184 = arith.constant 0 : index
    %c0_185 = arith.constant 0 : index
    %747 = vector.load %arg15[%746, %c0_184, %c0_185] : memref<10x4x8xf32, #tpu.memory_space<vmem>>, vector<1x4x8xf32>
    %748 = vector.shape_cast %747 : vector<1x4x8xf32> to vector<4x8xf32>
    %749 = vector.shape_cast %692 : vector<4x8xf32> to vector<1x4x8xf32>
    tpu.vector_store %arg15[%746, %c0_184, %c0_185], %749 {strides = array<i32>} : memref<10x4x8xf32, #tpu.memory_space<vmem>>, vector<1x4x8xf32>,
    %750 = vector.broadcast %732 : vector<4x1xf32> to vector<4x64xf32>
    %751 = arith.cmpf oeq, %730, %750 : vector<4x64xf32>
    %c64_i32_186 = arith.constant 64 : i32
    %752 = vector.broadcast %c64_i32_186 : i32 to vector<4x64xi32>
    %753 = arith.select %751, %18, %752 : vector<4x64xi1>, vector<4x64xi32>
    %cst_187 = arith.constant dense<2147483647> : vector<4xi32>
    %754 = vector.multi_reduction <minsi>, %753, %cst_187 [1] : vector<4x64xi32> to vector<4xi32>
    %755 = vector.shape_cast %754 : vector<4xi32> to vector<4x1xi32>
    %756 = vector.broadcast %755 : vector<4x1xi32> to vector<4x64xi32>
    %757 = arith.cmpi eq, %18, %756 : vector<4x64xi32>
    %758 = arith.extui %757 : vector<4x64xi1> to vector<4x64xi32>
    %759 = arith.sitofp %758 : vector<4x64xi32> to vector<4x64xf32>
    %c8_i32 = arith.constant 8 : i32
    %cst_188 = arith.constant dense<0.000000e+00> : vector<4x16xf32>
    %760 = tpu.matmul %759, %8, %cst_188 {dimension_numbers = #tpu.dot_dimension_numbers<[1], [0], [0], [1], [0, 0, 1, 1], [], []>} : vector<4x64xf32>, vector<64x16xf32>, vector<4x16xf32> -> vector<4x16xf32>
    %cst_189 = arith.constant dense<0.000000e+00> : vector<4x64xf32>
    %761 = tpu.matmul %727, %9, %cst_189 {dimension_numbers = #tpu.dot_dimension_numbers<[1], [0], [0], [1], [0, 0, 1, 1], [], []>} : vector<4x16xf32>, vector<16x64xf32>, vector<4x64xf32> -> vector<4x64xf32>
    %762 = vector.broadcast %10 : vector<1x64xf32> to vector<4x64xf32>
    %763 = arith.addf %761, %762 : vector<4x64xf32>
    %764 = vector.extract_strided_slice %763 {offsets = [0, 0], sizes = [4, 16], strides = [1, 1]} : vector<4x64xf32> to vector<4x16xf32>
    %765 = vector.extract_strided_slice %763 {offsets = [0, 16], sizes = [4, 48], strides = [1, 1]} : vector<4x64xf32> to vector<4x48xf32>
    %766 = vector.shape_cast %764 : vector<4x16xf32> to vector<4x1x16xf32>
    %767 = vector.broadcast %766 : vector<4x1x16xf32> to vector<4x8x16xf32>
    %768 = arith.addf %767, %7 : vector<4x8x16xf32>
    %769 = math.tanh %768 : vector<4x8x16xf32>
    %770 = vector.shape_cast %11 : vector<1x16xf32> to vector<1x1x16xf32>
    %771 = vector.broadcast %770 : vector<1x1x16xf32> to vector<4x8x16xf32>
    %772 = arith.mulf %769, %771 : vector<4x8x16xf32>
    %cst_190 = arith.constant dense<0.000000e+00> : vector<4x8xf32>
    %773 = vector.multi_reduction <add>, %772, %cst_190 [2] : vector<4x8x16xf32> to vector<4x8xf32>
    %774 = vector.broadcast %12 : vector<1x1xf32> to vector<4x8xf32>
    %775 = arith.addf %773, %774 : vector<4x8xf32>
    %cst_191 = arith.constant dense<0xFF800000> : vector<4xf32>
    %776 = vector.multi_reduction <maximumf>, %775, %cst_191 [1] : vector<4x8xf32> to vector<4xf32>
    %777 = vector.shape_cast %776 : vector<4xf32> to vector<4x1xf32>
    %778 = vector.broadcast %777 : vector<4x1xf32> to vector<4x8xf32>
    %779 = arith.subf %775, %778 : vector<4x8xf32>
    %780 = math.exp %779 : vector<4x8xf32>
    %cst_192 = arith.constant dense<0.000000e+00> : vector<4xf32>
    %781 = vector.multi_reduction <add>, %780, %cst_192 [1] : vector<4x8xf32> to vector<4xf32>
    %782 = vector.shape_cast %781 : vector<4xf32> to vector<4x1xf32>
    %783 = vector.broadcast %782 : vector<4x1xf32> to vector<4x8xf32>
    %784 = arith.divf %780, %783 : vector<4x8xf32>
    %785 = vector.shape_cast %784 : vector<4x8xf32> to vector<4x8x1xf32>
    %786 = vector.broadcast %785 : vector<4x8x1xf32> to vector<4x8x16xf32>
    %787 = arith.mulf %786, %0 : vector<4x8x16xf32>
    %cst_193 = arith.constant dense<0.000000e+00> : vector<4x16xf32>
    %788 = vector.multi_reduction <add>, %787, %cst_193 [1] : vector<4x8x16xf32> to vector<4x16xf32>
    %cst_194 = arith.constant dense<0.000000e+00> : vector<4x48xf32>
    %789 = tpu.matmul %760, %13, %cst_194 {dimension_numbers = #tpu.dot_dimension_numbers<[1], [0], [0], [1], [0, 0, 1, 1], [], []>} : vector<4x16xf32>, vector<16x48xf32>, vector<4x48xf32> -> vector<4x48xf32>
    %cst_195 = arith.constant dense<0.000000e+00> : vector<4x48xf32>
    %790 = tpu.matmul %788, %14, %cst_195 {dimension_numbers = #tpu.dot_dimension_numbers<[1], [0], [0], [1], [0, 0, 1, 1], [], []>} : vector<4x16xf32>, vector<16x48xf32>, vector<4x48xf32> -> vector<4x48xf32>
    %791 = arith.addf %789, %790 : vector<4x48xf32>
    %792 = vector.broadcast %15 : vector<1x48xf32> to vector<4x48xf32>
    %793 = arith.addf %791, %792 : vector<4x48xf32>
    %794 = vector.extract_strided_slice %793 {offsets = [0, 0], sizes = [4, 16], strides = [1, 1]} : vector<4x48xf32> to vector<4x16xf32>
    %795 = vector.extract_strided_slice %765 {offsets = [0, 0], sizes = [4, 16], strides = [1, 1]} : vector<4x48xf32> to vector<4x16xf32>
    %796 = arith.addf %794, %795 : vector<4x16xf32>
    %797 = arith.negf %796 : vector<4x16xf32>
    %798 = math.exp %797 : vector<4x16xf32>
    %cst_196 = arith.constant 1.000000e+00 : f32
    %799 = vector.broadcast %cst_196 : f32 to vector<4x16xf32>
    %800 = arith.addf %799, %798 : vector<4x16xf32>
    %801 = arith.divf %799, %800 : vector<4x16xf32>
    %802 = vector.extract_strided_slice %793 {offsets = [0, 16], sizes = [4, 16], strides = [1, 1]} : vector<4x48xf32> to vector<4x16xf32>
    %803 = vector.extract_strided_slice %765 {offsets = [0, 16], sizes = [4, 16], strides = [1, 1]} : vector<4x48xf32> to vector<4x16xf32>
    %804 = arith.addf %802, %803 : vector<4x16xf32>
    %805 = arith.negf %804 : vector<4x16xf32>
    %806 = math.exp %805 : vector<4x16xf32>
    %cst_197 = arith.constant 1.000000e+00 : f32
    %807 = vector.broadcast %cst_197 : f32 to vector<4x16xf32>
    %808 = arith.addf %807, %806 : vector<4x16xf32>
    %809 = arith.divf %807, %808 : vector<4x16xf32>
    %810 = vector.extract_strided_slice %793 {offsets = [0, 32], sizes = [4, 16], strides = [1, 1]} : vector<4x48xf32> to vector<4x16xf32>
    %811 = vector.extract_strided_slice %765 {offsets = [0, 32], sizes = [4, 16], strides = [1, 1]} : vector<4x48xf32> to vector<4x16xf32>
    %812 = arith.mulf %801, %811 : vector<4x16xf32>
    %813 = arith.addf %810, %812 : vector<4x16xf32>
    %814 = math.tanh %813 : vector<4x16xf32>
    %cst_198 = arith.constant 1.000000e+00 : f32
    %815 = vector.broadcast %cst_198 : f32 to vector<4x16xf32>
    %816 = arith.subf %815, %809 : vector<4x16xf32>
    %817 = arith.mulf %816, %814 : vector<4x16xf32>
    %818 = arith.mulf %809, %727 : vector<4x16xf32>
    %819 = arith.addf %817, %818 : vector<4x16xf32>
    %cst_199 = arith.constant dense<0.000000e+00> : vector<4x64xf32>
    %820 = tpu.matmul %819, %16, %cst_199 {dimension_numbers = #tpu.dot_dimension_numbers<[1], [0], [0], [1], [0, 0, 1, 1], [], []>} : vector<4x16xf32>, vector<16x64xf32>, vector<4x64xf32> -> vector<4x64xf32>
    %821 = vector.broadcast %17 : vector<1x64xf32> to vector<4x64xf32>
    %822 = arith.addf %820, %821 : vector<4x64xf32>
    %cst_200 = arith.constant dense<0xFF800000> : vector<4xf32>
    %823 = vector.multi_reduction <maximumf>, %822, %cst_200 [1] : vector<4x64xf32> to vector<4xf32>
    %824 = vector.shape_cast %823 : vector<4xf32> to vector<4x1xf32>
    %825 = vector.broadcast %824 : vector<4x1xf32> to vector<4x64xf32>
    %826 = arith.subf %822, %825 : vector<4x64xf32>
    %827 = math.exp %826 : vector<4x64xf32>
    %cst_201 = arith.constant dense<0.000000e+00> : vector<4xf32>
    %828 = vector.multi_reduction <add>, %827, %cst_201 [1] : vector<4x64xf32> to vector<4xf32>
    %829 = vector.shape_cast %828 : vector<4xf32> to vector<4x1xf32>
    %830 = math.log %829 : vector<4x1xf32>
    %831 = arith.addf %824, %830 : vector<4x1xf32>
    %832 = vector.broadcast %831 : vector<4x1xf32> to vector<4x64xf32>
    %833 = arith.subf %822, %832 : vector<4x64xf32>
    %834 = arith.index_cast %c8_i32 : i32 to index
    %c0_202 = arith.constant 0 : index
    %c0_203 = arith.constant 0 : index
    %835 = vector.load %arg14[%834, %c0_202, %c0_203] : memref<10x4x64xf32, #tpu.memory_space<vmem>>, vector<1x4x64xf32>
    %836 = vector.shape_cast %835 : vector<1x4x64xf32> to vector<4x64xf32>
    %837 = vector.shape_cast %833 : vector<4x64xf32> to vector<1x4x64xf32>
    tpu.vector_store %arg14[%834, %c0_202, %c0_203], %837 {strides = array<i32>} : memref<10x4x64xf32, #tpu.memory_space<vmem>>, vector<1x4x64xf32>,
    %838 = arith.index_cast %c8_i32 : i32 to index
    %c0_204 = arith.constant 0 : index
    %c0_205 = arith.constant 0 : index
    %839 = vector.load %arg15[%838, %c0_204, %c0_205] : memref<10x4x8xf32, #tpu.memory_space<vmem>>, vector<1x4x8xf32>
    %840 = vector.shape_cast %839 : vector<1x4x8xf32> to vector<4x8xf32>
    %841 = vector.shape_cast %784 : vector<4x8xf32> to vector<1x4x8xf32>
    tpu.vector_store %arg15[%838, %c0_204, %c0_205], %841 {strides = array<i32>} : memref<10x4x8xf32, #tpu.memory_space<vmem>>, vector<1x4x8xf32>,
    %842 = vector.broadcast %824 : vector<4x1xf32> to vector<4x64xf32>
    %843 = arith.cmpf oeq, %822, %842 : vector<4x64xf32>
    %c64_i32_206 = arith.constant 64 : i32
    %844 = vector.broadcast %c64_i32_206 : i32 to vector<4x64xi32>
    %845 = arith.select %843, %18, %844 : vector<4x64xi1>, vector<4x64xi32>
    %cst_207 = arith.constant dense<2147483647> : vector<4xi32>
    %846 = vector.multi_reduction <minsi>, %845, %cst_207 [1] : vector<4x64xi32> to vector<4xi32>
    %847 = vector.shape_cast %846 : vector<4xi32> to vector<4x1xi32>
    %848 = vector.broadcast %847 : vector<4x1xi32> to vector<4x64xi32>
    %849 = arith.cmpi eq, %18, %848 : vector<4x64xi32>
    %850 = arith.extui %849 : vector<4x64xi1> to vector<4x64xi32>
    %851 = arith.sitofp %850 : vector<4x64xi32> to vector<4x64xf32>
    %c9_i32 = arith.constant 9 : i32
    %cst_208 = arith.constant dense<0.000000e+00> : vector<4x16xf32>
    %852 = tpu.matmul %851, %8, %cst_208 {dimension_numbers = #tpu.dot_dimension_numbers<[1], [0], [0], [1], [0, 0, 1, 1], [], []>} : vector<4x64xf32>, vector<64x16xf32>, vector<4x16xf32> -> vector<4x16xf32>
    %cst_209 = arith.constant dense<0.000000e+00> : vector<4x64xf32>
    %853 = tpu.matmul %819, %9, %cst_209 {dimension_numbers = #tpu.dot_dimension_numbers<[1], [0], [0], [1], [0, 0, 1, 1], [], []>} : vector<4x16xf32>, vector<16x64xf32>, vector<4x64xf32> -> vector<4x64xf32>
    %854 = vector.broadcast %10 : vector<1x64xf32> to vector<4x64xf32>
    %855 = arith.addf %853, %854 : vector<4x64xf32>
    %856 = vector.extract_strided_slice %855 {offsets = [0, 0], sizes = [4, 16], strides = [1, 1]} : vector<4x64xf32> to vector<4x16xf32>
    %857 = vector.extract_strided_slice %855 {offsets = [0, 16], sizes = [4, 48], strides = [1, 1]} : vector<4x64xf32> to vector<4x48xf32>
    %858 = vector.shape_cast %856 : vector<4x16xf32> to vector<4x1x16xf32>
    %859 = vector.broadcast %858 : vector<4x1x16xf32> to vector<4x8x16xf32>
    %860 = arith.addf %859, %7 : vector<4x8x16xf32>
    %861 = math.tanh %860 : vector<4x8x16xf32>
    %862 = vector.shape_cast %11 : vector<1x16xf32> to vector<1x1x16xf32>
    %863 = vector.broadcast %862 : vector<1x1x16xf32> to vector<4x8x16xf32>
    %864 = arith.mulf %861, %863 : vector<4x8x16xf32>
    %cst_210 = arith.constant dense<0.000000e+00> : vector<4x8xf32>
    %865 = vector.multi_reduction <add>, %864, %cst_210 [2] : vector<4x8x16xf32> to vector<4x8xf32>
    %866 = vector.broadcast %12 : vector<1x1xf32> to vector<4x8xf32>
    %867 = arith.addf %865, %866 : vector<4x8xf32>
    %cst_211 = arith.constant dense<0xFF800000> : vector<4xf32>
    %868 = vector.multi_reduction <maximumf>, %867, %cst_211 [1] : vector<4x8xf32> to vector<4xf32>
    %869 = vector.shape_cast %868 : vector<4xf32> to vector<4x1xf32>
    %870 = vector.broadcast %869 : vector<4x1xf32> to vector<4x8xf32>
    %871 = arith.subf %867, %870 : vector<4x8xf32>
    %872 = math.exp %871 : vector<4x8xf32>
    %cst_212 = arith.constant dense<0.000000e+00> : vector<4xf32>
    %873 = vector.multi_reduction <add>, %872, %cst_212 [1] : vector<4x8xf32> to vector<4xf32>
    %874 = vector.shape_cast %873 : vector<4xf32> to vector<4x1xf32>
    %875 = vector.broadcast %874 : vector<4x1xf32> to vector<4x8xf32>
    %876 = arith.divf %872, %875 : vector<4x8xf32>
    %877 = vector.shape_cast %876 : vector<4x8xf32> to vector<4x8x1xf32>
    %878 = vector.broadcast %877 : vector<4x8x1xf32> to vector<4x8x16xf32>
    %879 = arith.mulf %878, %0 : vector<4x8x16xf32>
    %cst_213 = arith.constant dense<0.000000e+00> : vector<4x16xf32>
    %880 = vector.multi_reduction <add>, %879, %cst_213 [1] : vector<4x8x16xf32> to vector<4x16xf32>
    %cst_214 = arith.constant dense<0.000000e+00> : vector<4x48xf32>
    %881 = tpu.matmul %852, %13, %cst_214 {dimension_numbers = #tpu.dot_dimension_numbers<[1], [0], [0], [1], [0, 0, 1, 1], [], []>} : vector<4x16xf32>, vector<16x48xf32>, vector<4x48xf32> -> vector<4x48xf32>
    %cst_215 = arith.constant dense<0.000000e+00> : vector<4x48xf32>
    %882 = tpu.matmul %880, %14, %cst_215 {dimension_numbers = #tpu.dot_dimension_numbers<[1], [0], [0], [1], [0, 0, 1, 1], [], []>} : vector<4x16xf32>, vector<16x48xf32>, vector<4x48xf32> -> vector<4x48xf32>
    %883 = arith.addf %881, %882 : vector<4x48xf32>
    %884 = vector.broadcast %15 : vector<1x48xf32> to vector<4x48xf32>
    %885 = arith.addf %883, %884 : vector<4x48xf32>
    %886 = vector.extract_strided_slice %885 {offsets = [0, 0], sizes = [4, 16], strides = [1, 1]} : vector<4x48xf32> to vector<4x16xf32>
    %887 = vector.extract_strided_slice %857 {offsets = [0, 0], sizes = [4, 16], strides = [1, 1]} : vector<4x48xf32> to vector<4x16xf32>
    %888 = arith.addf %886, %887 : vector<4x16xf32>
    %889 = arith.negf %888 : vector<4x16xf32>
    %890 = math.exp %889 : vector<4x16xf32>
    %cst_216 = arith.constant 1.000000e+00 : f32
    %891 = vector.broadcast %cst_216 : f32 to vector<4x16xf32>
    %892 = arith.addf %891, %890 : vector<4x16xf32>
    %893 = arith.divf %891, %892 : vector<4x16xf32>
    %894 = vector.extract_strided_slice %885 {offsets = [0, 16], sizes = [4, 16], strides = [1, 1]} : vector<4x48xf32> to vector<4x16xf32>
    %895 = vector.extract_strided_slice %857 {offsets = [0, 16], sizes = [4, 16], strides = [1, 1]} : vector<4x48xf32> to vector<4x16xf32>
    %896 = arith.addf %894, %895 : vector<4x16xf32>
    %897 = arith.negf %896 : vector<4x16xf32>
    %898 = math.exp %897 : vector<4x16xf32>
    %cst_217 = arith.constant 1.000000e+00 : f32
    %899 = vector.broadcast %cst_217 : f32 to vector<4x16xf32>
    %900 = arith.addf %899, %898 : vector<4x16xf32>
    %901 = arith.divf %899, %900 : vector<4x16xf32>
    %902 = vector.extract_strided_slice %885 {offsets = [0, 32], sizes = [4, 16], strides = [1, 1]} : vector<4x48xf32> to vector<4x16xf32>
    %903 = vector.extract_strided_slice %857 {offsets = [0, 32], sizes = [4, 16], strides = [1, 1]} : vector<4x48xf32> to vector<4x16xf32>
    %904 = arith.mulf %893, %903 : vector<4x16xf32>
    %905 = arith.addf %902, %904 : vector<4x16xf32>
    %906 = math.tanh %905 : vector<4x16xf32>
    %cst_218 = arith.constant 1.000000e+00 : f32
    %907 = vector.broadcast %cst_218 : f32 to vector<4x16xf32>
    %908 = arith.subf %907, %901 : vector<4x16xf32>
    %909 = arith.mulf %908, %906 : vector<4x16xf32>
    %910 = arith.mulf %901, %819 : vector<4x16xf32>
    %911 = arith.addf %909, %910 : vector<4x16xf32>
    %cst_219 = arith.constant dense<0.000000e+00> : vector<4x64xf32>
    %912 = tpu.matmul %911, %16, %cst_219 {dimension_numbers = #tpu.dot_dimension_numbers<[1], [0], [0], [1], [0, 0, 1, 1], [], []>} : vector<4x16xf32>, vector<16x64xf32>, vector<4x64xf32> -> vector<4x64xf32>
    %913 = vector.broadcast %17 : vector<1x64xf32> to vector<4x64xf32>
    %914 = arith.addf %912, %913 : vector<4x64xf32>
    %cst_220 = arith.constant dense<0xFF800000> : vector<4xf32>
    %915 = vector.multi_reduction <maximumf>, %914, %cst_220 [1] : vector<4x64xf32> to vector<4xf32>
    %916 = vector.shape_cast %915 : vector<4xf32> to vector<4x1xf32>
    %917 = vector.broadcast %916 : vector<4x1xf32> to vector<4x64xf32>
    %918 = arith.subf %914, %917 : vector<4x64xf32>
    %919 = math.exp %918 : vector<4x64xf32>
    %cst_221 = arith.constant dense<0.000000e+00> : vector<4xf32>
    %920 = vector.multi_reduction <add>, %919, %cst_221 [1] : vector<4x64xf32> to vector<4xf32>
    %921 = vector.shape_cast %920 : vector<4xf32> to vector<4x1xf32>
    %922 = math.log %921 : vector<4x1xf32>
    %923 = arith.addf %916, %922 : vector<4x1xf32>
    %924 = vector.broadcast %923 : vector<4x1xf32> to vector<4x64xf32>
    %925 = arith.subf %914, %924 : vector<4x64xf32>
    %926 = arith.index_cast %c9_i32 : i32 to index
    %c0_222 = arith.constant 0 : index
    %c0_223 = arith.constant 0 : index
    %927 = vector.load %arg14[%926, %c0_222, %c0_223] : memref<10x4x64xf32, #tpu.memory_space<vmem>>, vector<1x4x64xf32>
    %928 = vector.shape_cast %927 : vector<1x4x64xf32> to vector<4x64xf32>
    %929 = vector.shape_cast %925 : vector<4x64xf32> to vector<1x4x64xf32>
    tpu.vector_store %arg14[%926, %c0_222, %c0_223], %929 {strides = array<i32>} : memref<10x4x64xf32, #tpu.memory_space<vmem>>, vector<1x4x64xf32>,
    %930 = arith.index_cast %c9_i32 : i32 to index
    %c0_224 = arith.constant 0 : index
    %c0_225 = arith.constant 0 : index
    %931 = vector.load %arg15[%930, %c0_224, %c0_225] : memref<10x4x8xf32, #tpu.memory_space<vmem>>, vector<1x4x8xf32>
    %932 = vector.shape_cast %931 : vector<1x4x8xf32> to vector<4x8xf32>
    %933 = vector.shape_cast %876 : vector<4x8xf32> to vector<1x4x8xf32>
    tpu.vector_store %arg15[%930, %c0_224, %c0_225], %933 {strides = array<i32>} : memref<10x4x8xf32, #tpu.memory_space<vmem>>, vector<1x4x8xf32>,
    %934 = vector.broadcast %916 : vector<4x1xf32> to vector<4x64xf32>
    %935 = arith.cmpf oeq, %914, %934 : vector<4x64xf32>
    %c64_i32_226 = arith.constant 64 : i32
    %936 = vector.broadcast %c64_i32_226 : i32 to vector<4x64xi32>
    %937 = arith.select %935, %18, %936 : vector<4x64xi1>, vector<4x64xi32>
    %cst_227 = arith.constant dense<2147483647> : vector<4xi32>
    %938 = vector.multi_reduction <minsi>, %937, %cst_227 [1] : vector<4x64xi32> to vector<4xi32>
    %939 = vector.shape_cast %938 : vector<4xi32> to vector<4x1xi32>
    %940 = vector.broadcast %939 : vector<4x1xi32> to vector<4x64xi32>
    %941 = arith.cmpi eq, %18, %940 : vector<4x64xi32>
    %942 = arith.extui %941 : vector<4x64xi1> to vector<4x64xi32>
    %943 = arith.sitofp %942 : vector<4x64xi32> to vector<4x64xf32>
    %c10_i32 = arith.constant 10 : i32
    %c0_228 = arith.constant 0 : index
    %c0_229 = arith.constant 0 : index
    %944 = vector.load %arg16[%c0_228, %c0_229] : memref<4x16xf32, #tpu.memory_space<vmem>>, vector<4x16xf32>
    tpu.vector_store %arg16[%c0_228, %c0_229], %911 {strides = array<i32>} : memref<4x16xf32, #tpu.memory_space<vmem>>, vector<4x16xf32>,
    return
  }
}

</mosaic_0001>

<bundles_post_ra>
// kernel: tpu_custom_call.1
= control target key start
LH: loop header
LB: loop body
LE: loop exit
PB: predicated region body
PF: predicated region fallthrough
CT: control target
= control target key end

     0   :  { %s10627_s0 = inlined_call_operand.vmem [shape: f32[4,8,16], index: 0, kind: input, shape index: {}]   ;;  %s10628_s1 = inlined_call_operand.hbm [shape: f32[4,16], index: 1, kind: input, shape index: {}]   ;;  %s10629_s2 = inlined_call_operand.vmem [shape: f32[64,16], index: 2, kind: input, shape index: {}]   ;;  %s10630_s3 = inlined_call_operand.vmem [shape: f32[16,64], index: 3, kind: input, shape index: {}]   ;;  %s10631_s4 = inlined_call_operand.vmem [shape: f32[1,64], index: 4, kind: input, shape index: {}]   ;;  %s10632_s5 = inlined_call_operand.vmem [shape: f32[16,16], index: 5, kind: input, shape index: {}]   ;;  %s10633_s6 = inlined_call_operand.vmem [shape: f32[1,16], index: 6, kind: input, shape index: {}]   ;;  %s10634_s7 = inlined_call_operand.hbm [shape: f32[1,16], index: 7, kind: input, shape index: {}]   ;;  %s10635_s8 = inlined_call_operand.<no memory space> [shape: f32[1,1], index: 8, kind: input, shape index: {}]   ;;  %s10636_s9 = inlined_call_operand.vmem [shape: f32[16,48], index: 9, kind: input, shape index: {}]   ;;  %s10637_s10 = inlined_call_operand.vmem [shape: f32[16,48], index: 10, kind: input, shape index: {}]   ;;  %s10638_s11 = inlined_call_operand.vmem [shape: f32[1,48], index: 11, kind: input, shape index: {}]   ;;  %s10639_s12 = inlined_call_operand.vmem [shape: f32[16,64], index: 12, kind: input, shape index: {}]   ;;  %s10640_s13 = inlined_call_operand.vmem [shape: f32[1,64], index: 13, kind: input, shape index: {}]   ;;  %s10641_s14 = inlined_call_operand.hbm [shape: f32[10,4,64], index: 14, kind: output, shape index: {0}]   ;;  %s10642_s15 = inlined_call_operand.vmem [shape: f32[10,4,8], index: 15, kind: output, shape index: {1}]   ;;  %s10643_s16 = inlined_call_operand.hbm [shape: f32[4,16], index: 16, kind: output, shape index: {2}]  }
   0x1   :  { %10653 = sst [smem:[#allocation17_spill]] %s10627_s0  ;;  %v22_v0 = vstv %s10635_s8 }
   0x2   :  { %23 = vst [vmem:[#allocation2] sm:$0x1] %v22_v0 }
   0x3   :  { %24 = vsyncpa [#allocation4], 0 }
   0x4   :  { %25 = vsyncpa [#allocation7], 0 }
   0x5   :  { %26 = vsyncpa [#allocation5], 0 }
   0x6   :  { %27 = vsyncpa [#allocation10], 0  ;;  %s8874_s23 = smov [#allocation3]   ;;  %s8875_s25 = smov [#allocation6]  }
   0x7   :  { %s36_s24 = sshll.u32 %s8874_s23, 4  ;;  %s56_s26 = sshll.u32 %s8875_s25, 4  ;;  %s37_s24 = int_to_ptr.vmem [resolvable:$true] %s36_s24  ;;  %s57_s26 = int_to_ptr.vmem [resolvable:$true] %s56_s26 }
   0x8   :  { %s8778_s29 = scalar_lea.hbm %s10628_s1, 64 }
   0x9   :  { %p8779_p0 = scmp.ne.s32.totalorder %s10628_s1, %s8778_s29  ;;  %p8782_p1 = scmp.lt.u32.totalorder %s8778_s29, %s10628_s1 }
   0xb   :  { %p8784_p2 = pnand %p8782_p1, %p8779_p0 }
   0xd   :  { %8787 = shalt.err (!%p8784_p2)
}
   0xe   :  { %s8788_s18 = scalar_lea.vmem %s37_s24, 64  ;;  %p8793_p4 = scmp.lt.s32.totalorder %s37_s24, %s37_s24 }
   0xf   :  { %p8789_p3 = scmp.ne.s32.totalorder %s37_s24, %s8788_s18  ;;  %p8794_p5 = scmp.lt.s32.totalorder %s8788_s18, %s8788_s18 }
  0x11   :  { %p8795_p6 = por %p8794_p5, %p8793_p4 }
  0x13   :  { %p8796_p7 = pnand %p8795_p6, %p8789_p3 }
  0x15   :  { %8799 = shalt.err (!%p8796_p7)
}
  0x16   :  { %39 = dma.hbm_to_vmem [thread:$0]  %s10628_s1, 64, %s37_s24, [#allocation4]  }
  0x17   :  { %s8800_s23 = scalar_lea.hbm %s10634_s7, 16 }
  0x18   :  { %p8801_p8 = scmp.ne.s32.totalorder %s10634_s7, %s8800_s23  ;;  %p8804_p9 = scmp.lt.u32.totalorder %s8800_s23, %s10634_s7 }
  0x1a   :  { %p8806_p10 = pnand %p8804_p9, %p8801_p8 }
  0x1c   :  { %8809 = shalt.err (!%p8806_p10)
}
  0x1d   :  { %s8810_s30 = scalar_lea.vmem %s57_s26, 16  ;;  %s8814_s0 = scalar_lea.vmem %s57_s26, 32 }
  0x1e   :  { %p8811_p11 = scmp.ne.s32.totalorder %s57_s26, %s8810_s30  ;;  %p8815_p12 = scmp.lt.s32.totalorder %s57_s26, %s57_s26 }
  0x1f   :  { %p8816_p13 = scmp.lt.s32.totalorder %s8814_s0, %s8810_s30 }
  0x21   :  { %p8817_p0 = por %p8816_p13, %p8815_p12 }
  0x23   :  { %p8818_p1 = pnand %p8817_p0, %p8811_p11 }
  0x25   :  { %8821 = shalt.err (!%p8818_p1)
}
  0x26   :  { %59 = dma.hbm_to_vmem [thread:$0]  %s10634_s7, 16, %s57_s26, [#allocation7]  }
  0x27   :  { %8866 = dma.done.wait [#allocation4], 64  }
  0x28   :  { %8867 = vsyncadd [#allocation4], 4294967232 }
  0x29   :  { %8868 = dma.done.wait [#allocation7], 16  }
  0x2a   :  { %8869 = vsyncadd [#allocation7], 4294967280  ;;  %v10645_v1 = vmov 0.0|0.0   ;;  %vm8877_vm0 = vmmov 0   ;;  %v10647_v2 = vmov 0.0   ;;  %vm91_vm1 = vcmask 130048  }
  0x2b   :  { %8157 = vmatprep.subr.bf16.mxu1 %v10645_v1  ;;  %7699 = vmatprep.mubr.msk.f32.mxu1 %vm8877_vm0, %v10647_v2  ;;  %v82_v3 = vld [vmem:[%s10632_s5] sm:$0xff]  ;;  %v83_v4 = vld [vmem:[%s10632_s5 + $0x8] sm:$0xff]  ;;  %s10654_s20 = sld [smem:[#allocation17_spill]]  ;;  %v8879_v14 = vmov 0   ;;  %v210_v15 = vlaneseq  ;;  %v8880_v16 = vmov 1966171168  }
  0x2c   :  { %v8153_v6 = vpack.c.bf16 %v83_v4, %v82_v3  ;;  %v197_v7 = vld [vmem:[%s10630_s3] sm:$0xff]  ;;  %v198_v8 = vld [vmem:[%s10630_s3 + $0x8] sm:$0xff]  ;;  %8412 = vset.pattern.permute.xlu0 %v8879_v14  ;;  %8413 = vset.pattern.permute.xlu1 %v8879_v14  ;;  %v371_v17 = vunpack.c.l.s4 %v8880_v16  ;;  %vm477_vm2 = vcmask 1041409   ;;  %vm479_vm3 = vcmask 1042434   ;;  %s8882_s0 = smov 80   ;;  %s8883_s22 = smov 32  }
  0x2d   :  { %v9028_v10 = vpack.c.bf16 %v198_v8, %v197_v7  ;;  %v9051_v13 = vld [vmem:[#allocation3] sm:$0xf]  ;;  %v9057_v21 = vshrl.u32 %v210_v15, 7  ;;  %v9062_v24 = vld [vmem:[%s10631_s4] ss:$0 sm:$0xff]  ;;  %v9106_v3 = vand.u32 127, %v210_v15 }
  0x2e   :  { %8154 = vmatprep.subr.bf16.mxu0 %v8153_v6  ;;  %v372_v20 = vunpack.c.0.s8 %v371_v17  ;;  %v7368_v31 = vld [vmem:[%s10633_s6] ss:$0 sm:$0xff]  ;;  %v9096_v49 = vld [vmem:[#allocation6] ss:$0 sm:$0xff]  ;;  %vm481_vm4 = vcmask 1043459   ;;  %vm484_vm5 = vcmask 60416  }
  0x2f   :  { %8156 = vmatpush3.bf16.msra.mxu0 %v8153_v6  ;;  %v9073_v30 = vsub.s32 0, %v9057_v21  ;;  %v7378_v62 = vld [vmem:[#allocation2] ss:$0 sm:$0xff]  ;;  %v9110_v6 = vsub.s32 %v9106_v3, %v9057_v21  ;;  %vm213_vm6 = vcmp.eq.s32.totalorder %v9106_v3, 0  ;;  %vm216_vm7 = vcmask 523264   ;;  %s8884_s23 = smov 16  }
  0x30   :  { %8169 = vmatprep.subr.bf16.mxu0 %v10645_v1  ;;  %v9065_v25 = vsub.s32 %v372_v20, %v9057_v21  ;;  %vm912_vm8 = vcmask 519168  }
  0x31   :  { %v9013_v5 = vld [vmem:[%s10654_s20] sm:$0xff]  ;;  %v9026_v9 = vld [vmem:[%s10654_s20 + $0x8] sm:$0xff]  ;;  %v9034_v11 = vld [vmem:[%s10654_s20 + $0x10] sm:$0xff] }
  0x32   :  { %7677 = vmatprep.mubr.msk.f32.mxu0 %vm91_vm1, %v9013_v5  ;;  %v9044_v12 = vld [vmem:[%s10654_s20 + $0x18] sm:$0xff] }
  0x33   :  { %7678 = vmatmul.mubr.msk.f32.vlgmr.msra.gmra.mrb[0].mxu0 %vm91_vm1, %v9026_v9 }
  0x34   :  { %8171 = vmatpush3.bf16.msra.mxu0 %v9028_v10  ;;  %7680 = vmatprep.mubr.msk.f32.mxu0 %vm91_vm1, %v9034_v11 }
  0x35   :  { %8172 = vmatprep.subr.bf16.mxu0 %v10645_v1 }
  0x37   :  { %7681 = vmatmul.mubr.msk.f32.gmra.mrb[2].mxu0 %vm91_vm1, %v9044_v12 }
  0x38   :  { %7706 = vmatprep.mubr.msk.f32.mxu0 %vm8877_vm0, %v10647_v2 }
  0x3b   :  { %7707 = vmatmul.mubr.msk.f32.vlgmr.msra.gmra.mrb[4].mxu0 %vm91_vm1, %v9051_v13 }
  0x3c   :  { %7713 = vmatprep.mubr.msk.f32.mxu0 %vm8877_vm0, %v10647_v2 }
 0x106   :  { %v7679_v18 = vpop.f32.mrb[0].mxu0 }
 0x107   :  { %v170_v19 = vpop.f32.mrb[1].mxu0  ;;  %v9083_v38 = vadd.f32 %v7679_v18, %v7368_v31 }
 0x108   :  { %v9079_v34 = vadd.f32 %v7368_v31, %v170_v19 }
 0x10a   :  { %v7682_v22 = vpop.f32.mrb[2].mxu0 }
 0x10b   :  { %v180_v23 = vpop.f32.mrb[3].mxu0  ;;  %v9090_v44 = vadd.f32 %v7682_v22, %v7368_v31 }
 0x10c   :  { %v9085_v39 = vadd.f32 %v7368_v31, %v180_v23  ;;  %v9127_v31 = vsub.s32 1, %v9057_v21 }
 0x10e   :  { %v365_v26 = vpop.f32.mrb[4].mxu0 }
 0x10f   :  { %v9068_v27 = vadd.f32 %v9062_v24, %v365_v26  ;;  %v7708_v28 = vpop.f32.mrb[5].mxu0 }
 0x111   :  { %v376_v29 = vrot.slane %v9068_v27, %v9065_v25 }
 0x113   :  { %v377_v32 = vcombine.high %v376_v29, %v376_v29  ;;  %v384_v33 = vrot.slane %v376_v29, %v9065_v25 }
 0x115   :  { %v391_v35 = vrot.slane %v377_v32, %v9065_v25  ;;  %v392_v36 = vcombine.high %v384_v33, %v384_v33  ;;  %v397_v37 = vrot.slane %v384_v33, %v9073_v30  ;;  %v9130_v32 = vsub.s32 2, %v9057_v21 }
 0x117   :  { %v393_v40 = vcombine.high %v391_v35, %v391_v35  ;;  %v401_v41 = vrot.slane %v391_v35, %v9073_v30  ;;  %v405_v42 = vrot.slane %v392_v36, %v9073_v30  ;;  %v414_v43 = vadd.f32 %v397_v37, %v9079_v34 }
 0x118   :  { %v9135_v37 = vsub.s32 3, %v9057_v21 }
 0x119   :  { %v409_v45 = vrot.slane %v393_v40, %v9073_v30  ;;  %v415_v46 = vadd.f32 %v401_v41, %v9083_v38  ;;  %v416_v47 = vadd.f32 %v405_v42, %v9085_v39  ;;  %8414 = vtanh.f32 %v414_v43 }
 0x11b   :  { %8416 = vtanh.f32 %v416_v47  ;;  %v417_v48 = vadd.f32 %v409_v45, %v9090_v44 }
 0x11c   :  { %8418 = vtanh.f32 %v415_v46 }
 0x11d   :  { %8420 = vtanh.f32 %v417_v48 }
 0x123   :  { %v8415_v50 = vpop.eup %8414 }
 0x124   :  { %v428_v51 = vmul.f32 %v8415_v50, %v9096_v49 }
 0x125   :  { %v8417_v52 = vpop.eup %8416 }
 0x126   :  { %v8419_v53 = vpop.eup %8418  ;;  %v432_v54 = vsel %vm91_vm1, %v428_v51, 0.0  ;;  %v430_v55 = vmul.f32 %v8417_v52, %v9096_v49 }
 0x127   :  { %v8421_v56 = vpop.eup %8420  ;;  %433 = vadd.xlane.f32.xlu0 %v432_v54  ;;  %v429_v57 = vmul.f32 %v8419_v53, %v9096_v49 }
 0x128   :  { %v438_v58 = vsel %vm91_vm1, %v430_v55, 0.0  ;;  %v431_v59 = vmul.f32 %v8421_v56, %v9096_v49  ;;  %v189_v55 = vld [vmem:[%s10629_s2] sm:$0xff]  ;;  %v190_v56 = vld [vmem:[%s10629_s2 + $0x8] sm:$0xff] }
 0x129   :  { %439 = vadd.xlane.f32.xlu1 %v438_v58  ;;  %v435_v60 = vsel %vm91_vm1, %v429_v57, 0.0  ;;  %v191_v57 = vld [vmem:[%s10629_s2 + $0x10] sm:$0xff]  ;;  %v9148_v58 = vpack.c.bf16 %v190_v56, %v189_v55 }
 0x12a   :  { %v441_v61 = vsel %vm91_vm1, %v431_v59, 0.0  ;;  %v192_v59 = vld [vmem:[%s10629_s2 + $0x18] sm:$0xff] }
 0x12b   :  { %436 = vadd.xlane.f32.xlu0 %v435_v60  ;;  %8159 = vmatpush3.bf16.msra.mxu1 %v9148_v58  ;;  %v9154_v60 = vpack.c.bf16 %v192_v59, %v191_v57 }
 0x12c   :  { %8160 = vmatprep.subr.bf16.mxu1 %v10645_v1 }
 0x12d   :  { %442 = vadd.xlane.f32.xlu1 %v441_v61  ;;  %v193_v61 = vld [vmem:[%s10629_s2 + $0x20] sm:$0xff] }
 0x12f   :  { %8162 = vmatpush3.bf16.msra.mxu1 %v9154_v60 }
 0x130   :  { %8163 = vmatprep.subr.bf16.mxu1 %v10645_v1 }
 0x141   :  { %450 = vperm.xlu0 %8412, %v7378_v62   ;;  %v194_v62 = vld [vmem:[%s10629_s2 + $0x28] sm:$0xff] }
 0x1b4   :  { %v434_v63 = vpop.xlane.xlu0 %433 }
 0x1b6   :  { %v440_v0 = vpop.xlane.xlu1 %439 }
 0x1b8   :  { %v437_v4 = vpop.xlane.xlu0 %436 }
 0x1ba   :  { %v443_v7 = vpop.xlane.xlu1 %442 }
 0x1c0   :  { %v9112_v8 = vpop.permute.xlu0 %450 }
 0x1c1   :  { %v453_v14 = vadd.f32 %v9112_v8, %v434_v63  ;;  %v454_v16 = vadd.f32 %v9112_v8, %v437_v4  ;;  %v455_v17 = vadd.f32 %v9112_v8, %v440_v0  ;;  %v456_v18 = vadd.f32 %v9112_v8, %v443_v7  ;;  %v195_v0 = vld [vmem:[%s10629_s2 + $0x30] sm:$0xff]  ;;  %v196_v4 = vld [vmem:[%s10629_s2 + $0x38] sm:$0xff]  ;;  %s8881_s2 = smov 112  }
 0x1c2   :  { %v9164_v63 = vpack.c.bf16 %v194_v62, %v193_v61  ;;  %v9174_v7 = vpack.c.bf16 %v196_v4, %v195_v0 }
 0x1c3   :  { %v464_v15 = vrot.slane %v453_v14, %v9110_v6  ;;  %v468_v19 = vrot.slane %v454_v16, %v9110_v6  ;;  %v472_v20 = vrot.slane %v455_v17, %v9110_v6  ;;  %v476_v22 = vrot.slane %v456_v18, %v9110_v6 }
 0x1c4   :  { %8165 = vmatpush3.bf16.msra.mxu1 %v9164_v63 }
 0x1c5   :  { %v478_v23 = vsel %vm477_vm2, %v468_v19, %v464_v15  ;;  %8166 = vmatprep.subr.bf16.mxu1 %v10645_v1 }
 0x1c6   :  { %v480_v26 = vsel %vm479_vm3, %v472_v20, %v478_v23 }
 0x1c7   :  { %v482_v28 = vsel %vm481_vm4, %v476_v22, %v480_v26 }
 0x1c8   :  { %v485_v29 = vsel %vm484_vm5, %v482_v28, -inf  ;;  %8168 = vmatpush3.bf16.msra.mxu1 %v9174_v7 }
 0x1c9   :  { %486 = vmax.xlane.f32.xlu1 %v485_v29  ;;  %8178 = vmatprep.subr.bf16.mxu1 %v10645_v1 }
 0x256   :  { %v487_v33 = vpop.xlane.xlu1 %486 }
 0x257   :  { %v492_v35 = vrot.slane %v487_v33, %v9073_v30  ;;  %v496_v36 = vrot.slane %v487_v33, %v9127_v31  ;;  %v500_v40 = vrot.slane %v487_v33, %v9130_v32  ;;  %v504_v45 = vrot.slane %v487_v33, %v9135_v37 }
 0x259   :  { %v509_v41 = vsub.f32 %v453_v14, %v492_v35  ;;  %v510_v42 = vsub.f32 %v454_v16, %v496_v36  ;;  %v511_v46 = vsub.f32 %v455_v17, %v500_v40  ;;  %v512_v48 = vsub.f32 %v456_v18, %v504_v45 }
 0x25a   :  { %v7373_v14 = vsel %vm213_vm6, 1.0, %v10647_v2 }
 0x25b   :  { %v513_v43 = vmul.f32 1.442695, %v509_v41  ;;  %v515_v47 = vmul.f32 1.442695, %v510_v42  ;;  %v517_v50 = vmul.f32 1.442695, %v511_v46  ;;  %7700 = vmatmul.mubr.msk.f32.vlgmr.msra.gmra.mrb[0].mxu1 %vm216_vm7, %v7373_v14 }
 0x25c   :  { %v519_v51 = vmul.f32 1.442695, %v512_v48  ;;  %7727 = vmatprep.mubr.msk.f32.mxu1 %vm8877_vm0, %v10647_v2 }
 0x25d   :  { %8422 = vpow2.f32 %v513_v43 }
 0x25e   :  { %8424 = vpow2.f32 %v515_v47 }
 0x25f   :  { %8426 = vpow2.f32 %v517_v50 }
 0x260   :  { %8428 = vpow2.f32 %v519_v51 }
 0x267   :  { %v8423_v52 = vpop.eup %8422 }
 0x268   :  { %526 = vperm.xlu1 %8413, %v8423_v52   ;;  %v8425_v21 = vpop.eup %8424 }
 0x269   :  { %v8427_v53 = vpop.eup %8426 }
 0x26a   :  { %v8429_v54 = vpop.eup %8428 }
 0x26c   :  { %529 = vperm.xlu1 %8413, %v8425_v21  }
 0x270   :  { %532 = vperm.xlu1 %8413, %v8427_v53  }
 0x274   :  { %535 = vperm.xlu1 %8413, %v8429_v54  }
 0x2e7   :  { %v527_v16 = vpop.permute.xlu1 %526 }
 0x2e8   :  { %v540_v20 = vrot.slane %v527_v16, %v9110_v6 }
 0x2eb   :  { %v530_v17 = vpop.permute.xlu1 %529 }
 0x2ec   :  { %v544_v15 = vrot.slane %v530_v17, %v9110_v6 }
 0x2ee   :  { %v553_v26 = vsel %vm477_vm2, %v544_v15, %v540_v20 }
 0x2ef   :  { %v533_v18 = vpop.permute.xlu1 %532 }
 0x2f0   :  { %v548_v19 = vrot.slane %v533_v18, %v9110_v6 }
 0x2f2   :  { %v554_v28 = vsel %vm479_vm3, %v548_v19, %v553_v26 }
 0x2f3   :  { %v536_v22 = vpop.permute.xlu1 %535 }
 0x2f4   :  { %v552_v23 = vrot.slane %v536_v22, %v9110_v6 }
 0x2f6   :  { %v555_v29 = vsel %vm481_vm4, %v552_v23, %v554_v28 }
 0x2f7   :  { %v557_v33 = vsel %vm484_vm5, %v555_v29, 0.0 }
 0x2f8   :  { %558 = vadd.xlane.f32.xlu1 %v557_v33 }
 0x385   :  { %v559_v35 = vpop.xlane.xlu1 %558 }
 0x386   :  { %v564_v36 = vrot.slane %v559_v35, %v9073_v30  ;;  %v568_v40 = vrot.slane %v559_v35, %v9127_v31  ;;  %v572_v41 = vrot.slane %v559_v35, %v9130_v32  ;;  %v576_v42 = vrot.slane %v559_v35, %v9135_v37 }
 0x388   :  { %8430 = vrcp.f32 %v564_v36 }
 0x389   :  { %8432 = vrcp.f32 %v568_v40 }
 0x38a   :  { %8434 = vrcp.f32 %v572_v41 }
 0x38b   :  { %8436 = vrcp.f32 %v576_v42 }
 0x392   :  { %v8431_v43 = vpop.eup %8430 }
 0x393   :  { %v582_v45 = vmul.f32 %v8431_v43, %v8423_v52  ;;  %v8433_v46 = vpop.eup %8432  ;;  %v204_v52 = vld [vmem:[%s10637_s10] sm:$0xff] }
 0x394   :  { %v584_v47 = vmul.f32 %v8433_v46, %v8425_v21  ;;  %v8435_v48 = vpop.eup %8434  ;;  %v205_v21 = vld [vmem:[%s10637_s10 + $0x8] sm:$0xff] }
 0x395   :  { %591 = vperm.xlu0 %8412, %v582_v45   ;;  %v586_v50 = vmul.f32 %v8435_v48, %v8427_v53  ;;  %v8437_v51 = vpop.eup %8436  ;;  %v9206_v53 = vpack.c.bf16 %v205_v21, %v204_v52 }
 0x396   :  { %v588_v55 = vmul.f32 %v8437_v51, %v8429_v54  ;;  %v286_v54 = vpop.f32.mrb[0].mxu1 }
 0x397   :  { %8174 = vmatpush3.bf16.msra.mxu0 %v9206_v53  ;;  %v7701_v56 = vpop.f32.mrb[1].mxu1 }
 0x398   :  { %8175 = vmatprep.subr.bf16.mxu0 %v10645_v1 }
 0x399   :  { %596 = vperm.xlu0 %8412, %v584_v47  }
 0x39d   :  { %601 = vperm.xlu0 %8412, %v586_v50  }
 0x3a1   :  { %606 = vperm.xlu0 %8412, %v588_v55  }
 0x3a5   :  { %800 = vrot.lane.b32.xlu0 %v9068_v27, %s8881_s2 }
 0x3a9   :  { %810 = vrot.lane.b32.xlu0 %v9068_v27, %s8882_s0 }
 0x414   :  { %v592_v57 = vpop.permute.xlu0 %591 }
 0x415   :  { %v609_v59 = vmul.f32 %v592_v57, %v9013_v5  ;;  %v930_v22 = vrot.slane %v592_v57, %v9110_v6 }
 0x417   :  { %v613_v27 = vsel %vm91_vm1, %v609_v59, 0.0 }
 0x418   :  { %v614_v61 = vrot.slane %v613_v27, 4  ;;  %v597_v62 = vpop.permute.xlu0 %596 }
 0x419   :  { %v610_v0 = vmul.f32 %v597_v62, %v9026_v9  ;;  %v934_v18 = vrot.slane %v597_v62, %v9110_v6  ;;  %v202_v62 = vld [vmem:[%s10636_s9] sm:$0xff] }
 0x41a   :  { %v615_v14 = vadd.f32 %v614_v61, %v613_v27 }
 0x41b   :  { %v620_v4 = vsel %vm91_vm1, %v610_v0, 0.0  ;;  %v943_v35 = vsel %vm477_vm2, %v934_v18, %v930_v22  ;;  %v203_v0 = vld [vmem:[%s10636_s9 + $0x8] sm:$0xff]  ;;  %v9259_v22 = vld [vmem:[%s10638_s11] ss:$0 sm:$0xff] }
 0x41c   :  { %v621_v16 = vrot.slane %v620_v4, 4  ;;  %v602_v17 = vpop.permute.xlu0 %601  ;;  %v616_v26 = vrot.slane %v615_v14, 2  ;;  %v9236_v18 = vpack.c.bf16 %v203_v0, %v202_v62 }
 0x41d   :  { %v611_v15 = vmul.f32 %v602_v17, %v9034_v11  ;;  %v938_v20 = vrot.slane %v602_v17, %v9110_v6 }
 0x41e   :  { %v622_v19 = vadd.f32 %v621_v16, %v620_v4  ;;  %v617_v47 = vadd.f32 %v616_v26, %v615_v14 }
 0x41f   :  { %v627_v23 = vsel %vm91_vm1, %v611_v15, 0.0  ;;  %v944_v43 = vsel %vm479_vm3, %v938_v20, %v943_v35 }
 0x420   :  { %v623_v28 = vrot.slane %v622_v19, 2  ;;  %v628_v29 = vrot.slane %v627_v23, 4  ;;  %v607_v33 = vpop.permute.xlu0 %606  ;;  %v618_v21 = vrot.slane %v617_v47, 1 }
 0x421   :  { %v612_v36 = vmul.f32 %v607_v33, %v9044_v12  ;;  %v942_v40 = vrot.slane %v607_v33, %v9110_v6 }
 0x422   :  { %v624_v41 = vadd.f32 %v623_v28, %v622_v19  ;;  %v629_v42 = vadd.f32 %v628_v29, %v627_v23  ;;  %v619_v4 = vadd.f32 %v618_v21, %v617_v47 }
 0x423   :  { %v634_v45 = vsel %vm91_vm1, %v612_v36, 0.0  ;;  %v945_v46 = vsel %vm481_vm4, %v942_v40, %v944_v43 }
 0x424   :  { %v630_v48 = vrot.slane %v629_v42, 2  ;;  %v635_v50 = vrot.slane %v634_v45, 4  ;;  %947 = vst.msk [vmem:[%s10642_s15] sm:$0xf] %vm484_vm5, %v945_v46  ;;  %v625_v51 = vrot.slane %v624_v41, 1  ;;  %v801_v33 = vpop.permute.xlu0 %800 }
 0x426   :  { %v631_v55 = vadd.f32 %v630_v48, %v629_v42  ;;  %v636_v52 = vadd.f32 %v635_v50, %v634_v45  ;;  %v626_v59 = vadd.f32 %v625_v51, %v624_v41  ;;  %v207_v48 = vld [vmem:[%s10639_s12] sm:$0xff]  ;;  %v208_v50 = vld [vmem:[%s10639_s12 + $0x8] sm:$0xff] }
 0x427   :  { %v9270_v51 = vpack.c.bf16 %v208_v50, %v207_v48 }
 0x428   :  { %v632_v56 = vrot.slane %v631_v55, 1  ;;  %v637_v57 = vrot.slane %v636_v52, 2  ;;  %v645_v17 = vsel %vm477_vm2, %v626_v59, %v619_v4  ;;  %v811_v43 = vpop.permute.xlu0 %810 }
 0x429   :  { %8180 = vmatpush3.bf16.msra.mxu1 %v9270_v51 }
 0x42a   :  { %v638_v27 = vadd.f32 %v637_v57, %v636_v52  ;;  %v633_v61 = vadd.f32 %v632_v56, %v631_v55  ;;  %8193 = vmatprep.subr.bf16.mxu1 %v10645_v1 }
 0x42c   :  { %v639_v14 = vrot.slane %v638_v27, 1  ;;  %v646_v15 = vsel %vm479_vm3, %v633_v61, %v645_v17  ;;  %v9292_v61 = vld [vmem:[%s10640_s13] ss:$0 sm:$0xff] }
 0x42e   :  { %v640_v16 = vadd.f32 %v639_v14, %v638_v27 }
 0x430   :  { %v647_v19 = vsel %vm481_vm4, %v640_v16, %v646_v15 }
 0x431   :  { %7714 = vmatmul.mubr.msk.f32.vlgmr.msra.gmra.mrb[6].mxu0 %vm91_vm1, %v647_v19 }
 0x432   :  { %8177 = vmatpush3.bf16.msra.mxu0 %v9236_v18  ;;  %7720 = vmatprep.mubr.msk.f32.mxu0 %vm8877_vm0, %v10647_v2 }
 0x433   :  { %8181 = vmatprep.subr.bf16.mxu0 %v10645_v1 }
 0x435   :  { %7721 = vmatmul.mubr.msk.f32.vlgmr.msra.gmra.mrb[8].mxu0 %vm91_vm1, %v286_v54 }
 0x436   :  { %8183 = vmatpush3.bf16.msra.mxu0 %v9148_v58  ;;  %7746 = vmatprep.mubr.msk.f32.mxu0 %vm8877_vm0, %v10647_v2 }
 0x437   :  { %8184 = vmatprep.subr.bf16.mxu0 %v10645_v1 }
 0x43a   :  { %8186 = vmatpush3.bf16.msra.mxu0 %v9154_v60 }
 0x43b   :  { %8187 = vmatprep.subr.bf16.mxu0 %v10645_v1 }
 0x43e   :  { %8189 = vmatpush3.bf16.msra.mxu0 %v9164_v63 }
 0x43f   :  { %8190 = vmatprep.subr.bf16.mxu0 %v10645_v1 }
 0x442   :  { %8192 = vmatpush3.bf16.msra.mxu0 %v9174_v7 }
 0x443   :  { %8205 = vmatprep.subr.bf16.mxu0 %v10645_v1 }
 0x504   :  { %v716_v54 = vpop.f32.mrb[6].mxu0 }
 0x505   :  { %v7715_v20 = vpop.f32.mrb[7].mxu0 }
 0x508   :  { %v789_v23 = vpop.f32.mrb[8].mxu0 }
 0x509   :  { %v790_v26 = vadd.f32 %v789_v23, %v716_v54  ;;  %v7722_v28 = vpop.f32.mrb[9].mxu0 }
 0x50b   :  { %v799_v29 = vadd.f32 %v9259_v22, %v790_v26 }
 0x50d   :  { %v803_v35 = vadd.f32 %v801_v33, %v799_v29 }
 0x50f   :  { %v7382_v36 = vmul.f32 -1.442695, %v803_v35 }
 0x511   :  { %8438 = vpow2.f32 %v7382_v36 }
 0x51b   :  { %v8439_v40 = vpop.eup %8438 }
 0x51c   :  { %v807_v41 = vadd.f32 1.0, %v8439_v40 }
 0x51e   :  { %8440 = vrcp.f32 %v807_v41 }
 0x528   :  { %v8441_v42 = vpop.eup %8440 }
 0x529   :  { %v813_v45 = vmul.f32 %v8441_v42, %v811_v43  ;;  %v820_v52 = vsub.f32 1.0, %v8441_v42 }
 0x52b   :  { %815 = vrot.lane.b32.xlu0 %v813_v45, %s8883_s22 }
 0x52f   :  { %826 = vrot.lane.b32.xlu0 %v9051_v13, %s8884_s23 }
 0x59d   :  { %v816_v46 = vpop.permute.xlu0 %815 }
 0x59e   :  { %v818_v47 = vadd.f32 %v816_v46, %v799_v29 }
 0x5a0   :  { %8442 = vtanh.f32 %v818_v47 }
 0x5a1   :  { %v827_v13 = vpop.permute.xlu0 %826 }
 0x5a2   :  { %v829_v56 = vmul.f32 %v8441_v42, %v827_v13 }
 0x5aa   :  { %v8443_v55 = vpop.eup %8442 }
 0x5ab   :  { %822 = vrot.lane.b32.xlu1 %v8443_v55, %s8881_s2 }
 0x61d   :  { %v823_v21 = vpop.permute.xlu1 %822 }
 0x61e   :  { %v825_v57 = vmul.f32 %v823_v21, %v820_v52 }
 0x620   :  { %v9275_v59 = vadd.f32 %v829_v56, %v825_v57 }
 0x622   :  { %838 = vrot.lane.b32.xlu0 %v9275_v59, %s8881_s2 }
 0x694   :  { %v839_v27 = vpop.permute.xlu0 %838 }
 0x695   :  { %7728 = vmatmul.mubr.msk.f32.vlgmr.msra.gmra.mrb[2].mxu1 %vm91_vm1, %v839_v27 }
 0x696   :  { %8195 = vmatpush3.bf16.msra.mxu1 %v9028_v10  ;;  %7753 = vmatprep.mubr.msk.f32.mxu1 %vm8877_vm0, %v10647_v2 }
 0x697   :  { %8196 = vmatprep.subr.bf16.mxu1 %v10645_v1 }
 0x699   :  { %7754 = vmatmul.mubr.msk.f32.vlgmr.msra.gmra.mrb[4].mxu1 %vm91_vm1, %v839_v27 }
 0x69a   :  { %8198 = vmatpush3.bf16.msra.mxu1 %v9206_v53  ;;  %7760 = vmatprep.mubr.msk.f32.mxu1 %vm8877_vm0, %v10647_v2 }
 0x69b   :  { %8199 = vmatprep.subr.bf16.mxu1 %v10645_v1 }
 0x768   :  { %v908_v62 = vpop.f32.mrb[2].mxu1 }
 0x769   :  { %v9295_v0 = vadd.f32 %v9292_v61, %v908_v62  ;;  %v7729_v4 = vpop.f32.mrb[3].mxu1 }
 0x76b   :  { %v913_v14 = vsel %vm912_vm8, %v9295_v0, -inf }
 0x76c   :  { %914 = vmax.xlane.f32.xlu0 %v913_v14  ;;  %v1107_v16 = vpop.f32.mrb[4].mxu1 }
 0x76d   :  { %v9300_v17 = vadd.f32 %v9062_v24, %v1107_v16  ;;  %v7755_v15 = vpop.f32.mrb[5].mxu1 }
 0x76f   :  { %v1118_v19 = vrot.slane %v9300_v17, %v9065_v25 }
 0x771   :  { %v1119_v54 = vcombine.high %v1118_v19, %v1118_v19  ;;  %v1126_v20 = vrot.slane %v1118_v19, %v9065_v25 }
 0x773   :  { %v1133_v23 = vrot.slane %v1119_v54, %v9065_v25  ;;  %v1134_v26 = vcombine.high %v1126_v20, %v1126_v20  ;;  %v1139_v28 = vrot.slane %v1126_v20, %v9073_v30 }
 0x775   :  { %v1135_v29 = vcombine.high %v1133_v23, %v1133_v23  ;;  %v1143_v33 = vrot.slane %v1133_v23, %v9073_v30  ;;  %v1147_v35 = vrot.slane %v1134_v26, %v9073_v30  ;;  %v1156_v24 = vadd.f32 %v1139_v28, %v9079_v34 }
 0x777   :  { %v1151_v36 = vrot.slane %v1135_v29, %v9073_v30  ;;  %v1157_v40 = vadd.f32 %v1143_v33, %v9083_v38  ;;  %v1158_v41 = vadd.f32 %v1147_v35, %v9085_v39  ;;  %8444 = vtanh.f32 %v1156_v24 }
 0x779   :  { %8446 = vtanh.f32 %v1157_v40  ;;  %v1159_v42 = vadd.f32 %v1151_v36, %v9090_v44 }
 0x77a   :  { %8448 = vtanh.f32 %v1158_v41 }
 0x77b   :  { %8450 = vtanh.f32 %v1159_v42 }
 0x781   :  { %v8445_v43 = vpop.eup %8444 }
 0x782   :  { %v1164_v45 = vmul.f32 %v8445_v43, %v9096_v49 }
 0x783   :  { %v8447_v46 = vpop.eup %8446 }
 0x784   :  { %v8449_v47 = vpop.eup %8448  ;;  %v1168_v48 = vsel %vm91_vm1, %v1164_v45, 0.0  ;;  %v1165_v50 = vmul.f32 %v8447_v46, %v9096_v49 }
 0x785   :  { %1169 = vadd.xlane.f32.xlu1 %v1168_v48  ;;  %v1166_v13 = vmul.f32 %v8449_v47, %v9096_v49  ;;  %v8451_v52 = vpop.eup %8450 }
 0x786   :  { %v1171_v55 = vsel %vm91_vm1, %v1165_v50, 0.0  ;;  %v1167_v56 = vmul.f32 %v8451_v52, %v9096_v49 }
 0x787   :  { %1172 = vadd.xlane.f32.xlu0 %v1171_v55  ;;  %v1174_v21 = vsel %vm91_vm1, %v1166_v13, 0.0 }
 0x788   :  { %v1177_v57 = vsel %vm91_vm1, %v1167_v56, 0.0 }
 0x78b   :  { %1175 = vadd.xlane.f32.xlu0 %v1174_v21 }
 0x78f   :  { %1178 = vadd.xlane.f32.xlu0 %v1177_v57 }
 0x7f9   :  { %v9322_v27 = vpop.xlane.xlu0 %914 }
 0x7fa   :  { %vm948_vm9 = vcmp.eq.f32.partialorder %v9295_v0, %v9322_v27 }
 0x7fb   :  { %v949_v62 = vsel %vm948_vm9, %v9106_v3, 64 }
 0x7fc   :  { %v950_v4 = vsel %vm912_vm8, %v949_v62, 2147483647 }
 0x7fd   :  { %v952_v14 = vshra.s32 %v950_v4, 16  ;;  %v951_v43 = vand.u32 65535, %v950_v4 }
 0x7ff   :  { %v954_v16 = vcvt.s32.f32 %v952_v14  ;;  %v953_v46 = vcvt.s32.f32 %v951_v43 }
 0x801   :  { %955 = vmin.xlane.f32.xlu1 %v954_v16 }
 0x812   :  { %v1170_v19 = vpop.xlane.xlu1 %1169 }
 0x813   :  { %v1180_v20 = vadd.f32 %v1170_v19, %v9112_v8 }
 0x814   :  { %v1173_v15 = vpop.xlane.xlu0 %1172 }
 0x815   :  { %v1181_v49 = vadd.f32 %v1173_v15, %v9112_v8  ;;  %v1191_v33 = vrot.slane %v1180_v20, %v9110_v6 }
 0x817   :  { %v1195_v26 = vrot.slane %v1181_v49, %v9110_v6 }
 0x818   :  { %v1176_v54 = vpop.xlane.xlu0 %1175 }
 0x819   :  { %v1182_v23 = vadd.f32 %v1176_v54, %v9112_v8  ;;  %v1204_v36 = vsel %vm477_vm2, %v1195_v26, %v1191_v33 }
 0x81b   :  { %v1199_v28 = vrot.slane %v1182_v23, %v9110_v6 }
 0x81c   :  { %v1179_v29 = vpop.xlane.xlu0 %1178 }
 0x81d   :  { %v1183_v35 = vadd.f32 %v1179_v29, %v9112_v8  ;;  %v1205_v40 = vsel %vm479_vm3, %v1199_v28, %v1204_v36 }
 0x81f   :  { %v1203_v24 = vrot.slane %v1183_v35, %v9110_v6 }
 0x821   :  { %v1206_v41 = vsel %vm481_vm4, %v1203_v24, %v1205_v40 }
 0x822   :  { %v1208_v42 = vsel %vm484_vm5, %v1206_v41, -inf }
 0x823   :  { %1209 = vmax.xlane.f32.xlu0 %v1208_v42 }
 0x88e   :  { %v956_v45 = vpop.xlane.xlu1 %955 }
 0x88f   :  { %vm957_vm10 = vcmp.eq.f32.partialorder %v954_v16, %v956_v45 }
 0x890   :  { %v958_v47 = vsel %vm957_vm10, %v953_v46, inf }
 0x891   :  { %959 = vmin.xlane.f32.xlu1 %v958_v47 }
 0x8b0   :  { %v1210_v48 = vpop.xlane.xlu0 %1209 }
 0x8b1   :  { %v1215_v50 = vrot.slane %v1210_v48, %v9073_v30  ;;  %v1219_v55 = vrot.slane %v1210_v48, %v9127_v31  ;;  %v1223_v13 = vrot.slane %v1210_v48, %v9130_v32  ;;  %v1227_v52 = vrot.slane %v1210_v48, %v9135_v37 }
 0x8b3   :  { %v1232_v21 = vsub.f32 %v1180_v20, %v1215_v50  ;;  %v1233_v56 = vsub.f32 %v1181_v49, %v1219_v55  ;;  %v1235_v57 = vsub.f32 %v1183_v35, %v1227_v52  ;;  %v1234_v62 = vsub.f32 %v1182_v23, %v1223_v13 }
 0x8b4   :  { %v962_v20 = vcvt.f32.s32 %v956_v45 }
 0x8b5   :  { %v1236_v14 = vmul.f32 1.442695, %v1232_v21  ;;  %v1238_v4 = vmul.f32 1.442695, %v1233_v56  ;;  %v1242_v15 = vmul.f32 1.442695, %v1235_v57 }
 0x8b6   :  { %v1240_v16 = vmul.f32 1.442695, %v1234_v62  ;;  %v963_v29 = vshll.u32 %v962_v20, 16 }
 0x8b7   :  { %8452 = vpow2.f32 %v1236_v14 }
 0x8b8   :  { %8454 = vpow2.f32 %v1238_v4 }
 0x8b9   :  { %8456 = vpow2.f32 %v1242_v15 }
 0x8ba   :  { %8458 = vpow2.f32 %v1240_v16 }
 0x8c1   :  { %v8453_v19 = vpop.eup %8452 }
 0x8c2   :  { %v8455_v54 = vpop.eup %8454  ;;  %1249 = vperm.xlu0 %8412, %v8453_v19  }
 0x8c3   :  { %1252 = vperm.xlu1 %8413, %v8455_v54   ;;  %v8457_v26 = vpop.eup %8456 }
 0x8c4   :  { %v8459_v28 = vpop.eup %8458 }
 0x8c6   :  { %1258 = vperm.xlu0 %8412, %v8457_v26  }
 0x8c7   :  { %1255 = vperm.xlu1 %8413, %v8459_v28  }
 0x91e   :  { %v960_v49 = vpop.xlane.xlu1 %959 }
 0x91f   :  { %v961_v23 = vcvt.f32.s32 %v960_v49 }
 0x921   :  { %v964_v33 = vadd.s32 %v963_v29, %v961_v23 }
 0x923   :  { %vm965_vm11 = vcmp.eq.s32.totalorder %v9106_v3, %v964_v33 }
 0x924   :  { %v7385_v35 = vsel %vm965_vm11, 1.0, %v10647_v2 }
 0x925   :  { %7747 = vmatmul.mubr.msk.f32.vlgmr.msra.gmra.mrb[10].mxu0 %vm216_vm7, %v7385_v35 }
 0x926   :  { %8207 = vmatpush3.bf16.msra.mxu0 %v9148_v58  ;;  %7793 = vmatprep.mubr.msk.f32.mxu0 %vm8877_vm0, %v10647_v2 }
 0x927   :  { %8208 = vmatprep.subr.bf16.mxu0 %v10645_v1 }
 0x92a   :  { %8210 = vmatpush3.bf16.msra.mxu0 %v9154_v60 }
 0x92b   :  { %8211 = vmatprep.subr.bf16.mxu0 %v10645_v1 }
 0x92e   :  { %8213 = vmatpush3.bf16.msra.mxu0 %v9164_v63 }
 0x92f   :  { %8214 = vmatprep.subr.bf16.mxu0 %v10645_v1 }
 0x932   :  { %8216 = vmatpush3.bf16.msra.mxu0 %v9174_v7 }
 0x933   :  { %8229 = vmatprep.subr.bf16.mxu0 %v10645_v1 }
 0x941   :  { %v1250_v24 = vpop.permute.xlu0 %1249 }
 0x942   :  { %v1253_v36 = vpop.permute.xlu1 %1252  ;;  %v1263_v41 = vrot.slane %v1250_v24, %v9110_v6 }
 0x943   :  { %v1267_v40 = vrot.slane %v1253_v36, %v9110_v6 }
 0x945   :  { %v1259_v42 = vpop.permute.xlu0 %1258  ;;  %v1276_v47 = vsel %vm477_vm2, %v1267_v40, %v1263_v41 }
 0x946   :  { %v1256_v43 = vpop.permute.xlu1 %1255  ;;  %v1275_v45 = vrot.slane %v1259_v42, %v9110_v6 }
 0x947   :  { %v1271_v46 = vrot.slane %v1256_v43, %v9110_v6 }
 0x949   :  { %v1277_v48 = vsel %vm479_vm3, %v1271_v46, %v1276_v47 }
 0x94a   :  { %v1278_v50 = vsel %vm481_vm4, %v1275_v45, %v1277_v48 }
 0x94b   :  { %v1280_v55 = vsel %vm484_vm5, %v1278_v50, 0.0 }
 0x94c   :  { %1281 = vadd.xlane.f32.xlu1 %v1280_v55 }
 0x9d9   :  { %v1282_v13 = vpop.xlane.xlu1 %1281 }
 0x9da   :  { %v1287_v52 = vrot.slane %v1282_v13, %v9073_v30  ;;  %v1291_v21 = vrot.slane %v1282_v13, %v9127_v31  ;;  %v1295_v56 = vrot.slane %v1282_v13, %v9130_v32  ;;  %v1299_v57 = vrot.slane %v1282_v13, %v9135_v37 }
 0x9dc   :  { %8460 = vrcp.f32 %v1287_v52 }
 0x9dd   :  { %8462 = vrcp.f32 %v1291_v21 }
 0x9de   :  { %8464 = vrcp.f32 %v1295_v56 }
 0x9df   :  { %8466 = vrcp.f32 %v1299_v57 }
 0x9e6   :  { %v8461_v62 = vpop.eup %8460 }
 0x9e7   :  { %v1305_v14 = vmul.f32 %v8461_v62, %v8453_v19  ;;  %v8463_v4 = vpop.eup %8462 }
 0x9e8   :  { %v1307_v15 = vmul.f32 %v8463_v4, %v8455_v54  ;;  %v8465_v16 = vpop.eup %8464 }
 0x9e9   :  { %1314 = vperm.xlu0 %8412, %v1305_v14   ;;  %v1309_v20 = vmul.f32 %v8465_v16, %v8459_v28  ;;  %v8467_v49 = vpop.eup %8466 }
 0x9ea   :  { %v1311_v29 = vmul.f32 %v8467_v49, %v8457_v26 }
 0x9ed   :  { %1319 = vperm.xlu0 %8412, %v1307_v15  }
 0x9f1   :  { %1324 = vperm.xlu0 %8412, %v1309_v20  }
 0x9f5   :  { %1329 = vperm.xlu0 %8412, %v1311_v29  }
 0x9f8   :  { %v1037_v23 = vpop.f32.mrb[10].mxu0 }
 0x9f9   :  { %1517 = vrot.lane.b32.xlu0 %v9300_v17, %s8881_s2  ;;  %v7748_v33 = vpop.f32.mrb[11].mxu0 }
 0x9fd   :  { %1527 = vrot.lane.b32.xlu0 %v9300_v17, %s8882_s0 }
 0xa68   :  { %v1315_v35 = vpop.permute.xlu0 %1314 }
 0xa69   :  { %v1332_v19 = vmul.f32 %v1315_v35, %v9013_v5  ;;  %v1638_v5 = vrot.slane %v1315_v35, %v9110_v6 }
 0xa6b   :  { %v1336_v54 = vsel %vm91_vm1, %v1332_v19, 0.0 }
 0xa6c   :  { %v1337_v24 = vrot.slane %v1336_v54, 4  ;;  %v1320_v36 = vpop.permute.xlu0 %1319 }
 0xa6d   :  { %v1333_v28 = vmul.f32 %v1320_v36, %v9026_v9  ;;  %v1642_v43 = vrot.slane %v1320_v36, %v9110_v6 }
 0xa6e   :  { %v1338_v40 = vadd.f32 %v1337_v24, %v1336_v54 }
 0xa6f   :  { %v1343_v26 = vsel %vm91_vm1, %v1333_v28, 0.0  ;;  %v1651_v13 = vsel %vm477_vm2, %v1642_v43, %v1638_v5 }
 0xa70   :  { %v1344_v41 = vrot.slane %v1343_v26, 4  ;;  %v1325_v42 = vpop.permute.xlu0 %1324  ;;  %v1339_v48 = vrot.slane %v1338_v40, 2 }
 0xa71   :  { %v1334_v45 = vmul.f32 %v1325_v42, %v9034_v11  ;;  %v1646_v17 = vrot.slane %v1325_v42, %v9110_v6 }
 0xa72   :  { %v1345_v46 = vadd.f32 %v1344_v41, %v1343_v26  ;;  %v1340_v4 = vadd.f32 %v1339_v48, %v1338_v40 }
 0xa73   :  { %v1350_v47 = vsel %vm91_vm1, %v1334_v45, 0.0  ;;  %v1652_v11 = vsel %vm479_vm3, %v1646_v17, %v1651_v13 }
 0xa74   :  { %v1346_v50 = vrot.slane %v1345_v46, 2  ;;  %v1351_v55 = vrot.slane %v1350_v47, 4  ;;  %v1330_v9 = vpop.permute.xlu0 %1329  ;;  %v1341_v29 = vrot.slane %v1340_v4, 1 }
 0xa75   :  { %v1335_v52 = vmul.f32 %v1330_v9, %v9044_v12  ;;  %v1650_v21 = vrot.slane %v1330_v9, %v9110_v6 }
 0xa76   :  { %v1347_v56 = vadd.f32 %v1346_v50, %v1345_v46  ;;  %v1352_v57 = vadd.f32 %v1351_v55, %v1350_v47  ;;  %v1342_v36 = vadd.f32 %v1341_v29, %v1340_v4 }
 0xa77   :  { %v1357_v62 = vsel %vm91_vm1, %v1335_v52, 0.0  ;;  %v1653_v14 = vsel %vm481_vm4, %v1650_v21, %v1652_v11 }
 0xa78   :  { %v1353_v15 = vrot.slane %v1352_v57, 2  ;;  %v1358_v16 = vrot.slane %v1357_v62, 4  ;;  %7392 = vst.msk [vmem:[%s10642_s15 + $0x4] sm:$0xf] %vm484_vm5, %v1653_v14  ;;  %v1348_v20 = vrot.slane %v1347_v56, 1  ;;  %v1518_v48 = vpop.permute.xlu0 %1517 }
 0xa7a   :  { %v1354_v12 = vadd.f32 %v1353_v15, %v1352_v57  ;;  %v1359_v49 = vadd.f32 %v1358_v16, %v1357_v62  ;;  %v1349_v19 = vadd.f32 %v1348_v20, %v1347_v56 }
 0xa7c   :  { %v1355_v33 = vrot.slane %v1354_v12, 1  ;;  %v1360_v35 = vrot.slane %v1359_v49, 2  ;;  %v1368_v40 = vsel %vm477_vm2, %v1349_v19, %v1342_v36  ;;  %v1528_v52 = vpop.permute.xlu0 %1527 }
 0xa7e   :  { %v1361_v54 = vadd.f32 %v1360_v35, %v1359_v49  ;;  %v1356_v24 = vadd.f32 %v1355_v33, %v1354_v12  ;;  %v9431_v35 = vld [vmem:[%s10631_s4] ss:$0 sm:$0xff] }
 0xa80   :  { %v1362_v28 = vrot.slane %v1361_v54, 1  ;;  %v1369_v41 = vsel %vm479_vm3, %v1356_v24, %v1368_v40 }
 0xa82   :  { %v1363_v26 = vadd.f32 %v1362_v28, %v1361_v54 }
 0xa84   :  { %v1370_v42 = vsel %vm481_vm4, %v1363_v26, %v1369_v41 }
 0xa85   :  { %7761 = vmatmul.mubr.msk.f32.vlgmr.msra.gmra.mrb[6].mxu1 %vm91_vm1, %v1370_v42 }
 0xa86   :  { %8201 = vmatpush3.bf16.msra.mxu1 %v9236_v18  ;;  %7767 = vmatprep.mubr.msk.f32.mxu1 %vm8877_vm0, %v10647_v2 }
 0xa87   :  { %8202 = vmatprep.subr.bf16.mxu1 %v10645_v1 }
 0xa89   :  { %7768 = vmatmul.mubr.msk.f32.vlgmr.msra.gmra.mrb[8].mxu1 %vm91_vm1, %v1037_v23 }
 0xa8a   :  { %8204 = vmatpush3.bf16.msra.mxu1 %v9270_v51  ;;  %7774 = vmatprep.mubr.msk.f32.mxu1 %vm8877_vm0, %v10647_v2 }
 0xa8b   :  { %8217 = vmatprep.subr.bf16.mxu1 %v10645_v1 }
 0xb58   :  { %v1439_v43 = vpop.f32.mrb[6].mxu1 }
 0xb59   :  { %v7762_v45 = vpop.f32.mrb[7].mxu1 }
 0xb5c   :  { %v1512_v46 = vpop.f32.mrb[8].mxu1 }
 0xb5d   :  { %v1513_v17 = vadd.f32 %v1512_v46, %v1439_v43  ;;  %v7769_v5 = vpop.f32.mrb[9].mxu1 }
 0xb5f   :  { %v1516_v47 = vadd.f32 %v9259_v22, %v1513_v17 }
 0xb61   :  { %v1520_v50 = vadd.f32 %v1518_v48, %v1516_v47 }
 0xb63   :  { %v7390_v55 = vmul.f32 -1.442695, %v1520_v50 }
 0xb65   :  { %8468 = vpow2.f32 %v7390_v55  ;;  %v9448_v55 = vld [vmem:[#allocation6] ss:$0 sm:$0xff] }
 0xb6f   :  { %v8469_v9 = vpop.eup %8468 }
 0xb70   :  { %v1524_v23 = vadd.f32 1.0, %v8469_v9 }
 0xb72   :  { %8470 = vrcp.f32 %v1524_v23 }
 0xb7c   :  { %v8471_v13 = vpop.eup %8470 }
 0xb7d   :  { %v1530_v21 = vmul.f32 %v8471_v13, %v1528_v52  ;;  %v1537_v62 = vsub.f32 1.0, %v8471_v13  ;;  %v1543_v4 = vmul.f32 %v8471_v13, %v9275_v59 }
 0xb7f   :  { %1532 = vrot.lane.b32.xlu0 %v1530_v21, %s8883_s22 }
 0xbf1   :  { %v1533_v56 = vpop.permute.xlu0 %1532 }
 0xbf2   :  { %v1535_v57 = vadd.f32 %v1533_v56, %v1516_v47 }
 0xbf4   :  { %8472 = vtanh.f32 %v1535_v57 }
 0xbfe   :  { %v8473_v11 = vpop.eup %8472 }
 0xbff   :  { %1539 = vrot.lane.b32.xlu0 %v8473_v11, %s8881_s2 }
 0xc71   :  { %v1540_v14 = vpop.permute.xlu0 %1539 }
 0xc72   :  { %v1542_v15 = vmul.f32 %v1540_v14, %v1537_v62 }
 0xc74   :  { %v9409_v16 = vadd.f32 %v1543_v4, %v1542_v15 }
 0xc76   :  { %1546 = vrot.lane.b32.xlu0 %v9409_v16, %s8881_s2 }
 0xce8   :  { %v1547_v20 = vpop.permute.xlu0 %1546 }
 0xce9   :  { %7775 = vmatmul.mubr.msk.f32.vlgmr.msra.gmra.mrb[10].mxu1 %vm91_vm1, %v1547_v20 }
 0xcea   :  { %8219 = vmatpush3.bf16.msra.mxu1 %v9028_v10  ;;  %7800 = vmatprep.mubr.msk.f32.mxu1 %vm8877_vm0, %v10647_v2 }
 0xceb   :  { %8220 = vmatprep.subr.bf16.mxu1 %v10645_v1 }
 0xced   :  { %7801 = vmatmul.mubr.msk.f32.vlgmr.msra.gmra.mrb[12].mxu1 %vm91_vm1, %v1547_v20 }
 0xcee   :  { %8222 = vmatpush3.bf16.msra.mxu1 %v9206_v53  ;;  %7807 = vmatprep.mubr.msk.f32.mxu1 %vm8877_vm0, %v10647_v2 }
 0xcef   :  { %8223 = vmatprep.subr.bf16.mxu1 %v10645_v1 }
 0xdbc   :  { %v1616_v59 = vpop.f32.mrb[10].mxu1 }
 0xdbd   :  { %v9424_v12 = vadd.f32 %v9292_v61, %v1616_v59  ;;  %v7776_v49 = vpop.f32.mrb[11].mxu1 }
 0xdbf   :  { %v1620_v29 = vsel %vm912_vm8, %v9424_v12, -inf }
 0xdc0   :  { %1621 = vmax.xlane.f32.xlu1 %v1620_v29  ;;  %v1816_v33 = vpop.f32.mrb[12].mxu1 }
 0xdc1   :  { %v9434_v19 = vadd.f32 %v9431_v35, %v1816_v33  ;;  %v7802_v54 = vpop.f32.mrb[13].mxu1 }
 0xdc3   :  { %v1827_v24 = vrot.slane %v9434_v19, %v9065_v25 }
 0xdc5   :  { %v1828_v36 = vcombine.high %v1827_v24, %v1827_v24  ;;  %v1835_v28 = vrot.slane %v1827_v24, %v9065_v25 }
 0xdc7   :  { %v1842_v26 = vrot.slane %v1828_v36, %v9065_v25  ;;  %v1843_v40 = vcombine.high %v1835_v28, %v1835_v28  ;;  %v1848_v41 = vrot.slane %v1835_v28, %v9073_v30 }
 0xdc9   :  { %v1844_v42 = vcombine.high %v1842_v26, %v1842_v26  ;;  %v1852_v43 = vrot.slane %v1842_v26, %v9073_v30  ;;  %v1856_v45 = vrot.slane %v1843_v40, %v9073_v30  ;;  %v1865_v46 = vadd.f32 %v1848_v41, %v9079_v34 }
 0xdcb   :  { %v1860_v17 = vrot.slane %v1844_v42, %v9073_v30  ;;  %v1866_v5 = vadd.f32 %v1852_v43, %v9083_v38  ;;  %v1867_v47 = vadd.f32 %v1856_v45, %v9085_v39  ;;  %8474 = vtanh.f32 %v1865_v46 }
 0xdcd   :  { %8476 = vtanh.f32 %v1866_v5  ;;  %v1868_v48 = vadd.f32 %v1860_v17, %v9090_v44 }
 0xdce   :  { %8478 = vtanh.f32 %v1867_v47 }
 0xdcf   :  { %8480 = vtanh.f32 %v1868_v48 }
 0xdd5   :  { %v8475_v50 = vpop.eup %8474 }
 0xdd6   :  { %v1873_v9 = vmul.f32 %v9448_v55, %v8475_v50 }
 0xdd7   :  { %v8477_v23 = vpop.eup %8476 }
 0xdd8   :  { %v8479_v13 = vpop.eup %8478  ;;  %v1877_v52 = vsel %vm91_vm1, %v1873_v9, 0.0  ;;  %v1874_v21 = vmul.f32 %v9448_v55, %v8477_v23 }
 0xdd9   :  { %1878 = vadd.xlane.f32.xlu0 %v1877_v52  ;;  %v1875_v57 = vmul.f32 %v9448_v55, %v8479_v13  ;;  %v8481_v11 = vpop.eup %8480 }
 0xdda   :  { %v1880_v56 = vsel %vm91_vm1, %v1874_v21, 0.0  ;;  %v1876_v14 = vmul.f32 %v9448_v55, %v8481_v11 }
 0xddb   :  { %1881 = vadd.xlane.f32.xlu1 %v1880_v56  ;;  %v1883_v62 = vsel %vm91_vm1, %v1875_v57, 0.0 }
 0xddc   :  { %v1886_v4 = vsel %vm91_vm1, %v1876_v14, 0.0 }
 0xddf   :  { %1884 = vadd.xlane.f32.xlu1 %v1883_v62 }
 0xde3   :  { %1887 = vadd.xlane.f32.xlu1 %v1886_v4 }
 0xe4d   :  { %v9458_v15 = vpop.xlane.xlu1 %1621 }
 0xe4e   :  { %vm1657_vm12 = vcmp.eq.f32.partialorder %v9424_v12, %v9458_v15 }
 0xe4f   :  { %v1658_v20 = vsel %vm1657_vm12, %v9106_v3, 64 }
 0xe50   :  { %v1659_v59 = vsel %vm912_vm8, %v1658_v20, 2147483647 }
 0xe51   :  { %v1661_v49 = vshra.s32 %v1659_v59, 16  ;;  %v1660_v50 = vand.u32 65535, %v1659_v59 }
 0xe53   :  { %v1663_v29 = vcvt.s32.f32 %v1661_v49  ;;  %v1662_v23 = vcvt.s32.f32 %v1660_v50 }
 0xe55   :  { %1664 = vmin.xlane.f32.xlu1 %v1663_v29 }
 0xe66   :  { %v1879_v54 = vpop.xlane.xlu0 %1878 }
 0xe67   :  { %v1889_v28 = vadd.f32 %v1879_v54, %v9112_v8 }
 0xe68   :  { %v1882_v33 = vpop.xlane.xlu1 %1881 }
 0xe69   :  { %v1890_v24 = vadd.f32 %v1882_v33, %v9112_v8  ;;  %v1900_v43 = vrot.slane %v1889_v28, %v9110_v6 }
 0xe6b   :  { %v1904_v40 = vrot.slane %v1890_v24, %v9110_v6 }
 0xe6c   :  { %v1885_v36 = vpop.xlane.xlu1 %1884 }
 0xe6d   :  { %v1891_v26 = vadd.f32 %v1885_v36, %v9112_v8  ;;  %v1913_v17 = vsel %vm477_vm2, %v1904_v40, %v1900_v43 }
 0xe6f   :  { %v1908_v41 = vrot.slane %v1891_v26, %v9110_v6 }
 0xe70   :  { %v1888_v42 = vpop.xlane.xlu1 %1887 }
 0xe71   :  { %v1892_v45 = vadd.f32 %v1888_v42, %v9112_v8  ;;  %v1914_v5 = vsel %vm479_vm3, %v1908_v41, %v1913_v17 }
 0xe73   :  { %v1912_v46 = vrot.slane %v1892_v45, %v9110_v6 }
 0xe75   :  { %v1915_v47 = vsel %vm481_vm4, %v1912_v46, %v1914_v5 }
 0xe76   :  { %v1917_v48 = vsel %vm484_vm5, %v1915_v47, -inf }
 0xe77   :  { %1918 = vmax.xlane.f32.xlu1 %v1917_v48 }
 0xee2   :  { %v1665_v9 = vpop.xlane.xlu1 %1664 }
 0xee3   :  { %vm1666_vm13 = vcmp.eq.f32.partialorder %v1663_v29, %v1665_v9 }
 0xee4   :  { %v1667_v13 = vsel %vm1666_vm13, %v1662_v23, inf }
 0xee5   :  { %1668 = vmin.xlane.f32.xlu1 %v1667_v13 }
 0xf04   :  { %v1919_v52 = vpop.xlane.xlu1 %1918 }
 0xf05   :  { %v1924_v21 = vrot.slane %v1919_v52, %v9073_v30  ;;  %v1928_v56 = vrot.slane %v1919_v52, %v9127_v31  ;;  %v1932_v57 = vrot.slane %v1919_v52, %v9130_v32  ;;  %v1936_v11 = vrot.slane %v1919_v52, %v9135_v37 }
 0xf07   :  { %v1941_v62 = vsub.f32 %v1889_v28, %v1924_v21  ;;  %v1942_v14 = vsub.f32 %v1890_v24, %v1928_v56  ;;  %v1943_v4 = vsub.f32 %v1891_v26, %v1932_v57  ;;  %v1944_v59 = vsub.f32 %v1892_v45, %v1936_v11 }
 0xf08   :  { %v1671_v28 = vcvt.f32.s32 %v1665_v9 }
 0xf09   :  { %v1945_v20 = vmul.f32 1.442695, %v1941_v62  ;;  %v1947_v49 = vmul.f32 1.442695, %v1942_v14  ;;  %v1949_v33 = vmul.f32 1.442695, %v1943_v4 }
 0xf0a   :  { %v1951_v29 = vmul.f32 1.442695, %v1944_v59  ;;  %v1672_v26 = vshll.u32 %v1671_v28, 16 }
 0xf0b   :  { %8482 = vpow2.f32 %v1945_v20 }
 0xf0c   :  { %8484 = vpow2.f32 %v1947_v49 }
 0xf0d   :  { %8486 = vpow2.f32 %v1949_v33 }
 0xf0e   :  { %8488 = vpow2.f32 %v1951_v29 }
 0xf15   :  { %v8483_v54 = vpop.eup %8482 }
 0xf16   :  { %v8485_v36 = vpop.eup %8484  ;;  %1958 = vperm.xlu1 %8413, %v8483_v54  }
 0xf17   :  { %1961 = vperm.xlu0 %8412, %v8485_v36   ;;  %v8487_v40 = vpop.eup %8486 }
 0xf18   :  { %v8489_v41 = vpop.eup %8488 }
 0xf1a   :  { %1964 = vperm.xlu1 %8413, %v8487_v40  }
 0xf1e   :  { %1967 = vperm.xlu1 %8413, %v8489_v41  }
 0xf72   :  { %v1669_v24 = vpop.xlane.xlu1 %1668 }
 0xf73   :  { %v1670_v42 = vcvt.f32.s32 %v1669_v24 }
 0xf75   :  { %v1673_v43 = vadd.s32 %v1672_v26, %v1670_v42 }
 0xf77   :  { %vm1674_vm14 = vcmp.eq.s32.totalorder %v9106_v3, %v1673_v43 }
 0xf78   :  { %v7393_v45 = vsel %vm1674_vm14, 1.0, %v10647_v2 }
 0xf79   :  { %7794 = vmatmul.mubr.msk.f32.vlgmr.msra.gmra.mrb[12].mxu0 %vm216_vm7, %v7393_v45 }
 0xf7a   :  { %8231 = vmatpush3.bf16.msra.mxu0 %v9148_v58  ;;  %7840 = vmatprep.mubr.msk.f32.mxu0 %vm8877_vm0, %v10647_v2 }
 0xf7b   :  { %8232 = vmatprep.subr.bf16.mxu0 %v10645_v1 }
 0xf7e   :  { %8234 = vmatpush3.bf16.msra.mxu0 %v9154_v60 }
 0xf7f   :  { %8235 = vmatprep.subr.bf16.mxu0 %v10645_v1 }
 0xf82   :  { %8237 = vmatpush3.bf16.msra.mxu0 %v9164_v63 }
 0xf83   :  { %8238 = vmatprep.subr.bf16.mxu0 %v10645_v1 }
 0xf86   :  { %8240 = vmatpush3.bf16.msra.mxu0 %v9174_v7 }
 0xf87   :  { %8253 = vmatprep.subr.bf16.mxu0 %v10645_v1 }
 0xf95   :  { %v1959_v46 = vpop.permute.xlu1 %1958 }
 0xf96   :  { %v1962_v17 = vpop.permute.xlu0 %1961  ;;  %v1972_v48 = vrot.slane %v1959_v46, %v9110_v6 }
 0xf97   :  { %v1976_v47 = vrot.slane %v1962_v17, %v9110_v6  ;;  %v9519_v17 = vld [vmem:[%s10654_s20 + $0x8] sm:$0xff] }
 0xf99   :  { %v1965_v5 = vpop.permute.xlu1 %1964  ;;  %v1985_v13 = vsel %vm477_vm2, %v1976_v47, %v1972_v48 }
 0xf9a   :  { %v1980_v50 = vrot.slane %v1965_v5, %v9110_v6 }
 0xf9c   :  { %v1986_v52 = vsel %vm479_vm3, %v1980_v50, %v1985_v13 }
 0xf9d   :  { %v1968_v9 = vpop.permute.xlu1 %1967 }
 0xf9e   :  { %v1984_v23 = vrot.slane %v1968_v9, %v9110_v6 }
 0xfa0   :  { %v1987_v21 = vsel %vm481_vm4, %v1984_v23, %v1986_v52  ;;  %v9527_v23 = vld [vmem:[%s10654_s20 + $0x10] sm:$0xff] }
 0xfa1   :  { %v1989_v56 = vsel %vm484_vm5, %v1987_v21, 0.0 }
 0xfa2   :  { %1990 = vadd.xlane.f32.xlu1 %v1989_v56 }
0x102f   :  { %v1991_v57 = vpop.xlane.xlu1 %1990 }
0x1030   :  { %v1996_v11 = vrot.slane %v1991_v57, %v9073_v30  ;;  %v2000_v62 = vrot.slane %v1991_v57, %v9127_v31  ;;  %v2004_v14 = vrot.slane %v1991_v57, %v9130_v32  ;;  %v2008_v4 = vrot.slane %v1991_v57, %v9135_v37 }
0x1032   :  { %8490 = vrcp.f32 %v1996_v11 }
0x1033   :  { %8492 = vrcp.f32 %v2000_v62 }
0x1034   :  { %8494 = vrcp.f32 %v2004_v14 }
0x1035   :  { %8496 = vrcp.f32 %v2008_v4 }
0x103c   :  { %v8491_v20 = vpop.eup %8490 }
0x103d   :  { %v2014_v49 = vmul.f32 %v8491_v20, %v8483_v54  ;;  %v8493_v59 = vpop.eup %8492  ;;  %v9512_v54 = vld [vmem:[%s10654_s20] sm:$0xff] }
0x103e   :  { %v2016_v33 = vmul.f32 %v8493_v59, %v8485_v36  ;;  %v8495_v29 = vpop.eup %8494 }
0x103f   :  { %2023 = vperm.xlu0 %8412, %v2014_v49   ;;  %v2018_v28 = vmul.f32 %v8495_v29, %v8487_v40  ;;  %v8497_v24 = vpop.eup %8496  ;;  %v9537_v49 = vld [vmem:[%s10654_s20 + $0x18] sm:$0xff] }
0x1040   :  { %v2020_v26 = vmul.f32 %v8497_v24, %v8489_v41 }
0x1043   :  { %2028 = vperm.xlu0 %8412, %v2016_v33  }
0x1047   :  { %2033 = vperm.xlu0 %8412, %v2018_v28  }
0x104b   :  { %2038 = vperm.xlu0 %8412, %v2020_v26  }
0x104c   :  { %v1746_v42 = vpop.f32.mrb[12].mxu0 }
0x104d   :  { %v7795_v43 = vpop.f32.mrb[13].mxu0 }
0x104f   :  { %2226 = vrot.lane.b32.xlu0 %v9434_v19, %s8881_s2 }
0x1053   :  { %2236 = vrot.lane.b32.xlu0 %v9434_v19, %s8882_s0 }
0x10be   :  { %v2024_v45 = vpop.permute.xlu0 %2023 }
0x10bf   :  { %v2041_v36 = vmul.f32 %v9512_v54, %v2024_v45  ;;  %v2347_v56 = vrot.slane %v2024_v45, %v9110_v6 }
0x10c1   :  { %v2045_v40 = vsel %vm91_vm1, %v2041_v36, 0.0 }
0x10c2   :  { %v2046_v41 = vrot.slane %v2045_v40, 4  ;;  %v2029_v46 = vpop.permute.xlu0 %2028 }
0x10c3   :  { %v2042_v5 = vmul.f32 %v9519_v17, %v2029_v46  ;;  %v2351_v9 = vrot.slane %v2029_v46, %v9110_v6 }
0x10c4   :  { %v2047_v47 = vadd.f32 %v2046_v41, %v2045_v40 }
0x10c5   :  { %v2052_v19 = vsel %vm91_vm1, %v2042_v5, 0.0  ;;  %v2360_v20 = vsel %vm477_vm2, %v2351_v9, %v2347_v56 }
0x10c6   :  { %v2053_v48 = vrot.slane %v2052_v19, 4  ;;  %v2034_v50 = vpop.permute.xlu0 %2033  ;;  %v2048_v11 = vrot.slane %v2047_v47, 2 }
0x10c7   :  { %v2043_v13 = vmul.f32 %v9527_v23, %v2034_v50  ;;  %v2355_v21 = vrot.slane %v2034_v50, %v9110_v6 }
0x10c8   :  { %v2054_v52 = vadd.f32 %v2053_v48, %v2052_v19  ;;  %v2049_v45 = vadd.f32 %v2048_v11, %v2047_v47 }
0x10c9   :  { %v2059_v57 = vsel %vm91_vm1, %v2043_v13, 0.0  ;;  %v2361_v24 = vsel %vm479_vm3, %v2355_v21, %v2360_v20 }
0x10ca   :  { %v2055_v62 = vrot.slane %v2054_v52, 2  ;;  %v2060_v14 = vrot.slane %v2059_v57, 4  ;;  %v2039_v4 = vpop.permute.xlu0 %2038  ;;  %v2050_v19 = vrot.slane %v2049_v45, 1 }
0x10cb   :  { %v2044_v59 = vmul.f32 %v9537_v49, %v2039_v4  ;;  %v2359_v33 = vrot.slane %v2039_v4, %v9110_v6 }
0x10cc   :  { %v2056_v29 = vadd.f32 %v2055_v62, %v2054_v52  ;;  %v2061_v28 = vadd.f32 %v2060_v14, %v2059_v57  ;;  %v2051_v21 = vadd.f32 %v2050_v19, %v2049_v45 }
0x10cd   :  { %v2066_v26 = vsel %vm91_vm1, %v2044_v59, 0.0  ;;  %v2362_v43 = vsel %vm481_vm4, %v2359_v33, %v2361_v24 }
0x10ce   :  { %v2062_v36 = vrot.slane %v2061_v28, 2  ;;  %v2067_v40 = vrot.slane %v2066_v26, 4  ;;  %7400 = vst.msk [vmem:[%s10642_s15 + $0x8] sm:$0xf] %vm484_vm5, %v2362_v43  ;;  %v2057_v41 = vrot.slane %v2056_v29, 1 }
0x10d0   :  { %v2063_v46 = vadd.f32 %v2062_v36, %v2061_v28  ;;  %v2068_v5 = vadd.f32 %v2067_v40, %v2066_v26  ;;  %v2058_v9 = vadd.f32 %v2057_v41, %v2056_v29  ;;  %v2227_v28 = vpop.permute.xlu0 %2226 }
0x10d2   :  { %v2064_v48 = vrot.slane %v2063_v46, 1  ;;  %v2069_v50 = vrot.slane %v2068_v5, 2  ;;  %v2077_v47 = vsel %vm477_vm2, %v2058_v9, %v2051_v21 }
0x10d4   :  { %v2070_v13 = vadd.f32 %v2069_v50, %v2068_v5  ;;  %v2065_v52 = vadd.f32 %v2064_v48, %v2063_v46  ;;  %v2237_v36 = vpop.permute.xlu0 %2236 }
0x10d6   :  { %v2071_v56 = vrot.slane %v2070_v13, 1  ;;  %v2078_v11 = vsel %vm479_vm3, %v2065_v52, %v2077_v47 }
0x10d8   :  { %v2072_v57 = vadd.f32 %v2071_v56, %v2070_v13 }
0x10da   :  { %v2079_v62 = vsel %vm481_vm4, %v2072_v57, %v2078_v11 }
0x10db   :  { %7808 = vmatmul.mubr.msk.f32.vlgmr.msra.gmra.mrb[14].mxu1 %vm91_vm1, %v2079_v62 }
0x10dc   :  { %8225 = vmatpush3.bf16.msra.mxu1 %v9236_v18  ;;  %7814 = vmatprep.mubr.msk.f32.mxu1 %vm8877_vm0, %v10647_v2 }
0x10dd   :  { %8226 = vmatprep.subr.bf16.mxu1 %v10645_v1 }
0x10df   :  { %7815 = vmatmul.mubr.msk.f32.vlgmr.msra.gmra.mrb[16].mxu1 %vm91_vm1, %v1746_v42 }
0x10e0   :  { %8228 = vmatpush3.bf16.msra.mxu1 %v9270_v51  ;;  %7821 = vmatprep.mubr.msk.f32.mxu1 %vm8877_vm0, %v10647_v2 }
0x10e1   :  { %8241 = vmatprep.subr.bf16.mxu1 %v10645_v1 }
0x11ae   :  { %v2148_v14 = vpop.f32.mrb[14].mxu1 }
0x11af   :  { %v7809_v4 = vpop.f32.mrb[15].mxu1 }
0x11b2   :  { %v2221_v20 = vpop.f32.mrb[16].mxu1 }
0x11b3   :  { %v2222_v59 = vadd.f32 %v2221_v20, %v2148_v14  ;;  %v7816_v33 = vpop.f32.mrb[17].mxu1 }
0x11b5   :  { %v2225_v29 = vadd.f32 %v9259_v22, %v2222_v59 }
0x11b7   :  { %v2229_v24 = vadd.f32 %v2227_v28, %v2225_v29 }
0x11b9   :  { %v7398_v26 = vmul.f32 -1.442695, %v2229_v24 }
0x11bb   :  { %8498 = vpow2.f32 %v7398_v26 }
0x11c5   :  { %v8499_v43 = vpop.eup %8498 }
0x11c6   :  { %v2233_v42 = vadd.f32 1.0, %v8499_v43 }
0x11c8   :  { %8500 = vrcp.f32 %v2233_v42 }
0x11d2   :  { %v8501_v45 = vpop.eup %8500 }
0x11d3   :  { %v2239_v40 = vmul.f32 %v8501_v45, %v2237_v36  ;;  %v2246_v19 = vsub.f32 1.0, %v8501_v45  ;;  %v2252_v48 = vmul.f32 %v8501_v45, %v9409_v16 }
0x11d5   :  { %2241 = vrot.lane.b32.xlu0 %v2239_v40, %s8883_s22 }
0x1247   :  { %v2242_v41 = vpop.permute.xlu0 %2241 }
0x1248   :  { %v2244_v46 = vadd.f32 %v2242_v41, %v2225_v29 }
0x124a   :  { %8502 = vtanh.f32 %v2244_v46 }
0x1254   :  { %v8503_v5 = vpop.eup %8502 }
0x1255   :  { %2248 = vrot.lane.b32.xlu0 %v8503_v5, %s8881_s2 }
0x12c7   :  { %v2249_v22 = vpop.permute.xlu0 %2248 }
0x12c8   :  { %v2251_v50 = vmul.f32 %v2249_v22, %v2246_v19 }
0x12ca   :  { %v9565_v9 = vadd.f32 %v2252_v48, %v2251_v50 }
0x12cc   :  { %2255 = vrot.lane.b32.xlu0 %v9565_v9, %s8881_s2 }
0x133e   :  { %v2256_v13 = vpop.permute.xlu0 %2255 }
0x133f   :  { %7822 = vmatmul.mubr.msk.f32.vlgmr.msra.gmra.mrb[18].mxu1 %vm91_vm1, %v2256_v13 }
0x1340   :  { %8243 = vmatpush3.bf16.msra.mxu1 %v9028_v10  ;;  %7847 = vmatprep.mubr.msk.f32.mxu1 %vm8877_vm0, %v10647_v2 }
0x1341   :  { %8244 = vmatprep.subr.bf16.mxu1 %v10645_v1 }
0x1343   :  { %7848 = vmatmul.mubr.msk.f32.vlgmr.msra.gmra.mrb[20].mxu1 %vm91_vm1, %v2256_v13 }
0x1344   :  { %8246 = vmatpush3.bf16.msra.mxu1 %v9206_v53  ;;  %7854 = vmatprep.mubr.msk.f32.mxu1 %vm8877_vm0, %v10647_v2 }
0x1345   :  { %8247 = vmatprep.subr.bf16.mxu1 %v10645_v1 }
0x1412   :  { %v2325_v16 = vpop.f32.mrb[18].mxu1 }
0x1413   :  { %v9580_v52 = vadd.f32 %v9292_v61, %v2325_v16  ;;  %v7823_v21 = vpop.f32.mrb[19].mxu1 }
0x1415   :  { %v2329_v56 = vsel %vm912_vm8, %v9580_v52, -inf }
0x1416   :  { %2330 = vmax.xlane.f32.xlu1 %v2329_v56  ;;  %v2525_v57 = vpop.f32.mrb[20].mxu1 }
0x1417   :  { %v9585_v47 = vadd.f32 %v9431_v35, %v2525_v57  ;;  %v7849_v11 = vpop.f32.mrb[21].mxu1 }
0x1419   :  { %v2536_v62 = vrot.slane %v9585_v47, %v9065_v25 }
0x141b   :  { %v2537_v14 = vcombine.high %v2536_v62, %v2536_v62  ;;  %v2544_v4 = vrot.slane %v2536_v62, %v9065_v25 }
0x141d   :  { %v2551_v20 = vrot.slane %v2537_v14, %v9065_v25  ;;  %v2552_v61 = vcombine.high %v2544_v4, %v2544_v4  ;;  %v2557_v59 = vrot.slane %v2544_v4, %v9073_v30 }
0x141f   :  { %v2553_v33 = vcombine.high %v2551_v20, %v2551_v20  ;;  %v2561_v29 = vrot.slane %v2551_v20, %v9073_v30  ;;  %v2565_v28 = vrot.slane %v2552_v61, %v9073_v30  ;;  %v2574_v24 = vadd.f32 %v2557_v59, %v9079_v34 }
0x1421   :  { %v2569_v26 = vrot.slane %v2553_v33, %v9073_v30  ;;  %v2575_v43 = vadd.f32 %v2561_v29, %v9083_v38  ;;  %v2576_v42 = vadd.f32 %v2565_v28, %v9085_v39  ;;  %8504 = vtanh.f32 %v2574_v24 }
0x1423   :  { %8506 = vtanh.f32 %v2575_v43  ;;  %v2577_v45 = vadd.f32 %v2569_v26, %v9090_v44 }
0x1424   :  { %8508 = vtanh.f32 %v2576_v42 }
0x1425   :  { %8510 = vtanh.f32 %v2577_v45 }
0x142b   :  { %v8505_v36 = vpop.eup %8504 }
0x142c   :  { %v2582_v40 = vmul.f32 %v9448_v55, %v8505_v36 }
0x142d   :  { %v8507_v41 = vpop.eup %8506 }
0x142e   :  { %v8509_v46 = vpop.eup %8508  ;;  %v2586_v5 = vsel %vm91_vm1, %v2582_v40, 0.0  ;;  %v2583_v19 = vmul.f32 %v9448_v55, %v8507_v41 }
0x142f   :  { %2587 = vadd.xlane.f32.xlu0 %v2586_v5  ;;  %v2584_v48 = vmul.f32 %v9448_v55, %v8509_v46  ;;  %v8511_v50 = vpop.eup %8510 }
0x1430   :  { %v2589_v22 = vsel %vm91_vm1, %v2583_v19, 0.0  ;;  %v2585_v16 = vmul.f32 %v9448_v55, %v8511_v50 }
0x1431   :  { %2590 = vadd.xlane.f32.xlu1 %v2589_v22  ;;  %v2592_v13 = vsel %vm91_vm1, %v2584_v48, 0.0 }
0x1432   :  { %v2595_v21 = vsel %vm91_vm1, %v2585_v16, 0.0 }
0x1435   :  { %2593 = vadd.xlane.f32.xlu1 %v2592_v13 }
0x1439   :  { %2596 = vadd.xlane.f32.xlu1 %v2595_v21 }
0x14a3   :  { %v9607_v56 = vpop.xlane.xlu1 %2330 }
0x14a4   :  { %vm2366_vm15 = vcmp.eq.f32.partialorder %v9580_v52, %v9607_v56 }
0x14a5   :  { %v2367_v57 = vsel %vm2366_vm15, %v9106_v3, 64 }
0x14a6   :  { %v2368_v11 = vsel %vm912_vm8, %v2367_v57, 2147483647 }
0x14a7   :  { %v2370_v62 = vshra.s32 %v2368_v11, 16  ;;  %v2369_v5 = vand.u32 65535, %v2368_v11 }
0x14a9   :  { %v2372_v14 = vcvt.s32.f32 %v2370_v62  ;;  %v2371_v22 = vcvt.s32.f32 %v2369_v5 }
0x14ab   :  { %2373 = vmin.xlane.f32.xlu1 %v2372_v14 }
0x14bc   :  { %v2588_v20 = vpop.xlane.xlu0 %2587 }
0x14bd   :  { %v2598_v33 = vadd.f32 %v2588_v20, %v9112_v8 }
0x14be   :  { %v2591_v4 = vpop.xlane.xlu1 %2590 }
0x14bf   :  { %v2599_v61 = vadd.f32 %v2591_v4, %v9112_v8  ;;  %v2609_v43 = vrot.slane %v2598_v33, %v9110_v6 }
0x14c1   :  { %v2613_v28 = vrot.slane %v2599_v61, %v9110_v6 }
0x14c2   :  { %v2594_v59 = vpop.xlane.xlu1 %2593 }
0x14c3   :  { %v2600_v29 = vadd.f32 %v2594_v59, %v9112_v8  ;;  %v2622_v36 = vsel %vm477_vm2, %v2613_v28, %v2609_v43 }
0x14c5   :  { %v2617_v24 = vrot.slane %v2600_v29, %v9110_v6 }
0x14c6   :  { %v2597_v26 = vpop.xlane.xlu1 %2596 }
0x14c7   :  { %v2601_v42 = vadd.f32 %v2597_v26, %v9112_v8  ;;  %v2623_v40 = vsel %vm479_vm3, %v2617_v24, %v2622_v36 }
0x14c9   :  { %v2621_v45 = vrot.slane %v2601_v42, %v9110_v6 }
0x14cb   :  { %v2624_v41 = vsel %vm481_vm4, %v2621_v45, %v2623_v40 }
0x14cc   :  { %v2626_v46 = vsel %vm484_vm5, %v2624_v41, -inf }
0x14cd   :  { %2627 = vmax.xlane.f32.xlu1 %v2626_v46 }
0x1538   :  { %v2374_v19 = vpop.xlane.xlu1 %2373 }
0x1539   :  { %vm2375_vm6 = vcmp.eq.f32.partialorder %v2372_v14, %v2374_v19 }
0x153a   :  { %v2376_v48 = vsel %vm2375_vm6, %v2371_v22, inf }
0x153b   :  { %2377 = vmin.xlane.f32.xlu1 %v2376_v48 }
0x155a   :  { %v2628_v50 = vpop.xlane.xlu1 %2627 }
0x155b   :  { %v2633_v13 = vrot.slane %v2628_v50, %v9073_v30  ;;  %v2637_v16 = vrot.slane %v2628_v50, %v9127_v31  ;;  %v2641_v21 = vrot.slane %v2628_v50, %v9130_v32  ;;  %v2645_v57 = vrot.slane %v2628_v50, %v9135_v37 }
0x155d   :  { %v2650_v62 = vsub.f32 %v2598_v33, %v2633_v13  ;;  %v2651_v4 = vsub.f32 %v2599_v61, %v2637_v16  ;;  %v2652_v20 = vsub.f32 %v2600_v29, %v2641_v21  ;;  %v2653_v11 = vsub.f32 %v2601_v42, %v2645_v57 }
0x155e   :  { %v2380_v33 = vcvt.f32.s32 %v2374_v19 }
0x155f   :  { %v2654_v59 = vmul.f32 1.442695, %v2650_v62  ;;  %v2656_v28 = vmul.f32 1.442695, %v2651_v4  ;;  %v2658_v24 = vmul.f32 1.442695, %v2652_v20 }
0x1560   :  { %v2660_v14 = vmul.f32 1.442695, %v2653_v11  ;;  %v2381_v29 = vshll.u32 %v2380_v33, 16 }
0x1561   :  { %8512 = vpow2.f32 %v2654_v59 }
0x1562   :  { %8514 = vpow2.f32 %v2656_v28 }
0x1563   :  { %8516 = vpow2.f32 %v2658_v24 }
0x1564   :  { %8518 = vpow2.f32 %v2660_v14 }
0x156b   :  { %v8513_v26 = vpop.eup %8512 }
0x156c   :  { %v8515_v43 = vpop.eup %8514  ;;  %2667 = vperm.xlu1 %8413, %v8513_v26  }
0x156d   :  { %2670 = vperm.xlu0 %8412, %v8515_v43   ;;  %v8517_v45 = vpop.eup %8516 }
0x156e   :  { %v8519_v36 = vpop.eup %8518 }
0x1570   :  { %2673 = vperm.xlu1 %8413, %v8517_v45  }
0x1574   :  { %2676 = vperm.xlu1 %8413, %v8519_v36  }
0x15c8   :  { %v2378_v61 = vpop.xlane.xlu1 %2377 }
0x15c9   :  { %v2379_v40 = vcvt.f32.s32 %v2378_v61 }
0x15cb   :  { %v2382_v41 = vadd.s32 %v2381_v29, %v2379_v40 }
0x15cd   :  { %vm2383_vm9 = vcmp.eq.s32.totalorder %v9106_v3, %v2382_v41 }
0x15ce   :  { %v7401_v42 = vsel %vm2383_vm9, 1.0, %v10647_v2 }
0x15cf   :  { %7841 = vmatmul.mubr.msk.f32.vlgmr.msra.gmra.mrb[14].mxu0 %vm216_vm7, %v7401_v42 }
0x15d0   :  { %8255 = vmatpush3.bf16.msra.mxu0 %v9148_v58  ;;  %7887 = vmatprep.mubr.msk.f32.mxu0 %vm8877_vm0, %v10647_v2 }
0x15d1   :  { %8256 = vmatprep.subr.bf16.mxu0 %v10645_v1 }
0x15d4   :  { %8258 = vmatpush3.bf16.msra.mxu0 %v9154_v60 }
0x15d5   :  { %8259 = vmatprep.subr.bf16.mxu0 %v10645_v1 }
0x15d8   :  { %8261 = vmatpush3.bf16.msra.mxu0 %v9164_v63 }
0x15d9   :  { %8262 = vmatprep.subr.bf16.mxu0 %v10645_v1 }
0x15dc   :  { %8264 = vmatpush3.bf16.msra.mxu0 %v9174_v7 }
0x15dd   :  { %8277 = vmatprep.subr.bf16.mxu0 %v10645_v1 }
0x15eb   :  { %v2668_v46 = vpop.permute.xlu1 %2667 }
0x15ec   :  { %v2671_v5 = vpop.permute.xlu0 %2670  ;;  %v2681_v48 = vrot.slane %v2668_v46, %v9110_v6 }
0x15ed   :  { %v2685_v22 = vrot.slane %v2671_v5, %v9110_v6 }
0x15ef   :  { %v2674_v19 = vpop.permute.xlu1 %2673  ;;  %v2694_v21 = vsel %vm477_vm2, %v2685_v22, %v2681_v48 }
0x15f0   :  { %v2689_v50 = vrot.slane %v2674_v19, %v9110_v6 }
0x15f2   :  { %v2695_v57 = vsel %vm479_vm3, %v2689_v50, %v2694_v21 }
0x15f3   :  { %v2677_v13 = vpop.permute.xlu1 %2676 }
0x15f4   :  { %v2693_v16 = vrot.slane %v2677_v13, %v9110_v6 }
0x15f6   :  { %v2696_v62 = vsel %vm481_vm4, %v2693_v16, %v2695_v57 }
0x15f7   :  { %v2698_v4 = vsel %vm484_vm5, %v2696_v62, 0.0 }
0x15f8   :  { %2699 = vadd.xlane.f32.xlu1 %v2698_v4 }
0x1685   :  { %v2700_v20 = vpop.xlane.xlu1 %2699 }
0x1686   :  { %v2705_v59 = vrot.slane %v2700_v20, %v9073_v30  ;;  %v2709_v28 = vrot.slane %v2700_v20, %v9127_v31  ;;  %v2713_v11 = vrot.slane %v2700_v20, %v9130_v32  ;;  %v2717_v24 = vrot.slane %v2700_v20, %v9135_v37 }
0x1688   :  { %8520 = vrcp.f32 %v2705_v59 }
0x1689   :  { %8522 = vrcp.f32 %v2709_v28 }
0x168a   :  { %8524 = vrcp.f32 %v2713_v11 }
0x168b   :  { %8526 = vrcp.f32 %v2717_v24 }
0x1692   :  { %v8521_v14 = vpop.eup %8520 }
0x1693   :  { %v2723_v33 = vmul.f32 %v8521_v14, %v8513_v26  ;;  %v8523_v61 = vpop.eup %8522 }
0x1694   :  { %v2725_v29 = vmul.f32 %v8523_v61, %v8515_v43  ;;  %v8525_v40 = vpop.eup %8524 }
0x1695   :  { %2732 = vperm.xlu0 %8412, %v2723_v33   ;;  %v2727_v41 = vmul.f32 %v8525_v40, %v8517_v45  ;;  %v8527_v42 = vpop.eup %8526 }
0x1696   :  { %v2729_v46 = vmul.f32 %v8527_v42, %v8519_v36 }
0x1699   :  { %2737 = vperm.xlu0 %8412, %v2725_v29  }
0x169d   :  { %2742 = vperm.xlu0 %8412, %v2727_v41  }
0x16a1   :  { %2747 = vperm.xlu0 %8412, %v2729_v46  }
0x16a2   :  { %v2455_v5 = vpop.f32.mrb[14].mxu0 }
0x16a3   :  { %v7842_v19 = vpop.f32.mrb[15].mxu0 }
0x16a5   :  { %2935 = vrot.lane.b32.xlu0 %v9585_v47, %s8881_s2 }
0x16a9   :  { %2945 = vrot.lane.b32.xlu0 %v9585_v47, %s8882_s0 }
0x1714   :  { %v2733_v22 = vpop.permute.xlu0 %2732 }
0x1715   :  { %v2750_v26 = vmul.f32 %v9512_v54, %v2733_v22  ;;  %v3056_v20 = vrot.slane %v2733_v22, %v9110_v6 }
0x1717   :  { %v2754_v43 = vsel %vm91_vm1, %v2750_v26, 0.0 }
0x1718   :  { %v2755_v48 = vrot.slane %v2754_v43, 4  ;;  %v2738_v50 = vpop.permute.xlu0 %2737 }
0x1719   :  { %v2751_v45 = vmul.f32 %v9519_v17, %v2738_v50  ;;  %v3060_v57 = vrot.slane %v2738_v50, %v9110_v6 }
0x171a   :  { %v2756_v13 = vadd.f32 %v2755_v48, %v2754_v43 }
0x171b   :  { %v2761_v36 = vsel %vm91_vm1, %v2751_v45, 0.0  ;;  %v3069_v33 = vsel %vm477_vm2, %v3060_v57, %v3056_v20 }
0x171c   :  { %v2762_v16 = vrot.slane %v2761_v36, 4  ;;  %v2743_v21 = vpop.permute.xlu0 %2742  ;;  %v2757_v28 = vrot.slane %v2756_v13, 2 }
0x171d   :  { %v2752_v62 = vmul.f32 %v9527_v23, %v2743_v21  ;;  %v3064_v47 = vrot.slane %v2743_v21, %v9110_v6 }
0x171e   :  { %v2763_v4 = vadd.f32 %v2762_v16, %v2761_v36  ;;  %v2758_v22 = vadd.f32 %v2757_v28, %v2756_v13 }
0x171f   :  { %v2768_v59 = vsel %vm91_vm1, %v2752_v62, 0.0  ;;  %v3070_v42 = vsel %vm479_vm3, %v3064_v47, %v3069_v33 }
0x1720   :  { %v2764_v11 = vrot.slane %v2763_v4, 2  ;;  %v2769_v24 = vrot.slane %v2768_v59, 4  ;;  %v2748_v14 = vpop.permute.xlu0 %2747  ;;  %v2759_v36 = vrot.slane %v2758_v22, 1 }
0x1721   :  { %v2753_v61 = vmul.f32 %v9537_v49, %v2748_v14  ;;  %v3068_v29 = vrot.slane %v2748_v14, %v9110_v6 }
0x1722   :  { %v2765_v40 = vadd.f32 %v2764_v11, %v2763_v4  ;;  %v2770_v41 = vadd.f32 %v2769_v24, %v2768_v59  ;;  %v2760_v47 = vadd.f32 %v2759_v36, %v2758_v22 }
0x1723   :  { %v2775_v46 = vsel %vm91_vm1, %v2753_v61, 0.0  ;;  %v3071_v19 = vsel %vm481_vm4, %v3068_v29, %v3070_v42 }
0x1724   :  { %v2771_v26 = vrot.slane %v2770_v41, 2  ;;  %v2776_v43 = vrot.slane %v2775_v46, 4  ;;  %7408 = vst.msk [vmem:[%s10642_s15 + $0xc] sm:$0xf] %vm484_vm5, %v3071_v19  ;;  %v2766_v48 = vrot.slane %v2765_v40, 1 }
0x1726   :  { %v2772_v50 = vadd.f32 %v2771_v26, %v2770_v41  ;;  %v2777_v45 = vadd.f32 %v2776_v43, %v2775_v46  ;;  %v2767_v57 = vadd.f32 %v2766_v48, %v2765_v40  ;;  %v9693_v40 = vld [vmem:[%s10638_s11] ss:$0 sm:$0xff] }
0x1728   :  { %v2773_v16 = vrot.slane %v2772_v50, 1  ;;  %v2778_v21 = vrot.slane %v2777_v45, 2  ;;  %v2786_v13 = vsel %vm477_vm2, %v2767_v57, %v2760_v47 }
0x172a   :  { %v2779_v62 = vadd.f32 %v2778_v21, %v2777_v45  ;;  %v2774_v4 = vadd.f32 %v2773_v16, %v2772_v50 }
0x172c   :  { %v2780_v20 = vrot.slane %v2779_v62, 1  ;;  %v2787_v28 = vsel %vm479_vm3, %v2774_v4, %v2786_v13 }
0x172e   :  { %v2781_v59 = vadd.f32 %v2780_v20, %v2779_v62  ;;  %v9716_v20 = vld [vmem:[%s10640_s13] ss:$0 sm:$0xff] }
0x1730   :  { %v2788_v11 = vsel %vm481_vm4, %v2781_v59, %v2787_v28 }
0x1731   :  { %7855 = vmatmul.mubr.msk.f32.vlgmr.msra.gmra.mrb[22].mxu1 %vm91_vm1, %v2788_v11 }
0x1732   :  { %8249 = vmatpush3.bf16.msra.mxu1 %v9236_v18  ;;  %7861 = vmatprep.mubr.msk.f32.mxu1 %vm8877_vm0, %v10647_v2 }
0x1733   :  { %8250 = vmatprep.subr.bf16.mxu1 %v10645_v1 }
0x1735   :  { %7862 = vmatmul.mubr.msk.f32.vlgmr.msra.gmra.mrb[24].mxu1 %vm91_vm1, %v2455_v5  ;;  %v2936_v5 = vpop.permute.xlu0 %2935 }
0x1736   :  { %8252 = vmatpush3.bf16.msra.mxu1 %v9270_v51  ;;  %7868 = vmatprep.mubr.msk.f32.mxu1 %vm8877_vm0, %v10647_v2 }
0x1737   :  { %8265 = vmatprep.subr.bf16.mxu1 %v10645_v1 }
0x1739   :  { %v2946_v43 = vpop.permute.xlu0 %2945 }
0x1804   :  { %v2857_v24 = vpop.f32.mrb[22].mxu1 }
0x1805   :  { %v7856_v14 = vpop.f32.mrb[23].mxu1 }
0x1808   :  { %v2930_v33 = vpop.f32.mrb[24].mxu1 }
0x1809   :  { %v2931_v61 = vadd.f32 %v2930_v33, %v2857_v24  ;;  %v7863_v29 = vpop.f32.mrb[25].mxu1 }
0x180b   :  { %v2934_v41 = vadd.f32 %v9693_v40, %v2931_v61 }
0x180d   :  { %v2938_v42 = vadd.f32 %v2936_v5, %v2934_v41 }
0x180f   :  { %v7406_v46 = vmul.f32 -1.442695, %v2938_v42 }
0x1811   :  { %8528 = vpow2.f32 %v7406_v46 }
0x181b   :  { %v8529_v19 = vpop.eup %8528 }
0x181c   :  { %v2942_v22 = vadd.f32 1.0, %v8529_v19 }
0x181e   :  { %8530 = vrcp.f32 %v2942_v22 }
0x1828   :  { %v8531_v26 = vpop.eup %8530 }
0x1829   :  { %v2948_v48 = vmul.f32 %v8531_v26, %v2946_v43  ;;  %v2955_v16 = vsub.f32 1.0, %v8531_v26  ;;  %v2961_v57 = vmul.f32 %v8531_v26, %v9565_v9 }
0x182b   :  { %2950 = vrot.lane.b32.xlu0 %v2948_v48, %s8883_s22 }
0x189d   :  { %v2951_v50 = vpop.permute.xlu0 %2950 }
0x189e   :  { %v2953_v45 = vadd.f32 %v2951_v50, %v2934_v41 }
0x18a0   :  { %8532 = vtanh.f32 %v2953_v45 }
0x18aa   :  { %v8533_v36 = vpop.eup %8532 }
0x18ab   :  { %2957 = vrot.lane.b32.xlu0 %v8533_v36, %s8881_s2 }
0x191d   :  { %v2958_v21 = vpop.permute.xlu0 %2957 }
0x191e   :  { %v2960_v62 = vmul.f32 %v2958_v21, %v2955_v16 }
0x1920   :  { %v9699_v4 = vadd.f32 %v2961_v57, %v2960_v62 }
0x1922   :  { %2964 = vrot.lane.b32.xlu0 %v9699_v4, %s8881_s2 }
0x1994   :  { %v2965_v47 = vpop.permute.xlu0 %2964 }
0x1995   :  { %7869 = vmatmul.mubr.msk.f32.vlgmr.msra.gmra.mrb[26].mxu1 %vm91_vm1, %v2965_v47 }
0x1996   :  { %8267 = vmatpush3.bf16.msra.mxu1 %v9028_v10  ;;  %7894 = vmatprep.mubr.msk.f32.mxu1 %vm8877_vm0, %v10647_v2 }
0x1997   :  { %8268 = vmatprep.subr.bf16.mxu1 %v10645_v1 }
0x1999   :  { %7895 = vmatmul.mubr.msk.f32.vlgmr.msra.gmra.mrb[28].mxu1 %vm91_vm1, %v2965_v47 }
0x199a   :  { %8270 = vmatpush3.bf16.msra.mxu1 %v9206_v53  ;;  %7901 = vmatprep.mubr.msk.f32.mxu1 %vm8877_vm0, %v10647_v2 }
0x199b   :  { %8271 = vmatprep.subr.bf16.mxu1 %v10645_v1 }
0x1a68   :  { %v3034_v9 = vpop.f32.mrb[26].mxu1 }
0x1a69   :  { %v9719_v59 = vadd.f32 %v9716_v20, %v3034_v9  ;;  %v7870_v13 = vpop.f32.mrb[27].mxu1 }
0x1a6b   :  { %v3038_v28 = vsel %vm912_vm8, %v9719_v59, -inf }
0x1a6c   :  { %3039 = vmax.xlane.f32.xlu1 %v3038_v28  ;;  %v3234_v11 = vpop.f32.mrb[28].mxu1 }
0x1a6d   :  { %v9724_v24 = vadd.f32 %v9431_v35, %v3234_v11  ;;  %v7896_v14 = vpop.f32.mrb[29].mxu1 }
0x1a6f   :  { %v3245_v33 = vrot.slane %v9724_v24, %v9065_v25 }
0x1a71   :  { %v3246_v61 = vcombine.high %v3245_v33, %v3245_v33  ;;  %v3253_v29 = vrot.slane %v3245_v33, %v9065_v25 }
0x1a73   :  { %v3260_v41 = vrot.slane %v3246_v61, %v9065_v25  ;;  %v3261_v5 = vcombine.high %v3253_v29, %v3253_v29  ;;  %v3266_v42 = vrot.slane %v3253_v29, %v9073_v30 }
0x1a75   :  { %v3262_v46 = vcombine.high %v3260_v41, %v3260_v41  ;;  %v3270_v19 = vrot.slane %v3260_v41, %v9073_v30  ;;  %v3274_v22 = vrot.slane %v3261_v5, %v9073_v30  ;;  %v3283_v35 = vadd.f32 %v3266_v42, %v9079_v34 }
0x1a77   :  { %v3278_v26 = vrot.slane %v3262_v46, %v9073_v30  ;;  %v3284_v43 = vadd.f32 %v3270_v19, %v9083_v38  ;;  %v3285_v48 = vadd.f32 %v3274_v22, %v9085_v39  ;;  %8534 = vtanh.f32 %v3283_v35 }
0x1a79   :  { %8536 = vtanh.f32 %v3284_v43  ;;  %v3286_v50 = vadd.f32 %v3278_v26, %v9090_v44 }
0x1a7a   :  { %8538 = vtanh.f32 %v3285_v48 }
0x1a7b   :  { %8540 = vtanh.f32 %v3286_v50 }
0x1a81   :  { %v8535_v45 = vpop.eup %8534 }
0x1a82   :  { %v3291_v36 = vmul.f32 %v9448_v55, %v8535_v45 }
0x1a83   :  { %v8537_v16 = vpop.eup %8536 }
0x1a84   :  { %v8539_v21 = vpop.eup %8538  ;;  %v3295_v57 = vsel %vm91_vm1, %v3291_v36, 0.0  ;;  %v3292_v62 = vmul.f32 %v9448_v55, %v8537_v16 }
0x1a85   :  { %3296 = vadd.xlane.f32.xlu0 %v3295_v57  ;;  %v3293_v9 = vmul.f32 %v9448_v55, %v8539_v21  ;;  %v8541_v13 = vpop.eup %8540 }
0x1a86   :  { %v3298_v47 = vsel %vm91_vm1, %v3292_v62, 0.0  ;;  %v3294_v11 = vmul.f32 %v9448_v55, %v8541_v13 }
0x1a87   :  { %3299 = vadd.xlane.f32.xlu1 %v3298_v47  ;;  %v3301_v28 = vsel %vm91_vm1, %v3293_v9, 0.0 }
0x1a88   :  { %v3304_v14 = vsel %vm91_vm1, %v3294_v11, 0.0 }
0x1a8b   :  { %3302 = vadd.xlane.f32.xlu1 %v3301_v28 }
0x1a8f   :  { %3305 = vadd.xlane.f32.xlu1 %v3304_v14 }
0x1af9   :  { %v9746_v33 = vpop.xlane.xlu1 %3039 }
0x1afa   :  { %vm3075_vm10 = vcmp.eq.f32.partialorder %v9719_v59, %v9746_v33 }
0x1afb   :  { %v3076_v61 = vsel %vm3075_vm10, %v9106_v3, 64 }
0x1afc   :  { %v3077_v29 = vsel %vm912_vm8, %v3076_v61, 2147483647 }
0x1afd   :  { %v3079_v41 = vshra.s32 %v3077_v29, 16  ;;  %v3078_v47 = vand.u32 65535, %v3077_v29 }
0x1aff   :  { %v3081_v5 = vcvt.s32.f32 %v3079_v41  ;;  %v3080_v13 = vcvt.s32.f32 %v3078_v47 }
0x1b01   :  { %3082 = vmin.xlane.f32.xlu1 %v3081_v5 }
0x1b12   :  { %v3297_v46 = vpop.xlane.xlu0 %3296 }
0x1b13   :  { %v3307_v22 = vadd.f32 %v3297_v46, %v9112_v8 }
0x1b14   :  { %v3300_v42 = vpop.xlane.xlu1 %3299 }
0x1b15   :  { %v3308_v55 = vadd.f32 %v3300_v42, %v9112_v8  ;;  %v3318_v50 = vrot.slane %v3307_v22, %v9110_v6 }
0x1b17   :  { %v3322_v26 = vrot.slane %v3308_v55, %v9110_v6 }
0x1b18   :  { %v3303_v19 = vpop.xlane.xlu1 %3302 }
0x1b19   :  { %v3309_v35 = vadd.f32 %v3303_v19, %v9112_v8  ;;  %v3331_v16 = vsel %vm477_vm2, %v3322_v26, %v3318_v50 }
0x1b1b   :  { %v3326_v43 = vrot.slane %v3309_v35, %v9110_v6 }
0x1b1c   :  { %v3306_v48 = vpop.xlane.xlu1 %3305 }
0x1b1d   :  { %v3310_v45 = vadd.f32 %v3306_v48, %v9112_v8  ;;  %v3332_v21 = vsel %vm479_vm3, %v3326_v43, %v3331_v16 }
0x1b1f   :  { %v3330_v36 = vrot.slane %v3310_v45, %v9110_v6 }
0x1b21   :  { %v3333_v57 = vsel %vm481_vm4, %v3330_v36, %v3332_v21 }
0x1b22   :  { %v3335_v62 = vsel %vm484_vm5, %v3333_v57, -inf }
0x1b23   :  { %3336 = vmax.xlane.f32.xlu1 %v3335_v62 }
0x1b8e   :  { %v3083_v9 = vpop.xlane.xlu1 %3082 }
0x1b8f   :  { %vm3084_vm11 = vcmp.eq.f32.partialorder %v3081_v5, %v3083_v9 }
0x1b90   :  { %v3085_v28 = vsel %vm3084_vm11, %v3080_v13, inf }
0x1b91   :  { %3086 = vmin.xlane.f32.xlu1 %v3085_v28 }
0x1bb0   :  { %v3337_v11 = vpop.xlane.xlu1 %3336 }
0x1bb1   :  { %v3342_v14 = vrot.slane %v3337_v11, %v9073_v30  ;;  %v3346_v61 = vrot.slane %v3337_v11, %v9127_v31  ;;  %v3350_v41 = vrot.slane %v3337_v11, %v9130_v32  ;;  %v3354_v42 = vrot.slane %v3337_v11, %v9135_v37 }
0x1bb3   :  { %v3359_v46 = vsub.f32 %v3307_v22, %v3342_v14  ;;  %v3360_v19 = vsub.f32 %v3308_v55, %v3346_v61  ;;  %v3361_v26 = vsub.f32 %v3309_v35, %v3350_v41  ;;  %v3362_v29 = vsub.f32 %v3310_v45, %v3354_v42 }
0x1bb4   :  { %v3089_v22 = vcvt.f32.s32 %v3083_v9 }
0x1bb5   :  { %v3363_v43 = vmul.f32 1.442695, %v3359_v46  ;;  %v3365_v48 = vmul.f32 1.442695, %v3360_v19  ;;  %v3367_v50 = vmul.f32 1.442695, %v3361_v26 }
0x1bb6   :  { %v3369_v5 = vmul.f32 1.442695, %v3362_v29  ;;  %v3090_v35 = vshll.u32 %v3089_v22, 16 }
0x1bb7   :  { %8542 = vpow2.f32 %v3363_v43 }
0x1bb8   :  { %8544 = vpow2.f32 %v3365_v48 }
0x1bb9   :  { %8546 = vpow2.f32 %v3367_v50 }
0x1bba   :  { %8548 = vpow2.f32 %v3369_v5 }
0x1bc1   :  { %v8543_v36 = vpop.eup %8542 }
0x1bc2   :  { %v8545_v16 = vpop.eup %8544  ;;  %3376 = vperm.xlu1 %8413, %v8543_v36  }
0x1bc3   :  { %3379 = vperm.xlu0 %8412, %v8545_v16   ;;  %v8547_v21 = vpop.eup %8546 }
0x1bc4   :  { %v8549_v57 = vpop.eup %8548 }
0x1bc6   :  { %3382 = vperm.xlu1 %8413, %v8547_v21  }
0x1bca   :  { %3385 = vperm.xlu1 %8413, %v8549_v57  }
0x1c1e   :  { %v3087_v55 = vpop.xlane.xlu1 %3086 }
0x1c1f   :  { %v3088_v62 = vcvt.f32.s32 %v3087_v55 }
0x1c21   :  { %v3091_v47 = vadd.s32 %v3090_v35, %v3088_v62 }
0x1c23   :  { %vm3092_vm12 = vcmp.eq.s32.totalorder %v9106_v3, %v3091_v47 }
0x1c24   :  { %v7409_v45 = vsel %vm3092_vm12, 1.0, %v10647_v2 }
0x1c25   :  { %7888 = vmatmul.mubr.msk.f32.vlgmr.msra.gmra.mrb[16].mxu0 %vm216_vm7, %v7409_v45 }
0x1c26   :  { %8279 = vmatpush3.bf16.msra.mxu0 %v9148_v58  ;;  %7934 = vmatprep.mubr.msk.f32.mxu0 %vm8877_vm0, %v10647_v2 }
0x1c27   :  { %8280 = vmatprep.subr.bf16.mxu0 %v10645_v1 }
0x1c2a   :  { %8282 = vmatpush3.bf16.msra.mxu0 %v9154_v60 }
0x1c2b   :  { %8283 = vmatprep.subr.bf16.mxu0 %v10645_v1 }
0x1c2e   :  { %8285 = vmatpush3.bf16.msra.mxu0 %v9164_v63 }
0x1c2f   :  { %8286 = vmatprep.subr.bf16.mxu0 %v10645_v1 }
0x1c32   :  { %8288 = vmatpush3.bf16.msra.mxu0 %v9174_v7 }
0x1c33   :  { %8301 = vmatprep.subr.bf16.mxu0 %v10645_v1 }
0x1c41   :  { %v3377_v9 = vpop.permute.xlu1 %3376 }
0x1c42   :  { %v3380_v13 = vpop.permute.xlu0 %3379  ;;  %v3390_v14 = vrot.slane %v3377_v9, %v9110_v6 }
0x1c43   :  { %v3394_v11 = vrot.slane %v3380_v13, %v9110_v6 }
0x1c45   :  { %v3383_v28 = vpop.permute.xlu1 %3382  ;;  %v3403_v46 = vsel %vm477_vm2, %v3394_v11, %v3390_v14 }
0x1c46   :  { %v3398_v61 = vrot.slane %v3383_v28, %v9110_v6 }
0x1c48   :  { %v3404_v19 = vsel %vm479_vm3, %v3398_v61, %v3403_v46 }
0x1c49   :  { %v3386_v41 = vpop.permute.xlu1 %3385 }
0x1c4a   :  { %v3402_v42 = vrot.slane %v3386_v41, %v9110_v6 }
0x1c4c   :  { %v3405_v26 = vsel %vm481_vm4, %v3402_v42, %v3404_v19 }
0x1c4d   :  { %v3407_v43 = vsel %vm484_vm5, %v3405_v26, 0.0 }
0x1c4e   :  { %3408 = vadd.xlane.f32.xlu1 %v3407_v43 }
0x1cdb   :  { %v3409_v48 = vpop.xlane.xlu1 %3408 }
0x1cdc   :  { %v3414_v29 = vrot.slane %v3409_v48, %v9073_v30  ;;  %v3418_v50 = vrot.slane %v3409_v48, %v9127_v31  ;;  %v3422_v5 = vrot.slane %v3409_v48, %v9130_v32  ;;  %v3426_v22 = vrot.slane %v3409_v48, %v9135_v37 }
0x1cde   :  { %8550 = vrcp.f32 %v3414_v29 }
0x1cdf   :  { %8552 = vrcp.f32 %v3418_v50 }
0x1ce0   :  { %8554 = vrcp.f32 %v3422_v5 }
0x1ce1   :  { %8556 = vrcp.f32 %v3426_v22 }
0x1ce8   :  { %v8551_v55 = vpop.eup %8550 }
0x1ce9   :  { %v3432_v35 = vmul.f32 %v8551_v55, %v8543_v36  ;;  %v8553_v62 = vpop.eup %8552 }
0x1cea   :  { %v3434_v47 = vmul.f32 %v8553_v62, %v8545_v16  ;;  %v8555_v45 = vpop.eup %8554 }
0x1ceb   :  { %3441 = vperm.xlu0 %8412, %v3432_v35   ;;  %v3436_v9 = vmul.f32 %v8555_v45, %v8547_v21  ;;  %v8557_v13 = vpop.eup %8556 }
0x1cec   :  { %v3438_v28 = vmul.f32 %v8557_v13, %v8549_v57 }
0x1cef   :  { %3446 = vperm.xlu0 %8412, %v3434_v47  }
0x1cf3   :  { %3451 = vperm.xlu0 %8412, %v3436_v9  }
0x1cf7   :  { %3456 = vperm.xlu0 %8412, %v3438_v28  }
0x1cf8   :  { %v3164_v11 = vpop.f32.mrb[16].mxu0 }
0x1cf9   :  { %v7889_v14 = vpop.f32.mrb[17].mxu0 }
0x1cfb   :  { %3644 = vrot.lane.b32.xlu0 %v9724_v24, %s8881_s2 }
0x1cff   :  { %3654 = vrot.lane.b32.xlu0 %v9724_v24, %s8882_s0 }
0x1d6a   :  { %v3442_v61 = vpop.permute.xlu0 %3441 }
0x1d6b   :  { %v3459_v36 = vmul.f32 %v9512_v54, %v3442_v61  ;;  %v3765_v54 = vrot.slane %v3442_v61, %v9110_v6 }
0x1d6d   :  { %v3463_v16 = vsel %vm91_vm1, %v3459_v36, 0.0 }
0x1d6e   :  { %v3464_v41 = vrot.slane %v3463_v16, 4  ;;  %v3447_v42 = vpop.permute.xlu0 %3446 }
0x1d6f   :  { %v3460_v21 = vmul.f32 %v9519_v17, %v3447_v42  ;;  %v3769_v43 = vrot.slane %v3447_v42, %v9110_v6 }
0x1d70   :  { %v3465_v46 = vadd.f32 %v3464_v41, %v3463_v16 }
0x1d71   :  { %v3470_v57 = vsel %vm91_vm1, %v3460_v21, 0.0  ;;  %v3778_v35 = vsel %vm477_vm2, %v3769_v43, %v3765_v54 }
0x1d72   :  { %v3471_v19 = vrot.slane %v3470_v57, 4  ;;  %v3452_v26 = vpop.permute.xlu0 %3451  ;;  %v3466_v5 = vrot.slane %v3465_v46, 2 }
0x1d73   :  { %v3461_v48 = vmul.f32 %v9527_v23, %v3452_v26  ;;  %v3773_v24 = vrot.slane %v3452_v26, %v9110_v6 }
0x1d74   :  { %v3472_v29 = vadd.f32 %v3471_v19, %v3470_v57  ;;  %v3467_v14 = vadd.f32 %v3466_v5, %v3465_v46 }
0x1d75   :  { %v3477_v50 = vsel %vm91_vm1, %v3461_v48, 0.0  ;;  %v3779_v23 = vsel %vm479_vm3, %v3773_v24, %v3778_v35 }
0x1d76   :  { %v3473_v22 = vrot.slane %v3472_v29, 2  ;;  %v3478_v55 = vrot.slane %v3477_v50, 4  ;;  %v3457_v17 = vpop.permute.xlu0 %3456  ;;  %v3468_v42 = vrot.slane %v3467_v14, 1 }
0x1d77   :  { %v3462_v62 = vmul.f32 %v9537_v49, %v3457_v17  ;;  %v3777_v47 = vrot.slane %v3457_v17, %v9110_v6 }
0x1d78   :  { %v3474_v45 = vadd.f32 %v3473_v22, %v3472_v29  ;;  %v3479_v9 = vadd.f32 %v3478_v55, %v3477_v50  ;;  %v3469_v48 = vadd.f32 %v3468_v42, %v3467_v14 }
0x1d79   :  { %v3484_v13 = vsel %vm91_vm1, %v3462_v62, 0.0  ;;  %v3780_v28 = vsel %vm481_vm4, %v3777_v47, %v3779_v23 }
0x1d7a   :  { %v3480_v61 = vrot.slane %v3479_v9, 2  ;;  %v3485_v36 = vrot.slane %v3484_v13, 4  ;;  %7416 = vst.msk [vmem:[%s10642_s15 + $0x10] sm:$0xf] %vm484_vm5, %v3780_v28  ;;  %v3475_v16 = vrot.slane %v3474_v45, 1  ;;  %v3645_v47 = vpop.permute.xlu0 %3644 }
0x1d7c   :  { %v3481_v49 = vadd.f32 %v3480_v61, %v3479_v9  ;;  %v3486_v41 = vadd.f32 %v3485_v36, %v3484_v13  ;;  %v3476_v19 = vadd.f32 %v3475_v16, %v3474_v45 }
0x1d7e   :  { %v3482_v21 = vrot.slane %v3481_v49, 1  ;;  %v3487_v57 = vrot.slane %v3486_v41, 2  ;;  %v3495_v46 = vsel %vm477_vm2, %v3476_v19, %v3469_v48  ;;  %v3655_v28 = vpop.permute.xlu0 %3654 }
0x1d80   :  { %v3488_v26 = vadd.f32 %v3487_v57, %v3486_v41  ;;  %v3483_v43 = vadd.f32 %v3482_v21, %v3481_v49 }
0x1d82   :  { %v3489_v29 = vrot.slane %v3488_v26, 1  ;;  %v3496_v54 = vsel %vm479_vm3, %v3483_v43, %v3495_v46 }
0x1d84   :  { %v3490_v24 = vadd.f32 %v3489_v29, %v3488_v26 }
0x1d86   :  { %v3497_v50 = vsel %vm481_vm4, %v3490_v24, %v3496_v54  ;;  %v9855_v24 = vld [vmem:[%s10631_s4] ss:$0 sm:$0xff] }
0x1d87   :  { %7902 = vmatmul.mubr.msk.f32.vlgmr.msra.gmra.mrb[30].mxu1 %vm91_vm1, %v3497_v50 }
0x1d88   :  { %8273 = vmatpush3.bf16.msra.mxu1 %v9236_v18  ;;  %7908 = vmatprep.mubr.msk.f32.mxu1 %vm8877_vm0, %v10647_v2 }
0x1d89   :  { %8274 = vmatprep.subr.bf16.mxu1 %v10645_v1 }
0x1d8b   :  { %7909 = vmatmul.mubr.msk.f32.vlgmr.msra.gmra.mrb[32].mxu1 %vm91_vm1, %v3164_v11 }
0x1d8c   :  { %8276 = vmatpush3.bf16.msra.mxu1 %v9270_v51  ;;  %7915 = vmatprep.mubr.msk.f32.mxu1 %vm8877_vm0, %v10647_v2 }
0x1d8d   :  { %8289 = vmatprep.subr.bf16.mxu1 %v10645_v1 }
0x1e5a   :  { %v3566_v5 = vpop.f32.mrb[30].mxu1 }
0x1e5b   :  { %v7903_v22 = vpop.f32.mrb[31].mxu1 }
0x1e5e   :  { %v3639_v55 = vpop.f32.mrb[32].mxu1 }
0x1e5f   :  { %v3640_v17 = vadd.f32 %v3639_v55, %v3566_v5  ;;  %v7910_v35 = vpop.f32.mrb[33].mxu1 }
0x1e61   :  { %v3643_v62 = vadd.f32 %v9693_v40, %v3640_v17 }
0x1e63   :  { %v3647_v45 = vadd.f32 %v3645_v47, %v3643_v62 }
0x1e65   :  { %v7414_v9 = vmul.f32 -1.442695, %v3647_v45 }
0x1e67   :  { %8558 = vpow2.f32 %v7414_v9 }
0x1e71   :  { %v8559_v23 = vpop.eup %8558 }
0x1e72   :  { %v3651_v11 = vadd.f32 1.0, %v8559_v23 }
0x1e74   :  { %8560 = vrcp.f32 %v3651_v11 }
0x1e7e   :  { %v8561_v13 = vpop.eup %8560 }
0x1e7f   :  { %v3657_v14 = vmul.f32 %v8561_v13, %v3655_v28  ;;  %v3664_v49 = vsub.f32 1.0, %v8561_v13  ;;  %v3670_v42 = vmul.f32 %v8561_v13, %v9699_v4 }
0x1e81   :  { %3659 = vrot.lane.b32.xlu0 %v3657_v14, %s8883_s22 }
0x1ef3   :  { %v3660_v61 = vpop.permute.xlu0 %3659 }
0x1ef4   :  { %v3662_v36 = vadd.f32 %v3660_v61, %v3643_v62  ;;  %v9872_v61 = vld [vmem:[#allocation6] ss:$0 sm:$0xff] }
0x1ef6   :  { %8562 = vtanh.f32 %v3662_v36 }
0x1f00   :  { %v8563_v16 = vpop.eup %8562 }
0x1f01   :  { %3666 = vrot.lane.b32.xlu0 %v8563_v16, %s8881_s2 }
0x1f73   :  { %v3667_v41 = vpop.permute.xlu0 %3666 }
0x1f74   :  { %v3669_v21 = vmul.f32 %v3667_v41, %v3664_v49 }
0x1f76   :  { %v9833_v57 = vadd.f32 %v3670_v42, %v3669_v21 }
0x1f78   :  { %3673 = vrot.lane.b32.xlu0 %v9833_v57, %s8881_s2 }
0x1fea   :  { %v3674_v19 = vpop.permute.xlu0 %3673 }
0x1feb   :  { %7916 = vmatmul.mubr.msk.f32.vlgmr.msra.gmra.mrb[34].mxu1 %vm91_vm1, %v3674_v19 }
0x1fec   :  { %8291 = vmatpush3.bf16.msra.mxu1 %v9028_v10  ;;  %7941 = vmatprep.mubr.msk.f32.mxu1 %vm8877_vm0, %v10647_v2 }
0x1fed   :  { %8292 = vmatprep.subr.bf16.mxu1 %v10645_v1 }
0x1fef   :  { %7942 = vmatmul.mubr.msk.f32.vlgmr.msra.gmra.mrb[36].mxu1 %vm91_vm1, %v3674_v19 }
0x1ff0   :  { %8294 = vmatpush3.bf16.msra.mxu1 %v9206_v53  ;;  %7948 = vmatprep.mubr.msk.f32.mxu1 %vm8877_vm0, %v10647_v2 }
0x1ff1   :  { %8295 = vmatprep.subr.bf16.mxu1 %v10645_v1 }
0x20be   :  { %v3743_v4 = vpop.f32.mrb[34].mxu1 }
0x20bf   :  { %v9848_v26 = vadd.f32 %v9716_v20, %v3743_v4  ;;  %v7917_v43 = vpop.f32.mrb[35].mxu1 }
0x20c1   :  { %v3747_v48 = vsel %vm912_vm8, %v9848_v26, -inf }
0x20c2   :  { %3748 = vmax.xlane.f32.xlu1 %v3747_v48  ;;  %v3943_v29 = vpop.f32.mrb[36].mxu1 }
0x20c3   :  { %v9858_v46 = vadd.f32 %v9855_v24, %v3943_v29  ;;  %v7943_v54 = vpop.f32.mrb[37].mxu1 }
0x20c5   :  { %v3954_v50 = vrot.slane %v9858_v46, %v9065_v25 }
0x20c7   :  { %v3955_v5 = vcombine.high %v3954_v50, %v3954_v50  ;;  %v3962_v22 = vrot.slane %v3954_v50, %v9065_v25 }
0x20c9   :  { %v3969_v55 = vrot.slane %v3955_v5, %v9065_v25  ;;  %v3970_v17 = vcombine.high %v3962_v22, %v3962_v22  ;;  %v3975_v35 = vrot.slane %v3962_v22, %v9073_v30 }
0x20cb   :  { %v3971_v62 = vcombine.high %v3969_v55, %v3969_v55  ;;  %v3979_v47 = vrot.slane %v3969_v55, %v9073_v30  ;;  %v3983_v45 = vrot.slane %v3970_v17, %v9073_v30  ;;  %v3992_v9 = vadd.f32 %v3975_v35, %v9079_v34 }
0x20cd   :  { %v3987_v23 = vrot.slane %v3971_v62, %v9073_v30  ;;  %v3993_v11 = vadd.f32 %v3979_v47, %v9083_v38  ;;  %v3994_v13 = vadd.f32 %v3983_v45, %v9085_v39  ;;  %8564 = vtanh.f32 %v3992_v9 }
0x20cf   :  { %v3995_v28 = vadd.f32 %v3987_v23, %v9090_v44  ;;  %8566 = vtanh.f32 %v3993_v11 }
0x20d0   :  { %8568 = vtanh.f32 %v3994_v13 }
0x20d1   :  { %8570 = vtanh.f32 %v3995_v28 }
0x20d7   :  { %v8565_v14 = vpop.eup %8564 }
0x20d8   :  { %v4000_v36 = vmul.f32 %v9872_v61, %v8565_v14 }
0x20d9   :  { %v8567_v16 = vpop.eup %8566 }
0x20da   :  { %v8569_v49 = vpop.eup %8568  ;;  %v4004_v41 = vsel %vm91_vm1, %v4000_v36, 0.0  ;;  %v4001_v42 = vmul.f32 %v9872_v61, %v8567_v16 }
0x20db   :  { %4005 = vadd.xlane.f32.xlu0 %v4004_v41  ;;  %v4002_v19 = vmul.f32 %v9872_v61, %v8569_v49  ;;  %v8571_v4 = vpop.eup %8570 }
0x20dc   :  { %v4007_v21 = vsel %vm91_vm1, %v4001_v42, 0.0  ;;  %v4003_v48 = vmul.f32 %v9872_v61, %v8571_v4 }
0x20dd   :  { %4008 = vadd.xlane.f32.xlu1 %v4007_v21  ;;  %v4010_v43 = vsel %vm91_vm1, %v4002_v19, 0.0 }
0x20de   :  { %v4013_v29 = vsel %vm91_vm1, %v4003_v48, 0.0 }
0x20e1   :  { %4011 = vadd.xlane.f32.xlu1 %v4010_v43 }
0x20e5   :  { %4014 = vadd.xlane.f32.xlu1 %v4013_v29 }
0x214f   :  { %v9882_v54 = vpop.xlane.xlu1 %3748 }
0x2150   :  { %vm3784_vm13 = vcmp.eq.f32.partialorder %v9848_v26, %v9882_v54 }
0x2151   :  { %v3785_v50 = vsel %vm3784_vm13, %v9106_v3, 64 }
0x2152   :  { %v3786_v5 = vsel %vm912_vm8, %v3785_v50, 2147483647 }
0x2153   :  { %v3788_v22 = vshra.s32 %v3786_v5, 16  ;;  %v3787_v21 = vand.u32 65535, %v3786_v5 }
0x2155   :  { %v3790_v55 = vcvt.s32.f32 %v3788_v22  ;;  %v3789_v4 = vcvt.s32.f32 %v3787_v21 }
0x2157   :  { %3791 = vmin.xlane.f32.xlu1 %v3790_v55 }
0x2168   :  { %v4006_v35 = vpop.xlane.xlu0 %4005 }
0x2169   :  { %v4016_v45 = vadd.f32 %v4006_v35, %v9112_v8 }
0x216a   :  { %v4009_v17 = vpop.xlane.xlu1 %4008 }
0x216b   :  { %v4017_v62 = vadd.f32 %v4009_v17, %v9112_v8  ;;  %v4027_v28 = vrot.slane %v4016_v45, %v9110_v6 }
0x216d   :  { %v4031_v23 = vrot.slane %v4017_v62, %v9110_v6 }
0x216e   :  { %v4012_v47 = vpop.xlane.xlu1 %4011 }
0x216f   :  { %v4018_v9 = vadd.f32 %v4012_v47, %v9112_v8  ;;  %v4040_v16 = vsel %vm477_vm2, %v4031_v23, %v4027_v28 }
0x2171   :  { %v4035_v11 = vrot.slane %v4018_v9, %v9110_v6 }
0x2172   :  { %v4015_v13 = vpop.xlane.xlu1 %4014 }
0x2173   :  { %v4019_v14 = vadd.f32 %v4015_v13, %v9112_v8  ;;  %v4041_v49 = vsel %vm479_vm3, %v4035_v11, %v4040_v16 }
0x2175   :  { %v4039_v36 = vrot.slane %v4019_v14, %v9110_v6 }
0x2177   :  { %v4042_v41 = vsel %vm481_vm4, %v4039_v36, %v4041_v49 }
0x2178   :  { %v4044_v42 = vsel %vm484_vm5, %v4042_v41, -inf }
0x2179   :  { %4045 = vmax.xlane.f32.xlu1 %v4044_v42 }
0x21e4   :  { %v3792_v19 = vpop.xlane.xlu1 %3791 }
0x21e5   :  { %vm3793_vm14 = vcmp.eq.f32.partialorder %v3790_v55, %v3792_v19 }
0x21e6   :  { %v3794_v43 = vsel %vm3793_vm14, %v3789_v4, inf }
0x21e7   :  { %3795 = vmin.xlane.f32.xlu1 %v3794_v43 }
0x2206   :  { %v4046_v48 = vpop.xlane.xlu1 %4045 }
0x2207   :  { %v4051_v29 = vrot.slane %v4046_v48, %v9073_v30  ;;  %v4055_v50 = vrot.slane %v4046_v48, %v9127_v31  ;;  %v4059_v22 = vrot.slane %v4046_v48, %v9130_v32  ;;  %v4063_v17 = vrot.slane %v4046_v48, %v9135_v37 }
0x2209   :  { %v4068_v35 = vsub.f32 %v4016_v45, %v4051_v29  ;;  %v4069_v47 = vsub.f32 %v4017_v62, %v4055_v50  ;;  %v4070_v23 = vsub.f32 %v4018_v9, %v4059_v22  ;;  %v4071_v5 = vsub.f32 %v4019_v14, %v4063_v17 }
0x220a   :  { %v3798_v45 = vcvt.f32.s32 %v3792_v19 }
0x220b   :  { %v4072_v11 = vmul.f32 1.442695, %v4068_v35  ;;  %v4074_v13 = vmul.f32 1.442695, %v4069_v47  ;;  %v4076_v28 = vmul.f32 1.442695, %v4070_v23 }
0x220c   :  { %v4078_v55 = vmul.f32 1.442695, %v4071_v5  ;;  %v3799_v9 = vshll.u32 %v3798_v45, 16 }
0x220d   :  { %8572 = vpow2.f32 %v4072_v11 }
0x220e   :  { %8574 = vpow2.f32 %v4074_v13 }
0x220f   :  { %8576 = vpow2.f32 %v4076_v28 }
0x2210   :  { %8578 = vpow2.f32 %v4078_v55 }
0x2217   :  { %v8573_v36 = vpop.eup %8572 }
0x2218   :  { %v8575_v16 = vpop.eup %8574  ;;  %4085 = vperm.xlu1 %8413, %v8573_v36  }
0x2219   :  { %4088 = vperm.xlu0 %8412, %v8575_v16   ;;  %v8577_v49 = vpop.eup %8576 }
0x221a   :  { %v8579_v41 = vpop.eup %8578 }
0x221c   :  { %4091 = vperm.xlu1 %8413, %v8577_v49  }
0x2220   :  { %4094 = vperm.xlu1 %8413, %v8579_v41  }
0x2274   :  { %v3796_v62 = vpop.xlane.xlu1 %3795 }
0x2275   :  { %v3797_v42 = vcvt.f32.s32 %v3796_v62 }
0x2277   :  { %v3800_v21 = vadd.s32 %v3799_v9, %v3797_v42 }
0x2279   :  { %vm3801_vm15 = vcmp.eq.s32.totalorder %v9106_v3, %v3800_v21 }
0x227a   :  { %v7417_v14 = vsel %vm3801_vm15, 1.0, %v10647_v2 }
0x227b   :  { %7935 = vmatmul.mubr.msk.f32.vlgmr.msra.gmra.mrb[18].mxu0 %vm216_vm7, %v7417_v14 }
0x227c   :  { %8303 = vmatpush3.bf16.msra.mxu0 %v9148_v58  ;;  %7981 = vmatprep.mubr.msk.f32.mxu0 %vm8877_vm0, %v10647_v2 }
0x227d   :  { %8304 = vmatprep.subr.bf16.mxu0 %v10645_v1 }
0x2280   :  { %8306 = vmatpush3.bf16.msra.mxu0 %v9154_v60 }
0x2281   :  { %8307 = vmatprep.subr.bf16.mxu0 %v10645_v1 }
0x2284   :  { %8309 = vmatpush3.bf16.msra.mxu0 %v9164_v63 }
0x2285   :  { %8310 = vmatprep.subr.bf16.mxu0 %v10645_v1 }
0x2288   :  { %8312 = vmatpush3.bf16.msra.mxu0 %v9174_v7 }
0x2289   :  { %8325 = vmatprep.subr.bf16.mxu0 %v10645_v1 }
0x2297   :  { %v4086_v19 = vpop.permute.xlu1 %4085 }
0x2298   :  { %v4089_v4 = vpop.permute.xlu0 %4088  ;;  %v4099_v29 = vrot.slane %v4086_v19, %v9110_v6 }
0x2299   :  { %v4103_v48 = vrot.slane %v4089_v4, %v9110_v6 }
0x229b   :  { %v4092_v43 = vpop.permute.xlu1 %4091  ;;  %v4112_v17 = vsel %vm477_vm2, %v4103_v48, %v4099_v29 }
0x229c   :  { %v4107_v50 = vrot.slane %v4092_v43, %v9110_v6 }
0x229e   :  { %v4113_v47 = vsel %vm479_vm3, %v4107_v50, %v4112_v17  ;;  %v9943_v17 = vld [vmem:[%s10654_s20 + $0x8] sm:$0xff] }
0x229f   :  { %v4095_v22 = vpop.permute.xlu1 %4094 }
0x22a0   :  { %v4111_v35 = vrot.slane %v4095_v22, %v9110_v6 }
0x22a2   :  { %v4114_v23 = vsel %vm481_vm4, %v4111_v35, %v4113_v47 }
0x22a3   :  { %v4116_v11 = vsel %vm484_vm5, %v4114_v23, 0.0 }
0x22a4   :  { %4117 = vadd.xlane.f32.xlu1 %v4116_v11 }
0x2331   :  { %v4118_v13 = vpop.xlane.xlu1 %4117 }
0x2332   :  { %v4123_v5 = vrot.slane %v4118_v13, %v9073_v30  ;;  %v4127_v28 = vrot.slane %v4118_v13, %v9127_v31  ;;  %v4131_v55 = vrot.slane %v4118_v13, %v9130_v32  ;;  %v4135_v45 = vrot.slane %v4118_v13, %v9135_v37 }
0x2334   :  { %8580 = vrcp.f32 %v4123_v5  ;;  %v9951_v5 = vld [vmem:[%s10654_s20 + $0x10] sm:$0xff] }
0x2335   :  { %8582 = vrcp.f32 %v4127_v28 }
0x2336   :  { %8584 = vrcp.f32 %v4131_v55 }
0x2337   :  { %8586 = vrcp.f32 %v4135_v45 }
0x233e   :  { %v8581_v62 = vpop.eup %8580 }
0x233f   :  { %v4141_v9 = vmul.f32 %v8581_v62, %v8573_v36  ;;  %v8583_v42 = vpop.eup %8582  ;;  %v9936_v36 = vld [vmem:[%s10654_s20] sm:$0xff] }
0x2340   :  { %v4143_v21 = vmul.f32 %v8583_v42, %v8575_v16  ;;  %v8585_v14 = vpop.eup %8584 }
0x2341   :  { %4150 = vperm.xlu0 %8412, %v4141_v9   ;;  %v4145_v19 = vmul.f32 %v8585_v14, %v8577_v49  ;;  %v8587_v4 = vpop.eup %8586 }
0x2342   :  { %v4147_v43 = vmul.f32 %v8587_v4, %v8579_v41 }
0x2345   :  { %4155 = vperm.xlu0 %8412, %v4143_v21  }
0x2349   :  { %4160 = vperm.xlu0 %8412, %v4145_v19  }
0x234d   :  { %4165 = vperm.xlu0 %8412, %v4147_v43   ;;  %v9961_v43 = vld [vmem:[%s10654_s20 + $0x18] sm:$0xff] }
0x234e   :  { %v3873_v48 = vpop.f32.mrb[18].mxu0 }
0x234f   :  { %v7936_v29 = vpop.f32.mrb[19].mxu0 }
0x2351   :  { %4353 = vrot.lane.b32.xlu0 %v9858_v46, %s8881_s2 }
0x2355   :  { %4363 = vrot.lane.b32.xlu0 %v9858_v46, %s8882_s0 }
0x23c0   :  { %v4151_v50 = vpop.permute.xlu0 %4150 }
0x23c1   :  { %v4168_v16 = vmul.f32 %v9936_v36, %v4151_v50  ;;  %v4474_v62 = vrot.slane %v4151_v50, %v9110_v6 }
0x23c3   :  { %v4172_v49 = vsel %vm91_vm1, %v4168_v16, 0.0 }
0x23c4   :  { %v4173_v41 = vrot.slane %v4172_v49, 4  ;;  %v4156_v22 = vpop.permute.xlu0 %4155 }
0x23c5   :  { %v4169_v35 = vmul.f32 %v9943_v17, %v4156_v22  ;;  %v4478_v13 = vrot.slane %v4156_v22, %v9110_v6 }
0x23c6   :  { %v4174_v47 = vadd.f32 %v4173_v41, %v4172_v49 }
0x23c7   :  { %v4179_v46 = vsel %vm91_vm1, %v4169_v35, 0.0  ;;  %v4487_v4 = vsel %vm477_vm2, %v4478_v13, %v4474_v62 }
0x23c8   :  { %v4180_v23 = vrot.slane %v4179_v46, 4  ;;  %v4161_v11 = vpop.permute.xlu0 %4160  ;;  %v4175_v42 = vrot.slane %v4174_v47, 2 }
0x23c9   :  { %v4170_v28 = vmul.f32 %v9951_v5, %v4161_v11  ;;  %v4482_v45 = vrot.slane %v4161_v11, %v9110_v6 }
0x23ca   :  { %v4181_v55 = vadd.f32 %v4180_v23, %v4179_v46  ;;  %v4176_v46 = vadd.f32 %v4175_v42, %v4174_v47 }
0x23cb   :  { %v4186_v9 = vsel %vm91_vm1, %v4170_v28, 0.0  ;;  %v4488_v50 = vsel %vm479_vm3, %v4482_v45, %v4487_v4 }
0x23cc   :  { %v4182_v21 = vrot.slane %v4181_v55, 2  ;;  %v4187_v14 = vrot.slane %v4186_v9, 4  ;;  %v4166_v19 = vpop.permute.xlu0 %4165 }
0x23cd   :  { %v4171_v29 = vmul.f32 %v9961_v43, %v4166_v19  ;;  %v4486_v16 = vrot.slane %v4166_v19, %v9110_v6  ;;  %v4177_v19 = vrot.slane %v4176_v46, 1 }
0x23ce   :  { %v4183_v49 = vadd.f32 %v4182_v21, %v4181_v55  ;;  %v4188_v41 = vadd.f32 %v4187_v14, %v4186_v9 }
0x23cf   :  { %v4193_v22 = vsel %vm91_vm1, %v4171_v29, 0.0  ;;  %v4489_v35 = vsel %vm481_vm4, %v4486_v16, %v4488_v50  ;;  %v4178_v4 = vadd.f32 %v4177_v19, %v4176_v46 }
0x23d0   :  { %v4189_v23 = vrot.slane %v4188_v41, 2  ;;  %v4194_v11 = vrot.slane %v4193_v22, 4  ;;  %7424 = vst.msk [vmem:[%s10642_s15 + $0x14] sm:$0xf] %vm484_vm5, %v4489_v35  ;;  %v4184_v13 = vrot.slane %v4183_v49, 1 }
0x23d2   :  { %v4190_v28 = vadd.f32 %v4189_v23, %v4188_v41  ;;  %v4195_v62 = vadd.f32 %v4194_v11, %v4193_v22  ;;  %v4185_v21 = vadd.f32 %v4184_v13, %v4183_v49  ;;  %v4354_v11 = vpop.permute.xlu0 %4353 }
0x23d4   :  { %v4191_v55 = vrot.slane %v4190_v28, 1  ;;  %v4196_v9 = vrot.slane %v4195_v62, 2  ;;  %v4204_v47 = vsel %vm477_vm2, %v4185_v21, %v4178_v4 }
0x23d6   :  { %v4197_v45 = vadd.f32 %v4196_v9, %v4195_v62  ;;  %v4192_v14 = vadd.f32 %v4191_v55, %v4190_v28  ;;  %v4364_v55 = vpop.permute.xlu0 %4363 }
0x23d8   :  { %v4198_v29 = vrot.slane %v4197_v45, 1  ;;  %v4205_v42 = vsel %vm479_vm3, %v4192_v14, %v4204_v47 }
0x23da   :  { %v4199_v16 = vadd.f32 %v4198_v29, %v4197_v45 }
0x23dc   :  { %v4206_v50 = vsel %vm481_vm4, %v4199_v16, %v4205_v42 }
0x23dd   :  { %7949 = vmatmul.mubr.msk.f32.vlgmr.msra.gmra.mrb[38].mxu1 %vm91_vm1, %v4206_v50 }
0x23de   :  { %8297 = vmatpush3.bf16.msra.mxu1 %v9236_v18  ;;  %7955 = vmatprep.mubr.msk.f32.mxu1 %vm8877_vm0, %v10647_v2 }
0x23df   :  { %8298 = vmatprep.subr.bf16.mxu1 %v10645_v1 }
0x23e1   :  { %7956 = vmatmul.mubr.msk.f32.vlgmr.msra.gmra.mrb[40].mxu1 %vm91_vm1, %v3873_v48 }
0x23e2   :  { %8300 = vmatpush3.bf16.msra.mxu1 %v9270_v51  ;;  %7962 = vmatprep.mubr.msk.f32.mxu1 %vm8877_vm0, %v10647_v2 }
0x23e3   :  { %8313 = vmatprep.subr.bf16.mxu1 %v10645_v1 }
0x24b0   :  { %v4275_v49 = vpop.f32.mrb[38].mxu1 }
0x24b1   :  { %v7950_v41 = vpop.f32.mrb[39].mxu1 }
0x24b4   :  { %v4348_v22 = vpop.f32.mrb[40].mxu1 }
0x24b5   :  { %v4349_v35 = vadd.f32 %v4348_v22, %v4275_v49  ;;  %v7957_v46 = vpop.f32.mrb[41].mxu1 }
0x24b7   :  { %v4352_v23 = vadd.f32 %v9693_v40, %v4349_v35 }
0x24b9   :  { %v4356_v13 = vadd.f32 %v4354_v11, %v4352_v23 }
0x24bb   :  { %v7422_v28 = vmul.f32 -1.442695, %v4356_v13 }
0x24bd   :  { %8588 = vpow2.f32 %v7422_v28 }
0x24c7   :  { %v8589_v62 = vpop.eup %8588 }
0x24c8   :  { %v4360_v48 = vadd.f32 1.0, %v8589_v62 }
0x24ca   :  { %8590 = vrcp.f32 %v4360_v48 }
0x24d4   :  { %v8591_v19 = vpop.eup %8590 }
0x24d5   :  { %v4366_v9 = vmul.f32 %v8591_v19, %v4364_v55  ;;  %v4373_v4 = vsub.f32 1.0, %v8591_v19  ;;  %v4379_v29 = vmul.f32 %v8591_v19, %v9833_v57 }
0x24d7   :  { %4368 = vrot.lane.b32.xlu0 %v4366_v9, %s8883_s22 }
0x2549   :  { %v4369_v21 = vpop.permute.xlu0 %4368 }
0x254a   :  { %v4371_v45 = vadd.f32 %v4369_v21, %v4352_v23 }
0x254c   :  { %8592 = vtanh.f32 %v4371_v45 }
0x2556   :  { %v8593_v14 = vpop.eup %8592 }
0x2557   :  { %4375 = vrot.lane.b32.xlu0 %v8593_v14, %s8881_s2 }
0x25c9   :  { %v4376_v40 = vpop.permute.xlu0 %4375 }
0x25ca   :  { %v4378_v16 = vmul.f32 %v4376_v40, %v4373_v4 }
0x25cc   :  { %v9989_v47 = vadd.f32 %v4379_v29, %v4378_v16 }
0x25ce   :  { %4382 = vrot.lane.b32.xlu0 %v9989_v47, %s8881_s2 }
0x2640   :  { %v4383_v42 = vpop.permute.xlu0 %4382 }
0x2641   :  { %7963 = vmatmul.mubr.msk.f32.vlgmr.msra.gmra.mrb[42].mxu1 %vm91_vm1, %v4383_v42 }
0x2642   :  { %8315 = vmatpush3.bf16.msra.mxu1 %v9028_v10  ;;  %7988 = vmatprep.mubr.msk.f32.mxu1 %vm8877_vm0, %v10647_v2 }
0x2643   :  { %8316 = vmatprep.subr.bf16.mxu1 %v10645_v1 }
0x2645   :  { %7989 = vmatmul.mubr.msk.f32.vlgmr.msra.gmra.mrb[44].mxu1 %vm91_vm1, %v4383_v42 }
0x2646   :  { %8318 = vmatpush3.bf16.msra.mxu1 %v9206_v53  ;;  %7995 = vmatprep.mubr.msk.f32.mxu1 %vm8877_vm0, %v10647_v2 }
0x2647   :  { %8319 = vmatprep.subr.bf16.mxu1 %v10645_v1 }
0x2714   :  { %v4452_v57 = vpop.f32.mrb[42].mxu1 }
0x2715   :  { %v10004_v50 = vadd.f32 %v9716_v20, %v4452_v57  ;;  %v7964_v49 = vpop.f32.mrb[43].mxu1 }
0x2717   :  { %v4456_v41 = vsel %vm912_vm8, %v10004_v50, -inf }
0x2718   :  { %4457 = vmax.xlane.f32.xlu1 %v4456_v41  ;;  %v4652_v22 = vpop.f32.mrb[44].mxu1 }
0x2719   :  { %v10009_v35 = vadd.f32 %v9855_v24, %v4652_v22  ;;  %v7990_v46 = vpop.f32.mrb[45].mxu1 }
0x271b   :  { %v4663_v23 = vrot.slane %v10009_v35, %v9065_v25 }
0x271d   :  { %v4664_v11 = vcombine.high %v4663_v23, %v4663_v23  ;;  %v4671_v13 = vrot.slane %v4663_v23, %v9065_v25 }
0x271f   :  { %v4678_v28 = vrot.slane %v4664_v11, %v9065_v25  ;;  %v4679_v20 = vcombine.high %v4671_v13, %v4671_v13  ;;  %v4684_v62 = vrot.slane %v4671_v13, %v9073_v30 }
0x2721   :  { %v4680_v48 = vcombine.high %v4678_v28, %v4678_v28  ;;  %v4688_v19 = vrot.slane %v4678_v28, %v9073_v30  ;;  %v4692_v55 = vrot.slane %v4679_v20, %v9073_v30  ;;  %v4701_v9 = vadd.f32 %v4684_v62, %v9079_v34 }
0x2723   :  { %v4696_v21 = vrot.slane %v4680_v48, %v9073_v30  ;;  %v4702_v45 = vadd.f32 %v4688_v19, %v9083_v38  ;;  %v4703_v14 = vadd.f32 %v4692_v55, %v9085_v39  ;;  %8594 = vtanh.f32 %v4701_v9 }
0x2725   :  { %v4704_v4 = vadd.f32 %v4696_v21, %v9090_v44  ;;  %8596 = vtanh.f32 %v4702_v45 }
0x2726   :  { %8598 = vtanh.f32 %v4703_v14 }
0x2727   :  { %8600 = vtanh.f32 %v4704_v4 }
0x272d   :  { %v8595_v40 = vpop.eup %8594 }
0x272e   :  { %v4709_v29 = vmul.f32 %v9872_v61, %v8595_v40 }
0x272f   :  { %v8597_v16 = vpop.eup %8596 }
0x2730   :  { %v8599_v42 = vpop.eup %8598  ;;  %v4713_v57 = vsel %vm91_vm1, %v4709_v29, 0.0  ;;  %v4710_v49 = vmul.f32 %v9872_v61, %v8597_v16 }
0x2731   :  { %4714 = vadd.xlane.f32.xlu0 %v4713_v57  ;;  %v4711_v22 = vmul.f32 %v9872_v61, %v8599_v42  ;;  %v8601_v46 = vpop.eup %8600 }
0x2732   :  { %v4716_v41 = vsel %vm91_vm1, %v4710_v49, 0.0  ;;  %v4712_v11 = vmul.f32 %v9872_v61, %v8601_v46 }
0x2733   :  { %4717 = vadd.xlane.f32.xlu1 %v4716_v41  ;;  %v4719_v23 = vsel %vm91_vm1, %v4711_v22, 0.0 }
0x2734   :  { %v4722_v13 = vsel %vm91_vm1, %v4712_v11, 0.0 }
0x2737   :  { %4720 = vadd.xlane.f32.xlu1 %v4719_v23 }
0x273b   :  { %4723 = vadd.xlane.f32.xlu1 %v4722_v13 }
0x27a5   :  { %v10031_v28 = vpop.xlane.xlu1 %4457 }
0x27a6   :  { %vm4493_vm6 = vcmp.eq.f32.partialorder %v10004_v50, %v10031_v28 }
0x27a7   :  { %v4494_v20 = vsel %vm4493_vm6, %v9106_v3, 64 }
0x27a8   :  { %v4495_v62 = vsel %vm912_vm8, %v4494_v20, 2147483647 }
0x27a9   :  { %v4497_v48 = vshra.s32 %v4495_v62, 16  ;;  %v4496_v11 = vand.u32 65535, %v4495_v62 }
0x27ab   :  { %v4499_v19 = vcvt.s32.f32 %v4497_v48  ;;  %v4498_v20 = vcvt.s32.f32 %v4496_v11 }
0x27ad   :  { %4500 = vmin.xlane.f32.xlu1 %v4499_v19 }
0x27be   :  { %v4715_v9 = vpop.xlane.xlu0 %4714 }
0x27bf   :  { %v4725_v14 = vadd.f32 %v4715_v9, %v9112_v8 }
0x27c0   :  { %v4718_v55 = vpop.xlane.xlu1 %4717 }
0x27c1   :  { %v4726_v21 = vadd.f32 %v4718_v55, %v9112_v8  ;;  %v4736_v42 = vrot.slane %v4725_v14, %v9110_v6 }
0x27c3   :  { %v4740_v40 = vrot.slane %v4726_v21, %v9110_v6 }
0x27c4   :  { %v4721_v45 = vpop.xlane.xlu1 %4720 }
0x27c5   :  { %v4727_v4 = vadd.f32 %v4721_v45, %v9112_v8  ;;  %v4749_v41 = vsel %vm477_vm2, %v4740_v40, %v4736_v42 }
0x27c7   :  { %v4744_v29 = vrot.slane %v4727_v4, %v9110_v6 }
0x27c8   :  { %v4724_v16 = vpop.xlane.xlu1 %4723 }
0x27c9   :  { %v4728_v57 = vadd.f32 %v4724_v16, %v9112_v8  ;;  %v4750_v22 = vsel %vm479_vm3, %v4744_v29, %v4749_v41 }
0x27cb   :  { %v4748_v49 = vrot.slane %v4728_v57, %v9110_v6 }
0x27cd   :  { %v4751_v46 = vsel %vm481_vm4, %v4748_v49, %v4750_v22 }
0x27ce   :  { %v4753_v23 = vsel %vm484_vm5, %v4751_v46, -inf }
0x27cf   :  { %4754 = vmax.xlane.f32.xlu1 %v4753_v23 }
0x283a   :  { %v4501_v13 = vpop.xlane.xlu1 %4500 }
0x283b   :  { %vm4502_vm9 = vcmp.eq.f32.partialorder %v4499_v19, %v4501_v13 }
0x283c   :  { %v4503_v48 = vsel %vm4502_vm9, %v4498_v20, inf }
0x283d   :  { %4504 = vmin.xlane.f32.xlu1 %v4503_v48 }
0x285c   :  { %v4755_v55 = vpop.xlane.xlu1 %4754 }
0x285d   :  { %v4760_v9 = vrot.slane %v4755_v55, %v9073_v30  ;;  %v4764_v45 = vrot.slane %v4755_v55, %v9127_v31  ;;  %v4768_v40 = vrot.slane %v4755_v55, %v9130_v32  ;;  %v4772_v29 = vrot.slane %v4755_v55, %v9135_v37 }
0x285f   :  { %v4777_v16 = vsub.f32 %v4725_v14, %v4760_v9  ;;  %v4778_v42 = vsub.f32 %v4726_v21, %v4764_v45  ;;  %v4779_v49 = vsub.f32 %v4727_v4, %v4768_v40  ;;  %v4780_v62 = vsub.f32 %v4728_v57, %v4772_v29 }
0x2860   :  { %v4507_v14 = vcvt.f32.s32 %v4501_v13 }
0x2861   :  { %v4781_v41 = vmul.f32 1.442695, %v4777_v16  ;;  %v4783_v22 = vmul.f32 1.442695, %v4778_v42  ;;  %v4785_v46 = vmul.f32 1.442695, %v4779_v49 }
0x2862   :  { %v4787_v19 = vmul.f32 1.442695, %v4780_v62  ;;  %v4508_v4 = vshll.u32 %v4507_v14, 16 }
0x2863   :  { %8602 = vpow2.f32 %v4781_v41 }
0x2864   :  { %8604 = vpow2.f32 %v4783_v22 }
0x2865   :  { %8606 = vpow2.f32 %v4785_v46 }
0x2866   :  { %8608 = vpow2.f32 %v4787_v19 }
0x286d   :  { %v8603_v23 = vpop.eup %8602 }
0x286e   :  { %v8605_v11 = vpop.eup %8604  ;;  %4794 = vperm.xlu1 %8413, %v8603_v23  }
0x286f   :  { %4797 = vperm.xlu0 %8412, %v8605_v11   ;;  %v8607_v20 = vpop.eup %8606 }
0x2870   :  { %v8609_v48 = vpop.eup %8608 }
0x2872   :  { %4800 = vperm.xlu1 %8413, %v8607_v20  }
0x2876   :  { %4803 = vperm.xlu1 %8413, %v8609_v48  }
0x28ca   :  { %v4505_v21 = vpop.xlane.xlu1 %4504 }
0x28cb   :  { %v4506_v55 = vcvt.f32.s32 %v4505_v21 }
0x28cd   :  { %v4509_v9 = vadd.s32 %v4508_v4, %v4506_v55 }
0x28cf   :  { %vm4510_vm10 = vcmp.eq.s32.totalorder %v9106_v3, %v4509_v9 }
0x28d0   :  { %v7425_v57 = vsel %vm4510_vm10, 1.0, %v10647_v2 }
0x28d1   :  { %7982 = vmatmul.mubr.msk.f32.vlgmr.msra.gmra.mrb[20].mxu0 %vm216_vm7, %v7425_v57 }
0x28d2   :  { %8327 = vmatpush3.bf16.msra.mxu0 %v9148_v58  ;;  %8028 = vmatprep.mubr.msk.f32.mxu0 %vm8877_vm0, %v10647_v2 }
0x28d3   :  { %8328 = vmatprep.subr.bf16.mxu0 %v10645_v1 }
0x28d6   :  { %8330 = vmatpush3.bf16.msra.mxu0 %v9154_v60 }
0x28d7   :  { %8331 = vmatprep.subr.bf16.mxu0 %v10645_v1 }
0x28da   :  { %8333 = vmatpush3.bf16.msra.mxu0 %v9164_v63 }
0x28db   :  { %8334 = vmatprep.subr.bf16.mxu0 %v10645_v1 }
0x28de   :  { %8336 = vmatpush3.bf16.msra.mxu0 %v9174_v7 }
0x28df   :  { %8349 = vmatprep.subr.bf16.mxu0 %v10645_v1 }
0x28ed   :  { %v4795_v13 = vpop.permute.xlu1 %4794 }
0x28ee   :  { %v4798_v45 = vpop.permute.xlu0 %4797  ;;  %v4808_v16 = vrot.slane %v4795_v13, %v9110_v6 }
0x28ef   :  { %v4812_v29 = vrot.slane %v4798_v45, %v9110_v6 }
0x28f1   :  { %v4801_v40 = vpop.permute.xlu1 %4800  ;;  %v4821_v41 = vsel %vm477_vm2, %v4812_v29, %v4808_v16 }
0x28f2   :  { %v4816_v42 = vrot.slane %v4801_v40, %v9110_v6 }
0x28f4   :  { %v4822_v62 = vsel %vm479_vm3, %v4816_v42, %v4821_v41 }
0x28f5   :  { %v4804_v49 = vpop.permute.xlu1 %4803 }
0x28f6   :  { %v4820_v22 = vrot.slane %v4804_v49, %v9110_v6 }
0x28f8   :  { %v4823_v46 = vsel %vm481_vm4, %v4820_v22, %v4822_v62 }
0x28f9   :  { %v4825_v19 = vsel %vm484_vm5, %v4823_v46, 0.0 }
0x28fa   :  { %4826 = vadd.xlane.f32.xlu1 %v4825_v19 }
0x2987   :  { %v4827_v14 = vpop.xlane.xlu1 %4826 }
0x2988   :  { %v4832_v21 = vrot.slane %v4827_v14, %v9073_v30  ;;  %v4836_v4 = vrot.slane %v4827_v14, %v9127_v31  ;;  %v4840_v55 = vrot.slane %v4827_v14, %v9130_v32  ;;  %v4844_v9 = vrot.slane %v4827_v14, %v9135_v37 }
0x298a   :  { %8610 = vrcp.f32 %v4832_v21 }
0x298b   :  { %8612 = vrcp.f32 %v4836_v4 }
0x298c   :  { %8614 = vrcp.f32 %v4840_v55 }
0x298d   :  { %8616 = vrcp.f32 %v4844_v9 }
0x2994   :  { %v8611_v57 = vpop.eup %8610 }
0x2995   :  { %v4850_v13 = vmul.f32 %v8611_v57, %v8603_v23  ;;  %v8613_v45 = vpop.eup %8612 }
0x2996   :  { %v4852_v40 = vmul.f32 %v8613_v45, %v8605_v11  ;;  %v8615_v29 = vpop.eup %8614 }
0x2997   :  { %4859 = vperm.xlu0 %8412, %v4850_v13   ;;  %v4854_v16 = vmul.f32 %v8615_v29, %v8607_v20  ;;  %v8617_v42 = vpop.eup %8616 }
0x2998   :  { %v4856_v49 = vmul.f32 %v8617_v42, %v8609_v48 }
0x299b   :  { %4864 = vperm.xlu0 %8412, %v4852_v40  }
0x299f   :  { %4869 = vperm.xlu0 %8412, %v4854_v16  }
0x29a3   :  { %4874 = vperm.xlu0 %8412, %v4856_v49  }
0x29a4   :  { %v4582_v41 = vpop.f32.mrb[20].mxu0 }
0x29a5   :  { %v7983_v22 = vpop.f32.mrb[21].mxu0 }
0x29a7   :  { %5062 = vrot.lane.b32.xlu0 %v10009_v35, %s8881_s2 }
0x29ab   :  { %5072 = vrot.lane.b32.xlu0 %v10009_v35, %s8882_s0 }
0x2a16   :  { %v4860_v62 = vpop.permute.xlu0 %4859 }
0x2a17   :  { %v4877_v23 = vmul.f32 %v9936_v36, %v4860_v62  ;;  %v5183_v13 = vrot.slane %v4860_v62, %v9110_v6 }
0x2a19   :  { %v4881_v11 = vsel %vm91_vm1, %v4877_v23, 0.0 }
0x2a1a   :  { %v4882_v46 = vrot.slane %v4881_v11, 4  ;;  %v4865_v19 = vpop.permute.xlu0 %4864 }
0x2a1b   :  { %v4878_v20 = vmul.f32 %v9943_v17, %v4865_v19  ;;  %v5187_v55 = vrot.slane %v4865_v19, %v9110_v6 }
0x2a1c   :  { %v4883_v14 = vadd.f32 %v4882_v46, %v4881_v11 }
0x2a1d   :  { %v4888_v48 = vsel %vm91_vm1, %v4878_v20, 0.0  ;;  %v5196_v49 = vsel %vm477_vm2, %v5187_v55, %v5183_v13 }
0x2a1e   :  { %v4889_v21 = vrot.slane %v4888_v48, 4  ;;  %v4870_v4 = vpop.permute.xlu0 %4869  ;;  %v4884_v40 = vrot.slane %v4883_v14, 2 }
0x2a1f   :  { %v4879_v9 = vmul.f32 %v9951_v5, %v4870_v4  ;;  %v5191_v35 = vrot.slane %v4870_v4, %v9110_v6 }
0x2a20   :  { %v4890_v57 = vadd.f32 %v4889_v21, %v4888_v48  ;;  %v4885_v48 = vadd.f32 %v4884_v40, %v4883_v14 }
0x2a21   :  { %v4895_v45 = vsel %vm91_vm1, %v4879_v9, 0.0  ;;  %v5197_v19 = vsel %vm479_vm3, %v5191_v35, %v5196_v49 }
0x2a22   :  { %v4891_v29 = vrot.slane %v4890_v57, 2  ;;  %v4896_v16 = vrot.slane %v4895_v45, 4  ;;  %v4875_v42 = vpop.permute.xlu0 %4874 }
0x2a23   :  { %v4880_v22 = vmul.f32 %v9961_v43, %v4875_v42  ;;  %v5195_v23 = vrot.slane %v4875_v42, %v9110_v6  ;;  %v4886_v42 = vrot.slane %v4885_v48, 1 }
0x2a24   :  { %v4892_v11 = vadd.f32 %v4891_v29, %v4890_v57  ;;  %v4897_v46 = vadd.f32 %v4896_v16, %v4895_v45 }
0x2a25   :  { %v4902_v20 = vsel %vm91_vm1, %v4880_v22, 0.0  ;;  %v5198_v62 = vsel %vm481_vm4, %v5195_v23, %v5197_v19  ;;  %v4887_v49 = vadd.f32 %v4886_v42, %v4885_v48 }
0x2a26   :  { %v4898_v21 = vrot.slane %v4897_v46, 2  ;;  %v4903_v4 = vrot.slane %v4902_v20, 4  ;;  %7432 = vst.msk [vmem:[%s10642_s15 + $0x18] sm:$0xf] %vm484_vm5, %v5198_v62  ;;  %v4893_v55 = vrot.slane %v4892_v11, 1 }
0x2a28   :  { %v4899_v9 = vadd.f32 %v4898_v21, %v4897_v46  ;;  %v4904_v13 = vadd.f32 %v4903_v4, %v4902_v20  ;;  %v4894_v29 = vadd.f32 %v4893_v55, %v4892_v11  ;;  %v10117_v21 = vld [vmem:[%s10638_s11] ss:$0 sm:$0xff] }
0x2a2a   :  { %v4900_v57 = vrot.slane %v4899_v9, 1  ;;  %v4905_v45 = vrot.slane %v4904_v13, 2  ;;  %v4913_v14 = vsel %vm477_vm2, %v4894_v29, %v4887_v49 }
0x2a2c   :  { %v4906_v35 = vadd.f32 %v4905_v45, %v4904_v13  ;;  %v4901_v16 = vadd.f32 %v4900_v57, %v4899_v9 }
0x2a2e   :  { %v4907_v22 = vrot.slane %v4906_v35, 1  ;;  %v4914_v40 = vsel %vm479_vm3, %v4901_v16, %v4913_v14 }
0x2a30   :  { %v4908_v23 = vadd.f32 %v4907_v22, %v4906_v35 }
0x2a32   :  { %v4915_v19 = vsel %vm481_vm4, %v4908_v23, %v4914_v40 }
0x2a33   :  { %7996 = vmatmul.mubr.msk.f32.vlgmr.msra.gmra.mrb[46].mxu1 %vm91_vm1, %v4915_v19 }
0x2a34   :  { %8321 = vmatpush3.bf16.msra.mxu1 %v9236_v18  ;;  %8002 = vmatprep.mubr.msk.f32.mxu1 %vm8877_vm0, %v10647_v2 }
0x2a35   :  { %8322 = vmatprep.subr.bf16.mxu1 %v10645_v1 }
0x2a37   :  { %8003 = vmatmul.mubr.msk.f32.vlgmr.msra.gmra.mrb[48].mxu1 %vm91_vm1, %v4582_v41  ;;  %v5063_v41 = vpop.permute.xlu0 %5062 }
0x2a38   :  { %8324 = vmatpush3.bf16.msra.mxu1 %v9270_v51  ;;  %8009 = vmatprep.mubr.msk.f32.mxu1 %vm8877_vm0, %v10647_v2 }
0x2a39   :  { %8337 = vmatprep.subr.bf16.mxu1 %v10645_v1 }
0x2a3b   :  { %v5073_v45 = vpop.permute.xlu0 %5072 }
0x2b06   :  { %v4984_v11 = vpop.f32.mrb[46].mxu1 }
0x2b07   :  { %v7997_v46 = vpop.f32.mrb[47].mxu1 }
0x2b08   :  { %v10140_v46 = vld [vmem:[%s10640_s13] ss:$0 sm:$0xff] }
0x2b0a   :  { %v5057_v20 = vpop.f32.mrb[48].mxu1 }
0x2b0b   :  { %v5058_v62 = vadd.f32 %v5057_v20, %v4984_v11  ;;  %v8004_v48 = vpop.f32.mrb[49].mxu1 }
0x2b0d   :  { %v5061_v4 = vadd.f32 %v10117_v21, %v5058_v62 }
0x2b0f   :  { %v5065_v55 = vadd.f32 %v5063_v41, %v5061_v4 }
0x2b11   :  { %v7430_v9 = vmul.f32 -1.442695, %v5065_v55 }
0x2b13   :  { %8618 = vpow2.f32 %v7430_v9 }
0x2b1d   :  { %v8619_v13 = vpop.eup %8618 }
0x2b1e   :  { %v5069_v42 = vadd.f32 1.0, %v8619_v13 }
0x2b20   :  { %8620 = vrcp.f32 %v5069_v42 }
0x2b2a   :  { %v8621_v57 = vpop.eup %8620 }
0x2b2b   :  { %v5075_v29 = vmul.f32 %v8621_v57, %v5073_v45  ;;  %v5082_v22 = vsub.f32 1.0, %v8621_v57  ;;  %v5088_v14 = vmul.f32 %v8621_v57, %v9989_v47 }
0x2b2d   :  { %5077 = vrot.lane.b32.xlu0 %v5075_v29, %s8883_s22 }
0x2b9f   :  { %v5078_v35 = vpop.permute.xlu0 %5077 }
0x2ba0   :  { %v5080_v16 = vadd.f32 %v5078_v35, %v5061_v4 }
0x2ba2   :  { %8622 = vtanh.f32 %v5080_v16 }
0x2bac   :  { %v8623_v49 = vpop.eup %8622 }
0x2bad   :  { %5084 = vrot.lane.b32.xlu0 %v8623_v49, %s8881_s2 }
0x2c1f   :  { %v5085_v23 = vpop.permute.xlu0 %5084 }
0x2c20   :  { %v5087_v40 = vmul.f32 %v5085_v23, %v5082_v22 }
0x2c22   :  { %v10123_v19 = vadd.f32 %v5088_v14, %v5087_v40 }
0x2c24   :  { %5091 = vrot.lane.b32.xlu0 %v10123_v19, %s8881_s2 }
0x2c96   :  { %v5092_v11 = vpop.permute.xlu0 %5091 }
0x2c97   :  { %8010 = vmatmul.mubr.msk.f32.vlgmr.msra.gmra.mrb[50].mxu1 %vm91_vm1, %v5092_v11 }
0x2c98   :  { %8339 = vmatpush3.bf16.msra.mxu1 %v9028_v10  ;;  %8035 = vmatprep.mubr.msk.f32.mxu1 %vm8877_vm0, %v10647_v2 }
0x2c99   :  { %8340 = vmatprep.subr.bf16.mxu1 %v10645_v1 }
0x2c9b   :  { %8036 = vmatmul.mubr.msk.f32.vlgmr.msra.gmra.mrb[52].mxu1 %vm91_vm1, %v5092_v11 }
0x2c9c   :  { %8342 = vmatpush3.bf16.msra.mxu1 %v9206_v53  ;;  %8042 = vmatprep.mubr.msk.f32.mxu1 %vm8877_vm0, %v10647_v2 }
0x2c9d   :  { %8343 = vmatprep.subr.bf16.mxu1 %v10645_v1 }
0x2d6a   :  { %v5161_v47 = vpop.f32.mrb[50].mxu1 }
0x2d6b   :  { %v10143_v20 = vadd.f32 %v10140_v46, %v5161_v47  ;;  %v8011_v62 = vpop.f32.mrb[51].mxu1 }
0x2d6d   :  { %v5165_v48 = vsel %vm912_vm8, %v10143_v20, -inf }
0x2d6e   :  { %5166 = vmax.xlane.f32.xlu1 %v5165_v48  ;;  %v5361_v4 = vpop.f32.mrb[52].mxu1 }
0x2d6f   :  { %v10148_v41 = vadd.f32 %v9855_v24, %v5361_v4  ;;  %v8037_v55 = vpop.f32.mrb[53].mxu1 }
0x2d71   :  { %v5372_v9 = vrot.slane %v10148_v41, %v9065_v25 }
0x2d73   :  { %v5373_v13 = vcombine.high %v5372_v9, %v5372_v9  ;;  %v5380_v42 = vrot.slane %v5372_v9, %v9065_v25 }
0x2d75   :  { %v5387_v57 = vrot.slane %v5373_v13, %v9065_v25  ;;  %v5388_v45 = vcombine.high %v5380_v42, %v5380_v42  ;;  %v5393_v29 = vrot.slane %v5380_v42, %v9073_v30 }
0x2d77   :  { %v5389_v35 = vcombine.high %v5387_v57, %v5387_v57  ;;  %v5397_v16 = vrot.slane %v5387_v57, %v9073_v30  ;;  %v5401_v49 = vrot.slane %v5388_v45, %v9073_v30  ;;  %v5410_v24 = vadd.f32 %v5393_v29, %v9079_v34 }
0x2d79   :  { %v5405_v22 = vrot.slane %v5389_v35, %v9073_v30  ;;  %v5411_v23 = vadd.f32 %v5397_v16, %v9083_v38  ;;  %v5412_v14 = vadd.f32 %v5401_v49, %v9085_v39  ;;  %8624 = vtanh.f32 %v5410_v24 }
0x2d7b   :  { %v5413_v40 = vadd.f32 %v5405_v22, %v9090_v44  ;;  %8626 = vtanh.f32 %v5411_v23 }
0x2d7c   :  { %8628 = vtanh.f32 %v5412_v14 }
0x2d7d   :  { %8630 = vtanh.f32 %v5413_v40 }
0x2d83   :  { %v8625_v11 = vpop.eup %8624 }
0x2d84   :  { %v5418_v47 = vmul.f32 %v9872_v61, %v8625_v11 }
0x2d85   :  { %v8627_v62 = vpop.eup %8626 }
0x2d86   :  { %v8629_v48 = vpop.eup %8628  ;;  %v5422_v4 = vsel %vm91_vm1, %v5418_v47, 0.0  ;;  %v5419_v55 = vmul.f32 %v9872_v61, %v8627_v62 }
0x2d87   :  { %5423 = vadd.xlane.f32.xlu0 %v5422_v4  ;;  %v5420_v13 = vmul.f32 %v9872_v61, %v8629_v48  ;;  %v8631_v42 = vpop.eup %8630 }
0x2d88   :  { %v5425_v9 = vsel %vm91_vm1, %v5419_v55, 0.0  ;;  %v5421_v45 = vmul.f32 %v9872_v61, %v8631_v42 }
0x2d89   :  { %5426 = vadd.xlane.f32.xlu1 %v5425_v9  ;;  %v5428_v57 = vsel %vm91_vm1, %v5420_v13, 0.0 }
0x2d8a   :  { %v5431_v29 = vsel %vm91_vm1, %v5421_v45, 0.0 }
0x2d8d   :  { %5429 = vadd.xlane.f32.xlu1 %v5428_v57 }
0x2d91   :  { %5432 = vadd.xlane.f32.xlu1 %v5431_v29 }
0x2dfb   :  { %v10170_v35 = vpop.xlane.xlu1 %5166 }
0x2dfc   :  { %vm5202_vm11 = vcmp.eq.f32.partialorder %v10143_v20, %v10170_v35 }
0x2dfd   :  { %v5203_v16 = vsel %vm5202_vm11, %v9106_v3, 64 }
0x2dfe   :  { %v5204_v49 = vsel %vm912_vm8, %v5203_v16, 2147483647 }
0x2dff   :  { %v5206_v24 = vshra.s32 %v5204_v49, 16  ;;  %v5205_v16 = vand.u32 65535, %v5204_v49 }
0x2e01   :  { %v5208_v22 = vcvt.s32.f32 %v5206_v24 }
0x2e03   :  { %5209 = vmin.xlane.f32.xlu1 %v5208_v22 }
0x2e14   :  { %v5424_v14 = vpop.xlane.xlu0 %5423 }
0x2e15   :  { %v5434_v11 = vadd.f32 %v5424_v14, %v9112_v8 }
0x2e16   :  { %v5427_v23 = vpop.xlane.xlu1 %5426 }
0x2e17   :  { %v5435_v61 = vadd.f32 %v5427_v23, %v9112_v8  ;;  %v5445_v55 = vrot.slane %v5434_v11, %v9110_v6  ;;  %v5207_v23 = vcvt.s32.f32 %v5205_v16 }
0x2e19   :  { %v5449_v62 = vrot.slane %v5435_v61, %v9110_v6 }
0x2e1a   :  { %v5430_v40 = vpop.xlane.xlu1 %5429 }
0x2e1b   :  { %v5436_v47 = vadd.f32 %v5430_v40, %v9112_v8  ;;  %v5458_v13 = vsel %vm477_vm2, %v5449_v62, %v5445_v55 }
0x2e1d   :  { %v5453_v48 = vrot.slane %v5436_v47, %v9110_v6 }
0x2e1e   :  { %v5433_v4 = vpop.xlane.xlu1 %5432 }
0x2e1f   :  { %v5437_v9 = vadd.f32 %v5433_v4, %v9112_v8  ;;  %v5459_v57 = vsel %vm479_vm3, %v5453_v48, %v5458_v13 }
0x2e21   :  { %v5457_v42 = vrot.slane %v5437_v9, %v9110_v6 }
0x2e23   :  { %v5460_v45 = vsel %vm481_vm4, %v5457_v42, %v5459_v57 }
0x2e24   :  { %v5462_v29 = vsel %vm484_vm5, %v5460_v45, -inf }
0x2e25   :  { %5463 = vmax.xlane.f32.xlu1 %v5462_v29 }
0x2e90   :  { %v5210_v24 = vpop.xlane.xlu1 %5209 }
0x2e91   :  { %vm5211_vm12 = vcmp.eq.f32.partialorder %v5208_v22, %v5210_v24 }
0x2e92   :  { %v5212_v14 = vsel %vm5211_vm12, %v5207_v23, inf }
0x2e93   :  { %5213 = vmin.xlane.f32.xlu1 %v5212_v14 }
0x2eb2   :  { %v5464_v40 = vpop.xlane.xlu1 %5463 }
0x2eb3   :  { %v5469_v4 = vrot.slane %v5464_v40, %v9073_v30  ;;  %v5473_v62 = vrot.slane %v5464_v40, %v9127_v31  ;;  %v5477_v55 = vrot.slane %v5464_v40, %v9130_v32  ;;  %v5481_v48 = vrot.slane %v5464_v40, %v9135_v37 }
0x2eb5   :  { %v5486_v13 = vsub.f32 %v5434_v11, %v5469_v4  ;;  %v5487_v42 = vsub.f32 %v5435_v61, %v5473_v62  ;;  %v5488_v57 = vsub.f32 %v5436_v47, %v5477_v55  ;;  %v5489_v49 = vsub.f32 %v5437_v9, %v5481_v48 }
0x2eb6   :  { %v5216_v11 = vcvt.f32.s32 %v5210_v24  ;;  %v10655_v9 = vmov 0.0   ;;  %v10656_v55 = vmov 0.0|0.0  }
0x2eb7   :  { %v5490_v45 = vmul.f32 1.442695, %v5486_v13  ;;  %v5492_v29 = vmul.f32 1.442695, %v5487_v42  ;;  %v5494_v16 = vmul.f32 1.442695, %v5488_v57 }
0x2eb8   :  { %v5496_v22 = vmul.f32 1.442695, %v5489_v49  ;;  %v5217_v47 = vshll.u32 %v5216_v11, 16 }
0x2eb9   :  { %8632 = vpow2.f32 %v5490_v45 }
0x2eba   :  { %8634 = vpow2.f32 %v5492_v29 }
0x2ebb   :  { %8636 = vpow2.f32 %v5494_v16 }
0x2ebc   :  { %8638 = vpow2.f32 %v5496_v22 }
0x2ec3   :  { %v8633_v23 = vpop.eup %8632 }
0x2ec4   :  { %v8635_v14 = vpop.eup %8634  ;;  %5503 = vperm.xlu1 %8413, %v8633_v23  }
0x2ec5   :  { %5506 = vperm.xlu0 %8412, %v8635_v14   ;;  %v8637_v1 = vpop.eup %8636 }
0x2ec6   :  { %v8639_v2 = vpop.eup %8638 }
0x2ec8   :  { %5509 = vperm.xlu1 %8413, %v8637_v1  }
0x2ecc   :  { %5512 = vperm.xlu1 %8413, %v8639_v2  }
0x2f20   :  { %v5214_v61 = vpop.xlane.xlu1 %5213 }
0x2f21   :  { %v5215_v40 = vcvt.f32.s32 %v5214_v61 }
0x2f23   :  { %v5218_v4 = vadd.s32 %v5217_v47, %v5215_v40 }
0x2f25   :  { %vm5219_vm13 = vcmp.eq.s32.totalorder %v9106_v3, %v5218_v4 }
0x2f26   :  { %v7433_v62 = vsel %vm5219_vm13, 1.0, %v10655_v9 }
0x2f27   :  { %8029 = vmatmul.mubr.msk.f32.vlgmr.msra.gmra.mrb[22].mxu0 %vm216_vm7, %v7433_v62 }
0x2f28   :  { %8351 = vmatpush3.bf16.msra.mxu0 %v9148_v58  ;;  %8075 = vmatprep.mubr.msk.f32.mxu0 %vm8877_vm0, %v10655_v9 }
0x2f29   :  { %8352 = vmatprep.subr.bf16.mxu0 %v10656_v55 }
0x2f2c   :  { %8354 = vmatpush3.bf16.msra.mxu0 %v9154_v60 }
0x2f2d   :  { %8355 = vmatprep.subr.bf16.mxu0 %v10656_v55 }
0x2f30   :  { %8357 = vmatpush3.bf16.msra.mxu0 %v9164_v63 }
0x2f31   :  { %8358 = vmatprep.subr.bf16.mxu0 %v10656_v55 }
0x2f34   :  { %8360 = vmatpush3.bf16.msra.mxu0 %v9174_v7 }
0x2f35   :  { %8373 = vmatprep.subr.bf16.mxu0 %v10656_v55 }
0x2f43   :  { %v5504_v24 = vpop.permute.xlu1 %5503 }
0x2f44   :  { %v5507_v48 = vpop.permute.xlu0 %5506  ;;  %v5517_v57 = vrot.slane %v5504_v24, %v9110_v6 }
0x2f45   :  { %v5521_v42 = vrot.slane %v5507_v48, %v9110_v6 }
0x2f47   :  { %v5510_v13 = vpop.permute.xlu1 %5509  ;;  %v5530_v49 = vsel %vm477_vm2, %v5521_v42, %v5517_v57 }
0x2f48   :  { %v5525_v45 = vrot.slane %v5510_v13, %v9110_v6 }
0x2f4a   :  { %v5531_v22 = vsel %vm479_vm3, %v5525_v45, %v5530_v49 }
0x2f4b   :  { %v5513_v29 = vpop.permute.xlu1 %5512 }
0x2f4c   :  { %v5529_v16 = vrot.slane %v5513_v29, %v9110_v6 }
0x2f4e   :  { %v5532_v11 = vsel %vm481_vm4, %v5529_v16, %v5531_v22 }
0x2f4f   :  { %v5534_v61 = vsel %vm484_vm5, %v5532_v11, 0.0 }
0x2f50   :  { %5535 = vadd.xlane.f32.xlu1 %v5534_v61 }
0x2fdd   :  { %v5536_v47 = vpop.xlane.xlu1 %5535 }
0x2fde   :  { %v5541_v40 = vrot.slane %v5536_v47, %v9073_v30  ;;  %v5545_v4 = vrot.slane %v5536_v47, %v9127_v31  ;;  %v5549_v62 = vrot.slane %v5536_v47, %v9130_v32  ;;  %v5553_v24 = vrot.slane %v5536_v47, %v9135_v37 }
0x2fe0   :  { %8640 = vrcp.f32 %v5541_v40 }
0x2fe1   :  { %8642 = vrcp.f32 %v5545_v4 }
0x2fe2   :  { %8644 = vrcp.f32 %v5549_v62 }
0x2fe3   :  { %8646 = vrcp.f32 %v5553_v24 }
0x2fea   :  { %v8641_v48 = vpop.eup %8640 }
0x2feb   :  { %v5559_v13 = vmul.f32 %v8641_v48, %v8633_v23  ;;  %v8643_v42 = vpop.eup %8642 }
0x2fec   :  { %v5561_v57 = vmul.f32 %v8643_v42, %v8635_v14  ;;  %v8645_v45 = vpop.eup %8644 }
0x2fed   :  { %5568 = vperm.xlu0 %8412, %v5559_v13   ;;  %v5563_v29 = vmul.f32 %v8645_v45, %v8637_v1  ;;  %v8647_v49 = vpop.eup %8646 }
0x2fee   :  { %v5565_v16 = vmul.f32 %v8647_v49, %v8639_v2 }
0x2ff1   :  { %5573 = vperm.xlu0 %8412, %v5561_v57  }
0x2ff5   :  { %5578 = vperm.xlu0 %8412, %v5563_v29  }
0x2ff9   :  { %5583 = vperm.xlu0 %8412, %v5565_v16  }
0x2ffa   :  { %v5291_v22 = vpop.f32.mrb[22].mxu0 }
0x2ffb   :  { %v8030_v11 = vpop.f32.mrb[23].mxu0 }
0x2ffd   :  { %5771 = vrot.lane.b32.xlu0 %v10148_v41, %s8881_s2 }
0x3001   :  { %5781 = vrot.lane.b32.xlu0 %v10148_v41, %s8882_s0 }
0x306c   :  { %v5569_v61 = vpop.permute.xlu0 %5568 }
0x306d   :  { %v5586_v23 = vmul.f32 %v9936_v36, %v5569_v61  ;;  %v5892_v36 = vrot.slane %v5569_v61, %v9110_v6 }
0x306f   :  { %v5590_v14 = vsel %vm91_vm1, %v5586_v23, 0.0 }
0x3070   :  { %v5591_v47 = vrot.slane %v5590_v14, 4  ;;  %v5574_v40 = vpop.permute.xlu0 %5573 }
0x3071   :  { %v5587_v1 = vmul.f32 %v9943_v17, %v5574_v40  ;;  %v5896_v48 = vrot.slane %v5574_v40, %v9110_v6 }
0x3072   :  { %v5592_v4 = vadd.f32 %v5591_v47, %v5590_v14 }
0x3073   :  { %v5597_v2 = vsel %vm91_vm1, %v5587_v1, 0.0  ;;  %v5905_v16 = vsel %vm477_vm2, %v5896_v48, %v5892_v36 }
0x3074   :  { %v5598_v62 = vrot.slane %v5597_v2, 4  ;;  %v5579_v24 = vpop.permute.xlu0 %5578  ;;  %v5593_v45 = vrot.slane %v5592_v4, 2 }
0x3075   :  { %v5588_v13 = vmul.f32 %v9951_v5, %v5579_v24  ;;  %v5900_v41 = vrot.slane %v5579_v24, %v9110_v6 }
0x3076   :  { %v5599_v42 = vadd.f32 %v5598_v62, %v5597_v2  ;;  %v5594_v1 = vadd.f32 %v5593_v45, %v5592_v4 }
0x3077   :  { %v5604_v57 = vsel %vm91_vm1, %v5588_v13, 0.0  ;;  %v5906_v5 = vsel %vm479_vm3, %v5900_v41, %v5905_v16 }
0x3078   :  { %v5600_v29 = vrot.slane %v5599_v42, 2  ;;  %v5605_v49 = vrot.slane %v5604_v57, 4  ;;  %v5584_v17 = vpop.permute.xlu0 %5583  ;;  %v5595_v13 = vrot.slane %v5594_v1, 1 }
0x3079   :  { %v5589_v11 = vmul.f32 %v9961_v43, %v5584_v17  ;;  %v5904_v23 = vrot.slane %v5584_v17, %v9110_v6 }
0x307a   :  { %v5601_v14 = vadd.f32 %v5600_v29, %v5599_v42  ;;  %v5606_v47 = vadd.f32 %v5605_v49, %v5604_v57  ;;  %v5596_v49 = vadd.f32 %v5595_v13, %v5594_v1 }
0x307b   :  { %v5611_v40 = vsel %vm91_vm1, %v5589_v11, 0.0  ;;  %v5907_v61 = vsel %vm481_vm4, %v5904_v23, %v5906_v5 }
0x307c   :  { %v5607_v2 = vrot.slane %v5606_v47, 2  ;;  %v5612_v62 = vrot.slane %v5611_v40, 4  ;;  %7440 = vst.msk [vmem:[%s10642_s15 + $0x1c] sm:$0xf] %vm484_vm5, %v5907_v61  ;;  %v5602_v24 = vrot.slane %v5601_v14, 1  ;;  %v5772_v1 = vpop.permute.xlu0 %5771 }
0x307e   :  { %v5608_v43 = vadd.f32 %v5607_v2, %v5606_v47  ;;  %v5613_v48 = vadd.f32 %v5612_v62, %v5611_v40  ;;  %v5603_v57 = vadd.f32 %v5602_v24, %v5601_v14 }
0x3080   :  { %v5609_v42 = vrot.slane %v5608_v43, 1  ;;  %v5614_v36 = vrot.slane %v5613_v48, 2  ;;  %v5622_v4 = vsel %vm477_vm2, %v5603_v57, %v5596_v49 }
0x3082   :  { %v5615_v41 = vadd.f32 %v5614_v36, %v5613_v48  ;;  %v5610_v29 = vadd.f32 %v5609_v42, %v5608_v43  ;;  %v5782_v48 = vpop.permute.xlu0 %5781 }
0x3084   :  { %v5616_v17 = vrot.slane %v5615_v41, 1  ;;  %v5623_v45 = vsel %vm479_vm3, %v5610_v29, %v5622_v4 }
0x3086   :  { %v5617_v16 = vadd.f32 %v5616_v17, %v5615_v41 }
0x3088   :  { %v5624_v11 = vsel %vm481_vm4, %v5617_v16, %v5623_v45 }
0x3089   :  { %8043 = vmatmul.mubr.msk.f32.vlgmr.msra.gmra.mrb[54].mxu1 %vm91_vm1, %v5624_v11 }
0x308a   :  { %8345 = vmatpush3.bf16.msra.mxu1 %v9236_v18  ;;  %8049 = vmatprep.mubr.msk.f32.mxu1 %vm8877_vm0, %v10655_v9 }
0x308b   :  { %8346 = vmatprep.subr.bf16.mxu1 %v10656_v55 }
0x308d   :  { %8050 = vmatmul.mubr.msk.f32.vlgmr.msra.gmra.mrb[56].mxu1 %vm91_vm1, %v5291_v22 }
0x308e   :  { %8348 = vmatpush3.bf16.msra.mxu1 %v9270_v51  ;;  %8056 = vmatprep.mubr.msk.f32.mxu1 %vm8877_vm0, %v10655_v9 }
0x308f   :  { %8361 = vmatprep.subr.bf16.mxu1 %v10656_v55 }
0x315c   :  { %v5693_v23 = vpop.f32.mrb[54].mxu1 }
0x315d   :  { %v8044_v14 = vpop.f32.mrb[55].mxu1 }
0x3160   :  { %v5766_v47 = vpop.f32.mrb[56].mxu1 }
0x3161   :  { %v5767_v5 = vadd.f32 %v5766_v47, %v5693_v23  ;;  %v8051_v40 = vpop.f32.mrb[57].mxu1  ;;  %v10279_v47 = vld [vmem:[%s10631_s4] ss:$0 sm:$0xff] }
0x3163   :  { %v5770_v61 = vadd.f32 %v10117_v21, %v5767_v5 }
0x3165   :  { %v5774_v2 = vadd.f32 %v5772_v1, %v5770_v61 }
0x3167   :  { %v7438_v62 = vmul.f32 -1.442695, %v5774_v2 }
0x3169   :  { %8648 = vpow2.f32 %v7438_v62 }
0x3173   :  { %v8649_v24 = vpop.eup %8648 }
0x3174   :  { %v5778_v22 = vadd.f32 1.0, %v8649_v24 }
0x3176   :  { %8650 = vrcp.f32 %v5778_v22 }
0x3180   :  { %v8651_v43 = vpop.eup %8650 }
0x3181   :  { %v5784_v13 = vmul.f32 %v8651_v43, %v5782_v48  ;;  %v5791_v41 = vsub.f32 1.0, %v8651_v43  ;;  %v5797_v49 = vmul.f32 %v8651_v43, %v10123_v19 }
0x3183   :  { %5786 = vrot.lane.b32.xlu0 %v5784_v13, %s8883_s22 }
0x31f5   :  { %v5787_v42 = vpop.permute.xlu0 %5786 }
0x31f6   :  { %v5789_v36 = vadd.f32 %v5787_v42, %v5770_v61 }
0x31f8   :  { %8652 = vtanh.f32 %v5789_v36 }
0x3202   :  { %v8653_v57 = vpop.eup %8652 }
0x3203   :  { %5793 = vrot.lane.b32.xlu0 %v8653_v57, %s8881_s2 }
0x3275   :  { %v5794_v29 = vpop.permute.xlu0 %5793 }
0x3276   :  { %v5796_v17 = vmul.f32 %v5794_v29, %v5791_v41 }
0x3278   :  { %v10257_v16 = vadd.f32 %v5797_v49, %v5796_v17  ;;  %v10296_v17 = vld [vmem:[#allocation6] ss:$0 sm:$0xff] }
0x327a   :  { %5800 = vrot.lane.b32.xlu0 %v10257_v16, %s8881_s2 }
0x32ec   :  { %v5801_v4 = vpop.permute.xlu0 %5800 }
0x32ed   :  { %8057 = vmatmul.mubr.msk.f32.vlgmr.msra.gmra.mrb[58].mxu1 %vm91_vm1, %v5801_v4 }
0x32ee   :  { %8363 = vmatpush3.bf16.msra.mxu1 %v9028_v10  ;;  %8082 = vmatprep.mubr.msk.f32.mxu1 %vm8877_vm0, %v10655_v9 }
0x32ef   :  { %8364 = vmatprep.subr.bf16.mxu1 %v10656_v55 }
0x32f1   :  { %8083 = vmatmul.mubr.msk.f32.vlgmr.msra.gmra.mrb[60].mxu1 %vm91_vm1, %v5801_v4 }
0x32f2   :  { %8366 = vmatpush3.bf16.msra.mxu1 %v9206_v53  ;;  %8089 = vmatprep.mubr.msk.f32.mxu1 %vm8877_vm0, %v10655_v9 }
0x32f3   :  { %8367 = vmatprep.subr.bf16.mxu1 %v10656_v55 }
0x33c0   :  { %v5870_v19 = vpop.f32.mrb[58].mxu1 }
0x33c1   :  { %v10272_v45 = vadd.f32 %v10140_v46, %v5870_v19  ;;  %v8058_v11 = vpop.f32.mrb[59].mxu1 }
0x33c3   :  { %10657 = vst [vmem:[#allocation15_spill] sm:$0xff] %v10272_v45  ;;  %v5874_v23 = vsel %vm912_vm8, %v10272_v45, -inf }
0x33c4   :  { %5875 = vmax.xlane.f32.xlu1 %v5874_v23  ;;  %v6070_v14 = vpop.f32.mrb[60].mxu1 }
0x33c5   :  { %v10282_v5 = vadd.f32 %v10279_v47, %v6070_v14  ;;  %v8084_v40 = vpop.f32.mrb[61].mxu1 }
0x33c7   :  { %v6081_v61 = vrot.slane %v10282_v5, %v9065_v25 }
0x33c9   :  { %v6082_v1 = vcombine.high %v6081_v61, %v6081_v61  ;;  %v6089_v2 = vrot.slane %v6081_v61, %v9065_v25 }
0x33cb   :  { %v6096_v62 = vrot.slane %v6082_v1, %v9065_v25  ;;  %v6097_v24 = vcombine.high %v6089_v2, %v6089_v2  ;;  %v6102_v22 = vrot.slane %v6089_v2, %v9073_v30 }
0x33cd   :  { %v6098_v43 = vcombine.high %v6096_v62, %v6096_v62  ;;  %v6106_v48 = vrot.slane %v6096_v62, %v9073_v30  ;;  %v6110_v13 = vrot.slane %v6097_v24, %v9073_v30  ;;  %v6119_v42 = vadd.f32 %v6102_v22, %v9079_v34 }
0x33cf   :  { %v6114_v36 = vrot.slane %v6098_v43, %v9073_v30  ;;  %v6120_v57 = vadd.f32 %v6106_v48, %v9083_v38  ;;  %v6121_v41 = vadd.f32 %v6110_v13, %v9085_v39  ;;  %8654 = vtanh.f32 %v6119_v42 }
0x33d1   :  { %v6122_v29 = vadd.f32 %v6114_v36, %v9090_v44  ;;  %8656 = vtanh.f32 %v6120_v57 }
0x33d2   :  { %8658 = vtanh.f32 %v6121_v41 }
0x33d3   :  { %8660 = vtanh.f32 %v6122_v29 }
0x33d9   :  { %v8655_v49 = vpop.eup %8654 }
0x33da   :  { %v6127_v4 = vmul.f32 %v10296_v17, %v8655_v49 }
0x33db   :  { %v8657_v19 = vpop.eup %8656 }
0x33dc   :  { %v8659_v11 = vpop.eup %8658  ;;  %v6131_v23 = vsel %vm91_vm1, %v6127_v4, 0.0  ;;  %v6128_v14 = vmul.f32 %v10296_v17, %v8657_v19 }
0x33dd   :  { %6132 = vadd.xlane.f32.xlu0 %v6131_v23  ;;  %v6129_v61 = vmul.f32 %v10296_v17, %v8659_v11  ;;  %v8661_v1 = vpop.eup %8660 }
0x33de   :  { %v6134_v40 = vsel %vm91_vm1, %v6128_v14, 0.0  ;;  %v6130_v62 = vmul.f32 %v10296_v17, %v8661_v1 }
0x33df   :  { %6135 = vadd.xlane.f32.xlu1 %v6134_v40  ;;  %v6137_v2 = vsel %vm91_vm1, %v6129_v61, 0.0 }
0x33e0   :  { %v6140_v24 = vsel %vm91_vm1, %v6130_v62, 0.0 }
0x33e3   :  { %6138 = vadd.xlane.f32.xlu1 %v6137_v2 }
0x33e7   :  { %6141 = vadd.xlane.f32.xlu1 %v6140_v24 }
0x3451   :  { %v10306_v22 = vpop.xlane.xlu1 %5875 }
0x3452   :  { %10658 = vst [vmem:[#allocation16_spill] sm:$0xff] %v10306_v22  ;;  %vm5911_vm14 = vcmp.eq.f32.partialorder %v10272_v45, %v10306_v22 }
0x3453   :  { %v5912_v43 = vsel %vm5911_vm14, %v9106_v3, 64 }
0x3454   :  { %v5913_v48 = vsel %vm912_vm8, %v5912_v43, 2147483647 }
0x3455   :  { %v5915_v13 = vshra.s32 %v5913_v48, 16  ;;  %v5914_v43 = vand.u32 65535, %v5913_v48 }
0x3457   :  { %v5917_v42 = vcvt.s32.f32 %v5915_v13 }
0x3459   :  { %5918 = vmin.xlane.f32.xlu1 %v5917_v42 }
0x346a   :  { %v6133_v57 = vpop.xlane.xlu0 %6132 }
0x346b   :  { %v6143_v49 = vadd.f32 %v6133_v57, %v9112_v8 }
0x346c   :  { %v6136_v36 = vpop.xlane.xlu1 %6135 }
0x346d   :  { %v6144_v41 = vadd.f32 %v6136_v36, %v9112_v8  ;;  %v6154_v14 = vrot.slane %v6143_v49, %v9110_v6  ;;  %v5916_v36 = vcvt.s32.f32 %v5914_v43 }
0x346f   :  { %v6158_v19 = vrot.slane %v6144_v41, %v9110_v6 }
0x3470   :  { %v6139_v29 = vpop.xlane.xlu1 %6138 }
0x3471   :  { %v6145_v4 = vadd.f32 %v6139_v29, %v9112_v8  ;;  %v6167_v61 = vsel %vm477_vm2, %v6158_v19, %v6154_v14 }
0x3473   :  { %v6162_v11 = vrot.slane %v6145_v4, %v9110_v6 }
0x3474   :  { %v6142_v23 = vpop.xlane.xlu1 %6141 }
0x3475   :  { %v6146_v40 = vadd.f32 %v6142_v23, %v9112_v8  ;;  %v6168_v2 = vsel %vm479_vm3, %v6162_v11, %v6167_v61 }
0x3477   :  { %v6166_v1 = vrot.slane %v6146_v40, %v9110_v6 }
0x3479   :  { %v6169_v62 = vsel %vm481_vm4, %v6166_v1, %v6168_v2 }
0x347a   :  { %v6171_v24 = vsel %vm484_vm5, %v6169_v62, -inf }
0x347b   :  { %6172 = vmax.xlane.f32.xlu1 %v6171_v24 }
0x34e6   :  { %v5919_v13 = vpop.xlane.xlu1 %5918 }
0x34e7   :  { %vm5920_vm15 = vcmp.eq.f32.partialorder %v5917_v42, %v5919_v13 }
0x34e8   :  { %v5921_v57 = vsel %vm5920_vm15, %v5916_v36, inf }
0x34e9   :  { %5922 = vmin.xlane.f32.xlu1 %v5921_v57 }
0x3508   :  { %v6173_v29 = vpop.xlane.xlu1 %6172 }
0x3509   :  { %v6178_v23 = vrot.slane %v6173_v29, %v9073_v30  ;;  %v6182_v19 = vrot.slane %v6173_v29, %v9127_v31  ;;  %v6186_v14 = vrot.slane %v6173_v29, %v9130_v32  ;;  %v6190_v11 = vrot.slane %v6173_v29, %v9135_v37 }
0x350b   :  { %v6195_v61 = vsub.f32 %v6143_v49, %v6178_v23  ;;  %v6196_v1 = vsub.f32 %v6144_v41, %v6182_v19  ;;  %v6197_v2 = vsub.f32 %v6145_v4, %v6186_v14  ;;  %v6198_v48 = vsub.f32 %v6146_v40, %v6190_v11 }
0x350c   :  { %v5925_v49 = vcvt.f32.s32 %v5919_v13 }
0x350d   :  { %v6199_v62 = vmul.f32 1.442695, %v6195_v61  ;;  %v6201_v24 = vmul.f32 1.442695, %v6196_v1  ;;  %v6203_v43 = vmul.f32 1.442695, %v6197_v2 }
0x350e   :  { %v6205_v42 = vmul.f32 1.442695, %v6198_v48  ;;  %v5926_v4 = vshll.u32 %v5925_v49, 16 }
0x350f   :  { %8662 = vpow2.f32 %v6199_v62 }
0x3510   :  { %8664 = vpow2.f32 %v6201_v24 }
0x3511   :  { %8666 = vpow2.f32 %v6203_v43 }
0x3512   :  { %8668 = vpow2.f32 %v6205_v42 }
0x3519   :  { %v8663_v36 = vpop.eup %8662 }
0x351a   :  { %v8665_v57 = vpop.eup %8664  ;;  %6212 = vperm.xlu1 %8413, %v8663_v36  }
0x351b   :  { %6215 = vperm.xlu0 %8412, %v8665_v57   ;;  %v8667_v45 = vpop.eup %8666 }
0x351c   :  { %v8669_v22 = vpop.eup %8668 }
0x351e   :  { %6218 = vperm.xlu1 %8413, %v8667_v45  }
0x3522   :  { %6221 = vperm.xlu1 %8413, %v8669_v22  }
0x3576   :  { %v5923_v41 = vpop.xlane.xlu1 %5922 }
0x3577   :  { %v5924_v29 = vcvt.f32.s32 %v5923_v41 }
0x3579   :  { %v5927_v23 = vadd.s32 %v5926_v4, %v5924_v29 }
0x357b   :  { %vm5928_vm6 = vcmp.eq.s32.totalorder %v9106_v3, %v5927_v23 }
0x357c   :  { %v7441_v40 = vsel %vm5928_vm6, 1.0, %v10655_v9 }
0x357d   :  { %8076 = vmatmul.mubr.msk.f32.vlgmr.msra.gmra.mrb[24].mxu0 %vm216_vm7, %v7441_v40 }
0x357e   :  { %8375 = vmatpush3.bf16.msra.mxu0 %v9148_v58  ;;  %8122 = vmatprep.mubr.msk.f32.mxu0 %vm8877_vm0, %v10655_v9 }
0x357f   :  { %8376 = vmatprep.subr.bf16.mxu0 %v10656_v55 }
0x3582   :  { %8378 = vmatpush3.bf16.msra.mxu0 %v9154_v60 }
0x3583   :  { %8379 = vmatprep.subr.bf16.mxu0 %v10656_v55 }
0x3586   :  { %8381 = vmatpush3.bf16.msra.mxu0 %v9164_v63 }
0x3587   :  { %8382 = vmatprep.subr.bf16.mxu0 %v10656_v55 }
0x358a   :  { %8384 = vmatpush3.bf16.msra.mxu0 %v9174_v7 }
0x3599   :  { %v6213_v13 = vpop.permute.xlu1 %6212 }
0x359a   :  { %v6216_v19 = vpop.permute.xlu0 %6215  ;;  %v6226_v11 = vrot.slane %v6213_v13, %v9110_v6 }
0x359b   :  { %v6230_v58 = vrot.slane %v6216_v19, %v9110_v6 }
0x359d   :  { %v6219_v14 = vpop.permute.xlu1 %6218  ;;  %v6239_v60 = vsel %vm477_vm2, %v6230_v58, %v6226_v11 }
0x359e   :  { %v6234_v61 = vrot.slane %v6219_v14, %v9110_v6 }
0x35a0   :  { %v6240_v63 = vsel %vm479_vm3, %v6234_v61, %v6239_v60  ;;  %v10366_v60 = vld [vmem:[%s10654_s20 + $0x8] sm:$0xff] }
0x35a1   :  { %v6222_v1 = vpop.permute.xlu1 %6221 }
0x35a2   :  { %v6238_v2 = vrot.slane %v6222_v1, %v9110_v6 }
0x35a4   :  { %v6241_v62 = vsel %vm481_vm4, %v6238_v2, %v6240_v63 }
0x35a5   :  { %v6243_v7 = vsel %vm484_vm5, %v6241_v62, 0.0 }
0x35a6   :  { %6244 = vadd.xlane.f32.xlu1 %v6243_v7 }
0x3633   :  { %v6245_v24 = vpop.xlane.xlu1 %6244 }
0x3634   :  { %v6250_v48 = vrot.slane %v6245_v24, %v9073_v30  ;;  %v6254_v43 = vrot.slane %v6245_v24, %v9127_v31  ;;  %v6258_v42 = vrot.slane %v6245_v24, %v9130_v32  ;;  %v6262_v49 = vrot.slane %v6245_v24, %v9135_v37 }
0x3636   :  { %8670 = vrcp.f32 %v6250_v48  ;;  %v10374_v48 = vld [vmem:[%s10654_s20 + $0x10] sm:$0xff] }
0x3637   :  { %8672 = vrcp.f32 %v6254_v43 }
0x3638   :  { %8674 = vrcp.f32 %v6258_v42 }
0x3639   :  { %8676 = vrcp.f32 %v6262_v49 }
0x3640   :  { %v8671_v41 = vpop.eup %8670 }
0x3641   :  { %v6268_v4 = vmul.f32 %v8671_v41, %v8663_v36  ;;  %v8673_v29 = vpop.eup %8672  ;;  %v10359_v36 = vld [vmem:[%s10654_s20] sm:$0xff] }
0x3642   :  { %v6270_v23 = vmul.f32 %v8673_v29, %v8665_v57  ;;  %v8675_v40 = vpop.eup %8674 }
0x3643   :  { %6277 = vperm.xlu0 %8412, %v6268_v4   ;;  %v6272_v13 = vmul.f32 %v8675_v40, %v8667_v45  ;;  %v8677_v19 = vpop.eup %8676 }
0x3644   :  { %v6274_v14 = vmul.f32 %v8677_v19, %v8669_v22 }
0x3647   :  { %6282 = vperm.xlu0 %8412, %v6270_v23  }
0x364b   :  { %6287 = vperm.xlu0 %8412, %v6272_v13  }
0x364f   :  { %6292 = vperm.xlu0 %8412, %v6274_v14   ;;  %v10384_v14 = vld [vmem:[%s10654_s20 + $0x18] sm:$0xff] }
0x3650   :  { %v6000_v58 = vpop.f32.mrb[24].mxu0 }
0x3651   :  { %v8077_v11 = vpop.f32.mrb[25].mxu0 }
0x3653   :  { %6480 = vrot.lane.b32.xlu0 %v10282_v5, %s8881_s2 }
0x3657   :  { %6490 = vrot.lane.b32.xlu0 %v10282_v5, %s8882_s0 }
0x36c2   :  { %v6278_v61 = vpop.permute.xlu0 %6277 }
0x36c3   :  { %v6295_v45 = vmul.f32 %v10359_v36, %v6278_v61  ;;  %v6601_v41 = vrot.slane %v6278_v61, %v9110_v6 }
0x36c5   :  { %v6299_v57 = vsel %vm91_vm1, %v6295_v45, 0.0 }
0x36c6   :  { %v6300_v22 = vrot.slane %v6299_v57, 4  ;;  %v6283_v1 = vpop.permute.xlu0 %6282 }
0x36c7   :  { %v6296_v2 = vmul.f32 %v10366_v60, %v6283_v1  ;;  %v6605_v24 = vrot.slane %v6283_v1, %v9110_v6 }
0x36c8   :  { %v6301_v63 = vadd.f32 %v6300_v22, %v6299_v57 }
0x36c9   :  { %v6306_v5 = vsel %vm91_vm1, %v6296_v2, 0.0  ;;  %v6614_v19 = vsel %vm477_vm2, %v6605_v24, %v6601_v41 }
0x36ca   :  { %v6307_v62 = vrot.slane %v6306_v5, 4  ;;  %v6288_v7 = vpop.permute.xlu0 %6287  ;;  %v6302_v29 = vrot.slane %v6301_v63, 2 }
0x36cb   :  { %v6297_v43 = vmul.f32 %v10374_v48, %v6288_v7  ;;  %v6609_v49 = vrot.slane %v6288_v7, %v9110_v6 }
0x36cc   :  { %v6308_v42 = vadd.f32 %v6307_v62, %v6306_v5  ;;  %v6303_v5 = vadd.f32 %v6302_v29, %v6301_v63 }
0x36cd   :  { %v6313_v4 = vsel %vm91_vm1, %v6297_v43, 0.0  ;;  %v6615_v61 = vsel %vm479_vm3, %v6609_v49, %v6614_v19 }
0x36ce   :  { %v6309_v23 = vrot.slane %v6308_v42, 2  ;;  %v6314_v40 = vrot.slane %v6313_v4, 4  ;;  %v6293_v13 = vpop.permute.xlu0 %6292 }
0x36cf   :  { %v6298_v11 = vmul.f32 %v10384_v14, %v6293_v13  ;;  %v6613_v45 = vrot.slane %v6293_v13, %v9110_v6  ;;  %v6304_v13 = vrot.slane %v6303_v5, 1 }
0x36d0   :  { %v6310_v57 = vadd.f32 %v6309_v23, %v6308_v42  ;;  %v6315_v22 = vadd.f32 %v6314_v40, %v6313_v4 }
0x36d1   :  { %v6320_v1 = vsel %vm91_vm1, %v6298_v11, 0.0  ;;  %v6616_v2 = vsel %vm481_vm4, %v6613_v45, %v6615_v61  ;;  %v6305_v19 = vadd.f32 %v6304_v13, %v6303_v5 }
0x36d2   :  { %v6316_v62 = vrot.slane %v6315_v22, 2  ;;  %v6321_v7 = vrot.slane %v6320_v1, 4  ;;  %7448 = vst.msk [vmem:[%s10642_s15 + $0x20] sm:$0xf] %vm484_vm5, %v6616_v2  ;;  %v6311_v24 = vrot.slane %v6310_v57, 1 }
0x36d4   :  { %v6317_v43 = vadd.f32 %v6316_v62, %v6315_v22  ;;  %v6322_v41 = vadd.f32 %v6321_v7, %v6320_v1  ;;  %v6312_v23 = vadd.f32 %v6311_v24, %v6310_v57  ;;  %v6481_v7 = vpop.permute.xlu0 %6480 }
0x36d6   :  { %v6318_v42 = vrot.slane %v6317_v43, 1  ;;  %v6323_v4 = vrot.slane %v6322_v41, 2  ;;  %v6331_v63 = vsel %vm477_vm2, %v6312_v23, %v6305_v19 }
0x36d8   :  { %v6324_v49 = vadd.f32 %v6323_v4, %v6322_v41  ;;  %v6319_v40 = vadd.f32 %v6318_v42, %v6317_v43  ;;  %v6491_v42 = vpop.permute.xlu0 %6490 }
0x36da   :  { %v6325_v11 = vrot.slane %v6324_v49, 1  ;;  %v6332_v29 = vsel %vm479_vm3, %v6319_v40, %v6331_v63 }
0x36dc   :  { %v6326_v45 = vadd.f32 %v6325_v11, %v6324_v49 }
0x36de   :  { %v6333_v61 = vsel %vm481_vm4, %v6326_v45, %v6332_v29 }
0x36df   :  { %8090 = vmatmul.mubr.msk.f32.vlgmr.msra.gmra.mrb[62].mxu1 %vm91_vm1, %v6333_v61 }
0x36e0   :  { %8369 = vmatpush3.bf16.msra.mxu1 %v9236_v18  ;;  %8096 = vmatprep.mubr.msk.f32.mxu1 %vm8877_vm0, %v10655_v9 }
0x36e1   :  { %8370 = vmatprep.subr.bf16.mxu1 %v10656_v55 }
0x36e3   :  { %8097 = vmatmul.mubr.msk.f32.vlgmr.msra.gmra.mrb[64].mxu1 %vm91_vm1, %v6000_v58 }
0x36e4   :  { %8372 = vmatpush3.bf16.msra.mxu1 %v9270_v51  ;;  %8103 = vmatprep.mubr.msk.f32.mxu1 %vm8877_vm0, %v10655_v9 }
0x36e5   :  { %8385 = vmatprep.subr.bf16.mxu1 %v10656_v55 }
0x37b2   :  { %v6402_v57 = vpop.f32.mrb[62].mxu1 }
0x37b3   :  { %v8091_v22 = vpop.f32.mrb[63].mxu1 }
0x37b6   :  { %v6475_v1 = vpop.f32.mrb[64].mxu1 }
0x37b7   :  { %v6476_v2 = vadd.f32 %v6475_v1, %v6402_v57  ;;  %v8098_v5 = vpop.f32.mrb[65].mxu1 }
0x37b9   :  { %v6479_v62 = vadd.f32 %v10117_v21, %v6476_v2 }
0x37bb   :  { %v6483_v24 = vadd.f32 %v6481_v7, %v6479_v62 }
0x37bd   :  { %v7446_v43 = vmul.f32 -1.442695, %v6483_v24 }
0x37bf   :  { %8678 = vpow2.f32 %v7446_v43 }
0x37c9   :  { %v8679_v41 = vpop.eup %8678 }
0x37ca   :  { %v6487_v58 = vadd.f32 1.0, %v8679_v41 }
0x37cc   :  { %8680 = vrcp.f32 %v6487_v58 }
0x37d6   :  { %v8681_v13 = vpop.eup %8680 }
0x37d7   :  { %v6493_v4 = vmul.f32 %v8681_v13, %v6491_v42  ;;  %v6500_v19 = vsub.f32 1.0, %v8681_v13  ;;  %v6506_v11 = vmul.f32 %v8681_v13, %v10257_v16 }
0x37d9   :  { %6495 = vrot.lane.b32.xlu0 %v6493_v4, %s8883_s22 }
0x384b   :  { %v6496_v23 = vpop.permute.xlu0 %6495 }
0x384c   :  { %v6498_v49 = vadd.f32 %v6496_v23, %v6479_v62 }
0x384e   :  { %8682 = vtanh.f32 %v6498_v49 }
0x3858   :  { %v8683_v40 = vpop.eup %8682 }
0x3859   :  { %6502 = vrot.lane.b32.xlu0 %v8683_v40, %s8881_s2 }
0x38cb   :  { %v6503_v21 = vpop.permute.xlu0 %6502 }
0x38cc   :  { %v6505_v45 = vmul.f32 %v6503_v21, %v6500_v19 }
0x38ce   :  { %v10412_v63 = vadd.f32 %v6506_v11, %v6505_v45 }
0x38d0   :  { %6509 = vrot.lane.b32.xlu0 %v10412_v63, %s8881_s2 }
0x3942   :  { %v6510_v29 = vpop.permute.xlu0 %6509 }
0x3943   :  { %8104 = vmatmul.mubr.msk.f32.vlgmr.msra.gmra.mrb[66].mxu1 %vm91_vm1, %v6510_v29 }
0x3944   :  { %8387 = vmatpush3.bf16.msra.mxu1 %v9028_v10  ;;  %8129 = vmatprep.mubr.msk.f32.mxu1 %vm8877_vm0, %v10655_v9 }
0x3945   :  { %8388 = vmatprep.subr.bf16.mxu1 %v10656_v55 }
0x3947   :  { %8130 = vmatmul.mubr.msk.f32.vlgmr.msra.gmra.mrb[68].mxu1 %vm91_vm1, %v6510_v29 }
0x3948   :  { %8390 = vmatpush3.bf16.msra.mxu1 %v9206_v53  ;;  %8136 = vmatprep.mubr.msk.f32.mxu1 %vm8877_vm0, %v10655_v9 }
0x3949   :  { %8391 = vmatprep.subr.bf16.mxu1 %v10656_v55 }
0x3a16   :  { %v6579_v16 = vpop.f32.mrb[66].mxu1 }
0x3a17   :  { %v10427_v61 = vadd.f32 %v10140_v46, %v6579_v16  ;;  %v8105_v57 = vpop.f32.mrb[67].mxu1 }
0x3a19   :  { %v6583_v10 = vsel %vm912_vm8, %v10427_v61, -inf }
0x3a1a   :  { %6584 = vmax.xlane.f32.xlu1 %v6583_v10  ;;  %v6779_v22 = vpop.f32.mrb[68].mxu1 }
0x3a1b   :  { %v10432_v1 = vadd.f32 %v10279_v47, %v6779_v22  ;;  %v8131_v2 = vpop.f32.mrb[69].mxu1 }
0x3a1d   :  { %v6790_v53 = vrot.slane %v10432_v1, %v9065_v25 }
0x3a1f   :  { %v6791_v5 = vcombine.high %v6790_v53, %v6790_v53  ;;  %v6798_v62 = vrot.slane %v6790_v53, %v9065_v25 }
0x3a21   :  { %v6805_v7 = vrot.slane %v6791_v5, %v9065_v25  ;;  %v6806_v46 = vcombine.high %v6798_v62, %v6798_v62  ;;  %v6811_v24 = vrot.slane %v6798_v62, %v9073_v30 }
0x3a23   :  { %v6807_v43 = vcombine.high %v6805_v7, %v6805_v7  ;;  %v6815_v41 = vrot.slane %v6805_v7, %v9073_v30  ;;  %v6819_v58 = vrot.slane %v6806_v46, %v9073_v30  ;;  %v6828_v47 = vadd.f32 %v6811_v24, %v9079_v34 }
0x3a25   :  { %v6823_v13 = vrot.slane %v6807_v43, %v9073_v30  ;;  %v6829_v42 = vadd.f32 %v6815_v41, %v9083_v38  ;;  %v6830_v4 = vadd.f32 %v6819_v58, %v9085_v39  ;;  %8684 = vtanh.f32 %v6828_v47 }
0x3a27   :  { %v6831_v23 = vadd.f32 %v6823_v13, %v9090_v44  ;;  %8686 = vtanh.f32 %v6829_v42 }
0x3a28   :  { %8688 = vtanh.f32 %v6830_v4 }
0x3a29   :  { %8690 = vtanh.f32 %v6831_v23 }
0x3a2f   :  { %v8685_v25 = vpop.eup %8684 }
0x3a30   :  { %v6836_v49 = vmul.f32 %v10296_v17, %v8685_v25 }
0x3a31   :  { %v8687_v40 = vpop.eup %8686 }
0x3a32   :  { %v8689_v19 = vpop.eup %8688  ;;  %v6840_v21 = vsel %vm91_vm1, %v6836_v49, 0.0  ;;  %v6837_v34 = vmul.f32 %v10296_v17, %v8687_v40 }
0x3a33   :  { %6841 = vadd.xlane.f32.xlu0 %v6840_v21  ;;  %v6838_v39 = vmul.f32 %v10296_v17, %v8689_v19  ;;  %v8691_v11 = vpop.eup %8690 }
0x3a34   :  { %v6843_v38 = vsel %vm91_vm1, %v6837_v34, 0.0  ;;  %v6839_v45 = vmul.f32 %v10296_v17, %v8691_v11 }
0x3a35   :  { %6844 = vadd.xlane.f32.xlu1 %v6843_v38  ;;  %v6846_v44 = vsel %vm91_vm1, %v6838_v39, 0.0 }
0x3a36   :  { %v6849_v29 = vsel %vm91_vm1, %v6839_v45, 0.0 }
0x3a39   :  { %6847 = vadd.xlane.f32.xlu1 %v6846_v44 }
0x3a3d   :  { %6850 = vadd.xlane.f32.xlu1 %v6849_v29 }
0x3aa7   :  { %v10454_v16 = vpop.xlane.xlu1 %6584 }
0x3aa8   :  { %vm6620_vm9 = vcmp.eq.f32.partialorder %v10427_v61, %v10454_v16 }
0x3aa9   :  { %v6621_v57 = vsel %vm6620_vm9, %v9106_v3, 64 }
0x3aaa   :  { %v6622_v10 = vsel %vm912_vm8, %v6621_v57, 2147483647 }
0x3aab   :  { %v6624_v22 = vshra.s32 %v6622_v10, 16  ;;  %v6623_v49 = vand.u32 65535, %v6622_v10 }
0x3aad   :  { %v6626_v2 = vcvt.s32.f32 %v6624_v22  ;;  %v6625_v19 = vcvt.s32.f32 %v6623_v49 }
0x3aaf   :  { %6627 = vmin.xlane.f32.xlu1 %v6626_v2 }
0x3ac0   :  { %v6842_v5 = vpop.xlane.xlu0 %6841 }
0x3ac1   :  { %v6852_v7 = vadd.f32 %v6842_v5, %v9112_v8 }
0x3ac2   :  { %v6845_v53 = vpop.xlane.xlu1 %6844 }
0x3ac3   :  { %v6853_v17 = vadd.f32 %v6845_v53, %v9112_v8  ;;  %v6863_v58 = vrot.slane %v6852_v7, %v9110_v6 }
0x3ac5   :  { %v6867_v24 = vrot.slane %v6853_v17, %v9110_v6 }
0x3ac6   :  { %v6848_v62 = vpop.xlane.xlu1 %6847 }
0x3ac7   :  { %v6854_v46 = vadd.f32 %v6848_v62, %v9112_v8  ;;  %v6876_v13 = vsel %vm477_vm2, %v6867_v24, %v6863_v58 }
0x3ac9   :  { %v6871_v43 = vrot.slane %v6854_v46, %v9110_v6 }
0x3aca   :  { %v6851_v41 = vpop.xlane.xlu1 %6850 }
0x3acb   :  { %v6855_v47 = vadd.f32 %v6851_v41, %v9112_v8  ;;  %v6877_v4 = vsel %vm479_vm3, %v6871_v43, %v6876_v13 }
0x3acd   :  { %v6875_v42 = vrot.slane %v6855_v47, %v9110_v6 }
0x3acf   :  { %v6878_v23 = vsel %vm481_vm4, %v6875_v42, %v6877_v4 }
0x3ad0   :  { %v6880_v25 = vsel %vm484_vm5, %v6878_v23, -inf }
0x3ad1   :  { %6881 = vmax.xlane.f32.xlu1 %v6880_v25 }
0x3b3c   :  { %v6628_v40 = vpop.xlane.xlu1 %6627 }
0x3b3d   :  { %vm6629_vm10 = vcmp.eq.f32.partialorder %v6626_v2, %v6628_v40 }
0x3b3e   :  { %v6630_v21 = vsel %vm6629_vm10, %v6625_v19, inf }
0x3b3f   :  { %6631 = vmin.xlane.f32.xlu1 %v6630_v21 }
0x3b5e   :  { %v6882_v34 = vpop.xlane.xlu1 %6881 }
0x3b5f   :  { %v6887_v8 = vrot.slane %v6882_v34, %v9073_v30  ;;  %v6891_v38 = vrot.slane %v6882_v34, %v9127_v31  ;;  %v6895_v39 = vrot.slane %v6882_v34, %v9130_v32  ;;  %v6899_v11 = vrot.slane %v6882_v34, %v9135_v37 }
0x3b61   :  { %v6904_v44 = vsub.f32 %v6852_v7, %v6887_v8  ;;  %v6905_v45 = vsub.f32 %v6853_v17, %v6891_v38  ;;  %v6906_v29 = vsub.f32 %v6854_v46, %v6895_v39  ;;  %v6907_v10 = vsub.f32 %v6855_v47, %v6899_v11 }
0x3b62   :  { %v6634_v7 = vcvt.f32.s32 %v6628_v40 }
0x3b63   :  { %v6908_v57 = vmul.f32 1.442695, %v6904_v44  ;;  %v6910_v22 = vmul.f32 1.442695, %v6905_v45  ;;  %v6912_v53 = vmul.f32 1.442695, %v6906_v29 }
0x3b64   :  { %v6914_v2 = vmul.f32 1.442695, %v6907_v10  ;;  %v6635_v46 = vshll.u32 %v6634_v7, 16 }
0x3b65   :  { %8692 = vpow2.f32 %v6908_v57 }
0x3b66   :  { %8694 = vpow2.f32 %v6910_v22 }
0x3b67   :  { %8696 = vpow2.f32 %v6912_v53 }
0x3b68   :  { %8698 = vpow2.f32 %v6914_v2 }
0x3b6f   :  { %v8693_v5 = vpop.eup %8692 }
0x3b70   :  { %v8695_v62 = vpop.eup %8694  ;;  %6921 = vperm.xlu1 %8413, %v8693_v5  }
0x3b71   :  { %6924 = vperm.xlu0 %8412, %v8695_v62   ;;  %v8697_v24 = vpop.eup %8696 }
0x3b72   :  { %v8699_v43 = vpop.eup %8698 }
0x3b74   :  { %6927 = vperm.xlu1 %8413, %v8697_v24  }
0x3b78   :  { %6930 = vperm.xlu1 %8413, %v8699_v43  }
0x3bcc   :  { %v6632_v17 = vpop.xlane.xlu1 %6631 }
0x3bcd   :  { %v6633_v41 = vcvt.f32.s32 %v6632_v17 }
0x3bcf   :  { %v6636_v58 = vadd.s32 %v6635_v46, %v6633_v41 }
0x3bd1   :  { %vm6637_vm11 = vcmp.eq.s32.totalorder %v9106_v3, %v6636_v58 }
0x3bd2   :  { %v7449_v47 = vsel %vm6637_vm11, 1.0, %v10655_v9 }
0x3bd3   :  { %8123 = vmatmul.mubr.msk.f32.vlgmr.msra.gmra.mrb[26].mxu0 %vm216_vm7, %v7449_v47 }
0x3bef   :  { %v6922_v13 = vpop.permute.xlu1 %6921 }
0x3bf0   :  { %v6925_v42 = vpop.permute.xlu0 %6924  ;;  %v6935_v25 = vrot.slane %v6922_v13, %v9110_v6 }
0x3bf1   :  { %v6939_v23 = vrot.slane %v6925_v42, %v9110_v6 }
0x3bf3   :  { %v6928_v4 = vpop.permute.xlu1 %6927  ;;  %v6948_v19 = vsel %vm477_vm2, %v6939_v23, %v6935_v25 }
0x3bf4   :  { %v6943_v49 = vrot.slane %v6928_v4, %v9110_v6 }
0x3bf6   :  { %v6949_v3 = vsel %vm479_vm3, %v6943_v49, %v6948_v19 }
0x3bf7   :  { %v6931_v40 = vpop.permute.xlu1 %6930 }
0x3bf8   :  { %v6947_v21 = vrot.slane %v6931_v40, %v9110_v6 }
0x3bfa   :  { %v6950_v34 = vsel %vm481_vm4, %v6947_v21, %v6949_v3 }
0x3bfb   :  { %v6952_v8 = vsel %vm484_vm5, %v6950_v34, 0.0 }
0x3bfc   :  { %6953 = vadd.xlane.f32.xlu1 %v6952_v8 }
0x3c89   :  { %v6954_v38 = vpop.xlane.xlu1 %6953 }
0x3c8a   :  { %v6959_v39 = vrot.slane %v6954_v38, %v9073_v30  ;;  %v6963_v11 = vrot.slane %v6954_v38, %v9127_v31  ;;  %v6967_v44 = vrot.slane %v6954_v38, %v9130_v32  ;;  %v6971_v45 = vrot.slane %v6954_v38, %v9135_v37 }
0x3c8c   :  { %8700 = vrcp.f32 %v6959_v39 }
0x3c8d   :  { %8702 = vrcp.f32 %v6963_v11 }
0x3c8e   :  { %8704 = vrcp.f32 %v6967_v44 }
0x3c8f   :  { %8706 = vrcp.f32 %v6971_v45 }
0x3c96   :  { %v8701_v29 = vpop.eup %8700 }
0x3c97   :  { %v6977_v57 = vmul.f32 %v8701_v29, %v8693_v5  ;;  %v8703_v22 = vpop.eup %8702 }
0x3c98   :  { %v6979_v10 = vmul.f32 %v8703_v22, %v8695_v62  ;;  %v8705_v53 = vpop.eup %8704 }
0x3c99   :  { %6986 = vperm.xlu0 %8412, %v6977_v57   ;;  %v6981_v2 = vmul.f32 %v8705_v53, %v8697_v24  ;;  %v8707_v7 = vpop.eup %8706 }
0x3c9a   :  { %v6983_v30 = vmul.f32 %v8707_v7, %v8699_v43 }
0x3c9d   :  { %6991 = vperm.xlu0 %8412, %v6979_v10  }
0x3ca1   :  { %6996 = vperm.xlu0 %8412, %v6981_v2  }
0x3ca5   :  { %7001 = vperm.xlu0 %8412, %v6983_v30  }
0x3ca6   :  { %v6709_v31 = vpop.f32.mrb[26].mxu0 }
0x3ca7   :  { %v8124_v17 = vpop.f32.mrb[27].mxu0 }
0x3ca9   :  { %7189 = vrot.lane.b32.xlu0 %v10432_v1, %s8881_s2 }
0x3cad   :  { %7199 = vrot.lane.b32.xlu0 %v10432_v1, %s8882_s0 }
0x3d18   :  { %v6987_v32 = vpop.permute.xlu0 %6986 }
0x3d19   :  { %v7004_v37 = vmul.f32 %v10359_v36, %v6987_v32  ;;  %v7310_v36 = vrot.slane %v6987_v32, %v9110_v6 }
0x3d1b   :  { %v7008_v5 = vsel %vm91_vm1, %v7004_v37, 0.0 }
0x3d1c   :  { %v7009_v62 = vrot.slane %v7008_v5, 4  ;;  %v6992_v46 = vpop.permute.xlu0 %6991 }
0x3d1d   :  { %v7005_v24 = vmul.f32 %v10366_v60, %v6992_v46  ;;  %v7314_v13 = vrot.slane %v6992_v46, %v9110_v6 }
0x3d1e   :  { %v7010_v41 = vadd.f32 %v7009_v62, %v7008_v5 }
0x3d1f   :  { %v7015_v43 = vsel %vm91_vm1, %v7005_v24, 0.0  ;;  %v7323_v19 = vsel %vm477_vm2, %v7314_v13, %v7310_v36 }
0x3d20   :  { %v7016_v58 = vrot.slane %v7015_v43, 4  ;;  %v6997_v47 = vpop.permute.xlu0 %6996  ;;  %v7011_v25 = vrot.slane %v7010_v41, 2 }
0x3d21   :  { %v7006_v42 = vmul.f32 %v10374_v48, %v6997_v47  ;;  %v7318_v1 = vrot.slane %v6997_v47, %v9110_v6 }
0x3d22   :  { %v7017_v4 = vadd.f32 %v7016_v58, %v7015_v43  ;;  %v7012_v11 = vadd.f32 %v7011_v25, %v7010_v41 }
0x3d23   :  { %v7022_v23 = vsel %vm91_vm1, %v7006_v42, 0.0  ;;  %v7324_v48 = vsel %vm479_vm3, %v7318_v1, %v7323_v19 }
0x3d24   :  { %v7018_v49 = vrot.slane %v7017_v4, 2  ;;  %v7023_v40 = vrot.slane %v7022_v23, 4  ;;  %v7002_v60 = vpop.permute.xlu0 %7001 }
0x3d25   :  { %v7007_v21 = vmul.f32 %v10384_v14, %v7002_v60  ;;  %v7322_v3 = vrot.slane %v7002_v60, %v9110_v6  ;;  %v7013_v6 = vrot.slane %v7012_v11, 1 }
0x3d26   :  { %v7019_v34 = vadd.f32 %v7018_v49, %v7017_v4  ;;  %v7024_v8 = vadd.f32 %v7023_v40, %v7022_v23 }
0x3d27   :  { %v7029_v38 = vsel %vm91_vm1, %v7007_v21, 0.0  ;;  %v7325_v39 = vsel %vm481_vm4, %v7322_v3, %v7324_v48  ;;  %v7014_v30 = vadd.f32 %v7013_v6, %v7012_v11  ;;  %v916_v3 = vsub.f32 %v9295_v0, %v9322_v27 }
0x3d28   :  { %v7025_v44 = vrot.slane %v7024_v8, 2  ;;  %v7030_v45 = vrot.slane %v7029_v38, 4  ;;  %7456 = vst.msk [vmem:[%s10642_s15 + $0x24] sm:$0xf] %vm484_vm5, %v7325_v39  ;;  %v7020_v29 = vrot.slane %v7019_v34, 1  ;;  %v7190_v13 = vpop.permute.xlu0 %7189 }
0x3d2a   :  { %v7026_v14 = vadd.f32 %v7025_v44, %v7024_v8  ;;  %v7031_v57 = vadd.f32 %v7030_v45, %v7029_v38  ;;  %v7021_v53 = vadd.f32 %v7020_v29, %v7019_v34  ;;  %v917_v34 = vmul.f32 1.442695, %v916_v3 }
0x3d2b   :  { %v1623_v29 = vsub.f32 %v9424_v12, %v9458_v15 }
0x3d2c   :  { %v7027_v22 = vrot.slane %v7026_v14, 1  ;;  %v7032_v10 = vrot.slane %v7031_v57, 2  ;;  %v7040_v37 = vsel %vm477_vm2, %v7021_v53, %v7014_v30  ;;  %v7200_v1 = vpop.permute.xlu0 %7199  ;;  %v8777_v53 = vld [vmem:[%s10640_s13] ss:$0 sm:$0xff]  ;;  %s8885_s13 = smov [#allocation9]  }
0x3d2e   :  { %v7033_v2 = vadd.f32 %v7032_v10, %v7031_v57  ;;  %v7028_v7 = vadd.f32 %v7027_v22, %v7026_v14  ;;  %v1624_v14 = vmul.f32 1.442695, %v1623_v29  ;;  %v2332_v57 = vsub.f32 %v9580_v52, %v9607_v56 }
0x3d2f   :  { %v3041_v22 = vsub.f32 %v9719_v59, %v9746_v33 }
0x3d30   :  { %v7034_v17 = vrot.slane %v7033_v2, 1  ;;  %v7041_v5 = vsel %vm479_vm3, %v7028_v7, %v7040_v37  ;;  %v2333_v6 = vmul.f32 1.442695, %v2332_v57 }
0x3d31   :  { %v3042_v10 = vmul.f32 1.442695, %v3041_v22 }
0x3d32   :  { %v7035_v32 = vadd.f32 %v7034_v17, %v7033_v2  ;;  %v4459_v17 = vsub.f32 %v10004_v50, %v10031_v28 }
0x3d34   :  { %v7042_v62 = vsel %vm481_vm4, %v7035_v32, %v7041_v5  ;;  %v4460_v5 = vmul.f32 1.442695, %v4459_v17 }
0x3d35   :  { %8137 = vmatmul.mubr.msk.f32.vlgmr.msra.gmra.mrb[70].mxu1 %vm91_vm1, %v7042_v62  ;;  %v5168_v62 = vsub.f32 %v10143_v20, %v10170_v35 }
0x3d36   :  { %8393 = vmatpush3.bf16.msra.mxu1 %v9236_v18  ;;  %8143 = vmatprep.mubr.msk.f32.mxu1 %vm8877_vm0, %v10655_v9  ;;  %v8776_v18 = vld [vmem:[%s10638_s11] ss:$0 sm:$0xff] }
0x3d37   :  { %8394 = vmatprep.subr.bf16.mxu1 %v10656_v55 }
0x3d39   :  { %8144 = vmatmul.mubr.msk.f32.vlgmr.msra.gmra.mrb[72].mxu1 %vm91_vm1, %v6709_v31 }
0x3d3a   :  { %8396 = vmatpush3.bf16.msra.mxu1 %v9270_v51  ;;  %8150 = vmatprep.mubr.msk.f32.mxu1 %vm8877_vm0, %v10655_v9  ;;  %vm7330_vm0 = vcmask 125952  }
0x3e08   :  { %v7111_v46 = vpop.f32.mrb[70].mxu1 }
0x3e09   :  { %v8138_v24 = vpop.f32.mrb[71].mxu1 }
0x3e0c   :  { %v7184_v43 = vpop.f32.mrb[72].mxu1 }
0x3e0d   :  { %v7185_v41 = vadd.f32 %v7184_v43, %v7111_v46  ;;  %v8145_v58 = vpop.f32.mrb[73].mxu1  ;;  %v5169_v43 = vmul.f32 1.442695, %v5168_v62 }
0x3e0e   :  { %v10660_v58 = vld [vmem:[#allocation15_spill] sm:$0xff] }
0x3e0f   :  { %v7188_v47 = vadd.f32 %v8776_v18, %v7185_v41  ;;  %v10659_v41 = vld [vmem:[#allocation16_spill] sm:$0xff] }
0x3e10   :  { %v5877_v18 = vsub.f32 %v10660_v58, %v10659_v41 }
0x3e11   :  { %v7192_v42 = vadd.f32 %v7190_v13, %v7188_v47 }
0x3e13   :  { %v7454_v55 = vmul.f32 -1.442695, %v7192_v42  ;;  %v5878_v42 = vmul.f32 1.442695, %v5877_v18 }
0x3e15   :  { %8708 = vpow2.f32 %v7454_v55  ;;  %v6586_v55 = vsub.f32 %v10427_v61, %v10454_v16 }
0x3e1f   :  { %v8709_v31 = vpop.eup %8708 }
0x3e20   :  { %v7196_v4 = vadd.f32 1.0, %v8709_v31 }
0x3e22   :  { %8710 = vrcp.f32 %v7196_v4 }
0x3e2c   :  { %v8711_v51 = vpop.eup %8710 }
0x3e2d   :  { %v7202_v9 = vmul.f32 %v8711_v51, %v7200_v1  ;;  %v7209_v49 = vsub.f32 1.0, %v8711_v51  ;;  %v7215_v60 = vmul.f32 %v8711_v51, %v10412_v63  ;;  %v6587_v51 = vmul.f32 1.442695, %v6586_v55 }
0x3e2f   :  { %7204 = vrot.lane.b32.xlu0 %v7202_v9, %s8883_s22  ;;  %s7352_s22 = sshll.u32 %s8885_s13, 4  ;;  %s7353_s22 = int_to_ptr.vmem [resolvable:$true] %s7352_s22 }
0x3e30   :  { %s8822_s9 = scalar_lea.vmem %s7353_s22, 64  ;;  %p8827_p3 = scmp.lt.s32.totalorder %s7353_s22, %s7353_s22 }
0x3e31   :  { %p8823_p2 = scmp.ne.s32.totalorder %s7353_s22, %s8822_s9  ;;  %p8828_p4 = scmp.lt.s32.totalorder %s8822_s9, %s8822_s9 }
0x3e33   :  { %p8829_p5 = por %p8828_p4, %p8827_p3 }
0x3e35   :  { %p8830_p6 = pnand %p8829_p5, %p8823_p2 }
0x3ea1   :  { %v7205_v36 = vpop.permute.xlu0 %7204 }
0x3ea2   :  { %v7207_v23 = vadd.f32 %v7205_v36, %v7188_v47 }
0x3ea4   :  { %8712 = vtanh.f32 %v7207_v23 }
0x3ea5   :  { %8714 = vpow2.f32 %v917_v34 }
0x3eae   :  { %v8713_v25 = vpop.eup %8712 }
0x3eaf   :  { %7211 = vrot.lane.b32.xlu0 %v8713_v25, %s8881_s2  ;;  %v8715_v8 = vpop.eup %8714 }
0x3eb0   :  { %v919_v48 = vsel %vm912_vm8, %v8715_v8, 0.0 }
0x3f21   :  { %v7212_v40 = vpop.permute.xlu0 %7211 }
0x3f22   :  { %v7214_v19 = vmul.f32 %v7212_v40, %v7209_v49 }
0x3f24   :  { %v7216_v21 = vadd.f32 %v7215_v60, %v7214_v19 }
0x3f26   :  { %7218 = vrot.lane.b32.xlu0 %v7216_v21, %s8881_s2 }
0x3f45   :  { %920 = vadd.xlane.f32.xlu0 %v919_v48 }
0x3f98   :  { %v7219_v38 = vpop.permute.xlu0 %7218 }
0x3f99   :  { %8151 = vmatmul.mubr.msk.f32.vlgmr.msra.gmra.mrb[74].mxu1 %vm91_vm1, %v7219_v38  ;;  %7331 = vst.msk [vmem:[#allocation9] sm:$0xf] %vm7330_vm0, %v7219_v38 }
0x3fd2   :  { %v921_v39 = vpop.xlane.xlu0 %920 }
0x3fd3   :  { %8716 = vlog2.f32 %v921_v39 }
0x3fd4   :  { %8718 = vpow2.f32 %v1624_v14 }
0x3fd5   :  { %8720 = vpow2.f32 %v2333_v6 }
0x3fd6   :  { %8722 = vpow2.f32 %v3042_v10 }
0x3fdd   :  { %v8717_v63 = vpop.eup %8716 }
0x3fde   :  { %v923_v11 = vmul.f32 0.6931472, %v8717_v63  ;;  %v8719_v37 = vpop.eup %8718 }
0x3fdf   :  { %v1626_v46 = vsel %vm912_vm8, %v8719_v37, 0.0  ;;  %v8721_v24 = vpop.eup %8720 }
0x3fe0   :  { %v924_v44 = vadd.f32 %v923_v11, %v9322_v27  ;;  %v3750_v27 = vsub.f32 %v9848_v26, %v9882_v54  ;;  %v2335_v47 = vsel %vm912_vm8, %v8721_v24, 0.0  ;;  %v8723_v13 = vpop.eup %8722 }
0x3fe1   :  { %v3044_v31 = vsel %vm912_vm8, %v8723_v13, 0.0 }
0x3fe2   :  { %v925_v45 = vsub.f32 %v9295_v0, %v924_v44  ;;  %v3751_v30 = vmul.f32 1.442695, %v3750_v27 }
0x3fe4   :  { %926 = vst.msk [vmem:[#allocation8] sm:$0xf] %vm912_vm8, %v925_v45  ;;  %8724 = vpow2.f32 %v3751_v30 }
0x3fe5   :  { %8726 = vpow2.f32 %v4460_v5 }
0x3fe6   :  { %8728 = vpow2.f32 %v5169_v43 }
0x3fe7   :  { %8730 = vpow2.f32 %v5878_v42 }
0x3fe8   :  { %8732 = vpow2.f32 %v6587_v51 }
0x3fee   :  { %v8725_v4 = vpop.eup %8724 }
0x3fef   :  { %v3753_v1 = vsel %vm912_vm8, %v8725_v4, 0.0  ;;  %v8727_v9 = vpop.eup %8726 }
0x3ff0   :  { %v4462_v36 = vsel %vm912_vm8, %v8727_v9, 0.0  ;;  %v8729_v23 = vpop.eup %8728 }
0x3ff1   :  { %v5171_v25 = vsel %vm912_vm8, %v8729_v23, 0.0  ;;  %v8731_v49 = vpop.eup %8730 }
0x3ff2   :  { %v5880_v40 = vsel %vm912_vm8, %v8731_v49, 0.0  ;;  %v8733_v60 = vpop.eup %8732 }
0x3ff3   :  { %v6589_v19 = vsel %vm912_vm8, %v8733_v60, 0.0 }
0x406c   :  { %v7288_v0 = vpop.f32.mrb[74].mxu1 }
0x406d   :  { %v10551_v2 = vadd.f32 %v8777_v53, %v7288_v0  ;;  %v8152_v7 = vpop.f32.mrb[75].mxu1 }
0x406f   :  { %v7292_v32 = vsel %vm912_vm8, %v10551_v2, -inf }
0x4070   :  { %7293 = vmax.xlane.f32.xlu1 %v7292_v32 }
0x4074   :  { %1627 = vadd.xlane.f32.xlu1 %v1626_v46 }
0x4078   :  { %2336 = vadd.xlane.f32.xlu1 %v2335_v47 }
0x407c   :  { %3045 = vadd.xlane.f32.xlu1 %v3044_v31 }
0x4080   :  { %3754 = vadd.xlane.f32.xlu1 %v3753_v1 }
0x4084   :  { %4463 = vadd.xlane.f32.xlu1 %v4462_v36 }
0x4088   :  { %5172 = vadd.xlane.f32.xlu1 %v5171_v25 }
0x408c   :  { %5881 = vadd.xlane.f32.xlu1 %v5880_v40 }
0x4090   :  { %6590 = vadd.xlane.f32.xlu1 %v6589_v19 }
0x40fd   :  { %v10571_v21 = vpop.xlane.xlu1 %7293 }
0x40fe   :  { %v7295_v3 = vsub.f32 %v10551_v2, %v10571_v21 }
0x4100   :  { %v7296_v34 = vmul.f32 1.442695, %v7295_v3 }
0x4101   :  { %v1628_v8 = vpop.xlane.xlu1 %1627 }
0x4102   :  { %8734 = vpow2.f32 %v7296_v34 }
0x4103   :  { %8736 = vlog2.f32 %v1628_v8 }
0x4105   :  { %v2337_v48 = vpop.xlane.xlu1 %2336 }
0x4106   :  { %8738 = vlog2.f32 %v2337_v48 }
0x4109   :  { %v3046_v38 = vpop.xlane.xlu1 %3045 }
0x410a   :  { %8740 = vlog2.f32 %v3046_v38 }
0x410c   :  { %v8735_v39 = vpop.eup %8734 }
0x410d   :  { %v8737_v63 = vpop.eup %8736  ;;  %v3755_v11 = vpop.xlane.xlu1 %3754  ;;  %v7298_v44 = vsel %vm912_vm8, %v8735_v39, 0.0 }
0x410e   :  { %v1630_v45 = vmul.f32 0.6931472, %v8737_v63  ;;  %8742 = vlog2.f32 %v3755_v11  ;;  %7299 = vadd.xlane.f32.xlu0 %v7298_v44 }
0x4110   :  { %v8739_v29 = vpop.eup %8738  ;;  %v1631_v14 = vadd.f32 %v1630_v45, %v9458_v15 }
0x4111   :  { %v2339_v57 = vmul.f32 0.6931472, %v8739_v29  ;;  %v4464_v6 = vpop.xlane.xlu1 %4463 }
0x4112   :  { %v1632_v22 = vsub.f32 %v9424_v12, %v1631_v14  ;;  %8744 = vlog2.f32 %v4464_v6 }
0x4113   :  { %v2340_v10 = vadd.f32 %v2339_v57, %v9607_v56 }
0x4114   :  { %v8741_v27 = vpop.eup %8740  ;;  %1634 = vst.msk [vmem:[#allocation8 + $0x4] sm:$0xf] %vm912_vm8, %v1632_v22 }
0x4115   :  { %v2341_v0 = vsub.f32 %v9580_v52, %v2340_v10  ;;  %v3048_v53 = vmul.f32 0.6931472, %v8741_v27  ;;  %v5173_v7 = vpop.xlane.xlu1 %5172 }
0x4116   :  { %8746 = vlog2.f32 %v5173_v7 }
0x4117   :  { %2343 = vst.msk [vmem:[#allocation8 + $0x8] sm:$0xf] %vm912_vm8, %v2341_v0  ;;  %v3049_v30 = vadd.f32 %v3048_v53, %v9746_v33 }
0x4118   :  { %v8743_v15 = vpop.eup %8742 }
0x4119   :  { %v3050_v17 = vsub.f32 %v9719_v59, %v3049_v30  ;;  %v3757_v32 = vmul.f32 0.6931472, %v8743_v15  ;;  %v5882_v12 = vpop.xlane.xlu1 %5881 }
0x411a   :  { %8748 = vlog2.f32 %v5882_v12 }
0x411b   :  { %3052 = vst.msk [vmem:[#allocation8 + $0xc] sm:$0xf] %vm912_vm8, %v3050_v17  ;;  %v3758_v56 = vadd.f32 %v3757_v32, %v9882_v54 }
0x411c   :  { %v8745_v37 = vpop.eup %8744 }
0x411d   :  { %v3759_v52 = vsub.f32 %v9848_v26, %v3758_v56  ;;  %v4466_v5 = vmul.f32 0.6931472, %v8745_v37  ;;  %v6591_v62 = vpop.xlane.xlu1 %6590 }
0x411e   :  { %8750 = vlog2.f32 %v6591_v62 }
0x411f   :  { %3761 = vst.msk [vmem:[#allocation8 + $0x10] sm:$0xf] %vm912_vm8, %v3759_v52  ;;  %v4467_v33 = vadd.f32 %v4466_v5, %v10031_v28 }
0x4120   :  { %v8747_v46 = vpop.eup %8746 }
0x4121   :  { %v4468_v59 = vsub.f32 %v10004_v50, %v4467_v33  ;;  %v5175_v24 = vmul.f32 0.6931472, %v8747_v46 }
0x4123   :  { %4470 = vst.msk [vmem:[#allocation8 + $0x14] sm:$0xf] %vm912_vm8, %v4468_v59  ;;  %v5176_v43 = vadd.f32 %v5175_v24, %v10170_v35 }
0x4124   :  { %v8749_v18 = vpop.eup %8748 }
0x4125   :  { %v5177_v54 = vsub.f32 %v10143_v20, %v5176_v43  ;;  %v5884_v47 = vmul.f32 0.6931472, %v8749_v18 }
0x4127   :  { %5179 = vst.msk [vmem:[#allocation8 + $0x18] sm:$0xf] %vm912_vm8, %v5177_v54  ;;  %v5885_v26 = vadd.f32 %v5884_v47, %v10659_v41 }
0x4128   :  { %v8751_v13 = vpop.eup %8750 }
0x4129   :  { %v5886_v42 = vsub.f32 %v10660_v58, %v5885_v26  ;;  %v6593_v28 = vmul.f32 0.6931472, %v8751_v13 }
0x412b   :  { %5888 = vst.msk [vmem:[#allocation8 + $0x1c] sm:$0xf] %vm912_vm8, %v5886_v42  ;;  %v6594_v50 = vadd.f32 %v6593_v28, %v10454_v16 }
0x412d   :  { %v6595_v55 = vsub.f32 %v10427_v61, %v6594_v50 }
0x412f   :  { %6597 = vst.msk [vmem:[#allocation8 + $0x20] sm:$0xf] %vm912_vm8, %v6595_v55 }
0x4130   :  { %8833 = shalt.err (!%p8830_p6)
}
0x4131   :  { %s8834_s25 = scalar_lea.hbm %s10643_s16, 64 }
0x4132   :  { %p8835_p7 = scmp.ne.s32.totalorder %s10643_s16, %s8834_s25  ;;  %p8838_p8 = scmp.lt.u32.totalorder %s8834_s25, %s10643_s16 }
0x4134   :  { %p8840_p9 = pnand %p8838_p8, %p8835_p7 }
0x4136   :  { %8843 = shalt.err (!%p8840_p9)
}
0x4137   :  { %7355 = dma.vmem_to_hbm [thread:$0]  %s7353_s22, 64, %s10643_s16, [#allocation10]  }
0x4138   :  { %s8886_s30 = smov [#allocation8]  }
0x4139   :  { %s7337_s4 = sshll.u32 %s8886_s30, 4  ;;  %s7338_s4 = int_to_ptr.vmem [resolvable:$true] %s7337_s4 }
0x413a   :  { %s8844_s1 = scalar_lea.vmem %s7338_s4, 640  ;;  %p8849_p11 = scmp.lt.s32.totalorder %s7338_s4, %s7338_s4 }
0x413b   :  { %p8845_p10 = scmp.ne.s32.totalorder %s7338_s4, %s8844_s1  ;;  %p8850_p12 = scmp.lt.s32.totalorder %s8844_s1, %s8844_s1 }
0x413d   :  { %p8851_p13 = por %p8850_p12, %p8849_p11 }
0x413f   :  { %p8852_p0 = pnand %p8851_p13, %p8845_p10 }
0x419b   :  { %v7300_v20 = vpop.xlane.xlu0 %7299 }
0x419c   :  { %8752 = vlog2.f32 %v7300_v20 }
0x41a6   :  { %v8753_v35 = vpop.eup %8752 }
0x41a7   :  { %v7302_v61 = vmul.f32 0.6931472, %v8753_v35 }
0x41a9   :  { %v7303_v16 = vadd.f32 %v7302_v61, %v10571_v21 }
0x41ab   :  { %v7304_v41 = vsub.f32 %v10551_v2, %v7303_v16 }
0x41ad   :  { %7306 = vst.msk [vmem:[#allocation8 + $0x24] sm:$0xf] %vm912_vm8, %v7304_v41 }
0x41ae   :  { %8855 = shalt.err (!%p8852_p0)
}
0x41af   :  { %s8856_s8 = scalar_lea.hbm %s10641_s14, 640 }
0x41b0   :  { %p8857_p1 = scmp.ne.s32.totalorder %s10641_s14, %s8856_s8  ;;  %p8860_p2 = scmp.lt.u32.totalorder %s8856_s8, %s10641_s14 }
0x41b2   :  { %p8862_p3 = pnand %p8860_p2, %p8857_p1 }
0x41b4   :  { %8865 = shalt.err (!%p8862_p3)
}
0x41b5   :  { %s8887_s19 = smov 64   ;;  %s8888_s7 = smov 4  }
0x41b6   :  { %7343 = dma.vmem_to_hbm [thread:$0]  %s7338_s4, 640, %s10641_s14, [#allocation5], %s8887_s19, %s8887_s19, %s8888_s7  }
0x41b7   :  { %8870 = dma.done.wait [#allocation5], 640  }
0x41b8   :  { %8871 = vsyncadd [#allocation5], 4294966656 }
0x41b9   :  { %8872 = dma.done.wait [#allocation10], 64  }
0x41ba   :  { %8873 = vsyncadd [#allocation10], 4294967232 }
0x41bb   :  { %7364 = vsyncpa [#allocation4], 1 }
0x41bc   :  { %7365 = vsyncpa [#allocation7], 1 }
0x41bd   :  { %7366 = vsyncpa [#allocation5], 1 }
0x41be   :  { %7367 = vsyncpa [#allocation10], 1 }

</bundles_post_ra>
